<compile_context>
chip_gen: v6e
topology: v6e:2x2x1
jax: 0.10.0
libtpu: 0.0.40
codegen_flags: <defaults>
</compile_context>

<pallas_src>
import functools
import math

import jax
import jax.numpy as jnp
from jax.experimental import pallas as pl
from jax.experimental.pallas import tpu as pltpu

_BN_EPS = 1e-5
_LANE = 128
_ROW_TILE_CAP = 256          # rows per tile for matmul / BN kernels
_CHAN_TILE_CAP = 512         # output-channel tile cap (multiple of 128)
_K_TILE_CAP = 1024           # K tile cap: keep K single-step so weights stay VMEM-resident
_VMEM_LIMIT = 32 * 1024 * 1024  # fits v5e/v6e/v7x scoped budgets with headroom


# --------------------------------------------------------------------------
# small static helpers
# --------------------------------------------------------------------------
def _round_up(n, m):
    return ((n + m - 1) // m) * m


def _pick_row_tile(m, cap=_ROW_TILE_CAP):
    """Largest divisor of m that is a multiple of 8 and <= cap (else m itself)."""
    if m <= cap:
        return m
    for t in range(cap - cap % 8, 7, -8):
        if m % t == 0:
            return t
    return m


def _pick_chan_tile(c, cap=_CHAN_TILE_CAP):
    """Largest divisor of c that is a multiple of 128 and <= cap (c is 128-aligned)."""
    if c <= cap:
        return c
    for t in range(cap - cap % _LANE, _LANE - 1, -_LANE):
        if c % t == 0:
            return t
    return c


# --------------------------------------------------------------------------
# Kernel 1: tiled matmul (1x1 conv), optionally with fused BN sum / sumsq epilogue
# --------------------------------------------------------------------------
def _mm_stats_kernel(x_ref, w_ref, y_ref, sum_ref, ssq_ref, acc_ref):
    k = pl.program_id(2)

    @pl.when(k == 0)
    def _():
        acc_ref[...] = jnp.zeros_like(acc_ref)

    acc_ref[...] += jnp.dot(x_ref[...], w_ref[...],
                            preferred_element_type=jnp.float32)

    @pl.when(k == pl.num_programs(2) - 1)
    def _():
        y = acc_ref[...]
        y_ref[...] = y.astype(y_ref.dtype)
        # per-(M tile) partial statistics; reduced (tiny) in the wrapper.
        sum_ref[...] = jnp.sum(y, axis=0, keepdims=True)
        ssq_ref[...] = jnp.sum(y * y, axis=0, keepdims=True)


def _mm_kernel(x_ref, w_ref, y_ref, acc_ref):
    k = pl.program_id(2)

    @pl.when(k == 0)
    def _():
        acc_ref[...] = jnp.zeros_like(acc_ref)

    acc_ref[...] += jnp.dot(x_ref[...], w_ref[...],
                            preferred_element_type=jnp.float32)

    @pl.when(k == pl.num_programs(2) - 1)
    def _():
        y_ref[...] = acc_ref[...].astype(y_ref.dtype)


def _matmul_stats(x_rows, w2d, out_dtype=jnp.bfloat16):
    """x_rows: (M, K) bf16, w2d: (K, N) bf16 ->
       (y (M,N) out_dtype, sum (1,N) f32, sumsq (1,N) f32)."""
    M, K = x_rows.shape
    K2, Nc = w2d.shape
    assert K == K2
    tm = _pick_row_tile(M)
    tk = _pick_chan_tile(K, cap=_K_TILE_CAP)
    tn = _pick_chan_tile(Nc)
    gi = M // tm
    grid = (Nc // tn, gi, K // tk)

    y, psum, pssq = pl.pallas_call(
        _mm_stats_kernel,
        grid=grid,
        in_specs=[
            pl.BlockSpec((tm, tk), lambda j, i, k: (i, k)),
            pl.BlockSpec((tk, tn), lambda j, i, k: (k, j)),
        ],
        out_specs=[
            pl.BlockSpec((tm, tn), lambda j, i, k: (i, j)),
            pl.BlockSpec((None, 1, tn), lambda j, i, k: (i, 0, j)),
            pl.BlockSpec((None, 1, tn), lambda j, i, k: (i, 0, j)),
        ],
        out_shape=[
            jax.ShapeDtypeStruct((M, Nc), out_dtype),
            jax.ShapeDtypeStruct((gi, 1, Nc), jnp.float32),
            jax.ShapeDtypeStruct((gi, 1, Nc), jnp.float32),
        ],
        scratch_shapes=[pltpu.VMEM((tm, tn), jnp.float32)],
        compiler_params=pltpu.CompilerParams(
            dimension_semantics=("parallel", "parallel", "arbitrary"),
            vmem_limit_bytes=_VMEM_LIMIT),
    )(x_rows, w2d)
    return y, jnp.sum(psum, axis=0), jnp.sum(pssq, axis=0)


def _matmul_plain(x_rows, w2d, out_dtype=jnp.bfloat16):
    """Plain tiled matmul (no BN-stats epilogue) -- used for the 1x1 shortcut."""
    M, K = x_rows.shape
    _, Nc = w2d.shape
    tm = _pick_row_tile(M)
    tk = _pick_chan_tile(K, cap=_K_TILE_CAP)
    tn = _pick_chan_tile(Nc)
    grid = (Nc // tn, M // tm, K // tk)
    return pl.pallas_call(
        _mm_kernel,
        grid=grid,
        in_specs=[
            pl.BlockSpec((tm, tk), lambda j, i, k: (i, k)),
            pl.BlockSpec((tk, tn), lambda j, i, k: (k, j)),
        ],
        out_specs=pl.BlockSpec((tm, tn), lambda j, i, k: (i, j)),
        out_shape=jax.ShapeDtypeStruct((M, Nc), out_dtype),
        scratch_shapes=[pltpu.VMEM((tm, tn), jnp.float32)],
        compiler_params=pltpu.CompilerParams(
            dimension_semantics=("parallel", "parallel", "arbitrary"),
            vmem_limit_bytes=_VMEM_LIMIT),
    )(x_rows, w2d)


# --------------------------------------------------------------------------
# Kernel 2: 3x3 conv (padding=1) via flat-shift taps + bias + fused BN stats
# --------------------------------------------------------------------------
def _conv3x3_kernel(*refs, taps, lo, wq, wo, cout, n_src):
    src_refs = refs[:n_src]
    w_ref = refs[n_src]          # (9, Cin, Cout)
    b_ref = refs[n_src + 1]      # (1, Cout)
    y_ref, sum_ref, ssq_ref = refs[n_src + 2:]

    acc = jnp.zeros((lo, cout), jnp.float32)
    for t, (ai, off) in enumerate(taps):         # 9 taps, each one contiguous slice + MXU dot
        lhs = src_refs[ai][pl.ds(off, lo), :]    # (lo, Cin) bf16
        acc = acc + jnp.dot(lhs, w_ref[t], preferred_element_type=jnp.float32)
    y = acc + b_ref[...]

    # Zero the row-wrap "garbage" columns (flattened width wq > valid width wo) so the fused
    # BN statistics are exact and the stored slab is clean.
    col = jax.lax.broadcasted_iota(jnp.int32, (lo, 1), 0) % wq
    y = jnp.where(col < wo, y, 0.0)

    y_ref[...] = y.astype(y_ref.dtype)
    sum_ref[...] = jnp.sum(y, axis=0, keepdims=True)
    ssq_ref[...] = jnp.sum(y * y, axis=0, keepdims=True)


def _conv3x3_stats(x, w9, bias, stride):
    """x: (N, H, W, Cin) bf16 (channel-padded); w9: (9, Cin, Cout) bf16; bias: (1, Cout) f32.
       Returns (y (N, Ho, Wo, Cout) bf16, sum (1, Cout) f32, sumsq (1, Cout) f32)."""
    N, H, W, Cin = x.shape
    Cout = w9.shape[-1]
    Hp, Wp = H + 2, W + 2
    Ho = (Hp - 3) // stride + 1
    Wo = (Wp - 3) // stride + 1
    xp = jnp.pad(x, ((0, 0), (1, 1), (1, 1), (0, 0)))   # spatial zero pad

    if stride == 1:
        wq = Wp
        # one extra zero row so the largest tap slice stays in-bounds
        src = jnp.pad(xp, ((0, 0), (0, 1), (0, 0), (0, 0)))
        srcs = [src.reshape(N, (Hp + 1) * Wp, Cin)]
        taps = tuple((0, di * Wp + dj) for di in range(3) for dj in range(3))
    else:
        # stride 2: 4-way row/column parity split so every tap is a constant flat offset.
        wq = (Wp + 1) // 2
        hq = Ho + 2
        srcs = []
        for rp in (0, 1):
            for cp in (0, 1):
                a = xp[:, rp::2, cp::2, :]
                a = jnp.pad(a, ((0, 0), (0, hq - a.shape[1]), (0, wq - a.shape[2]), (0, 0)))
                srcs.append(a.reshape(N, hq * wq, Cin))
        taps = tuple((2 * (di % 2) + (dj % 2), (di // 2) * wq + (dj // 2))
                     for di in range(3) for dj in range(3))

    lo = Ho * wq
    kern = functools.partial(_conv3x3_kernel, taps=taps, lo=lo, wq=wq, wo=Wo,
                             cout=Cout, n_src=len(srcs))
    in_specs = ([pl.BlockSpec((None, s.shape[1], Cin), lambda n: (n, 0, 0)) for s in srcs]
                + [pl.BlockSpec((9, Cin, Cout), lambda n: (0, 0, 0)),
                   pl.BlockSpec((1, Cout), lambda n: (0, 0))])

    y_flat, psum, pssq = pl.pallas_call(
        kern,
        grid=(N,),
        in_specs=in_specs,
        out_specs=[
            pl.BlockSpec((None, lo, Cout), lambda n: (n, 0, 0)),
            pl.BlockSpec((None, 1, Cout), lambda n: (n, 0, 0)),
            pl.BlockSpec((None, 1, Cout), lambda n: (n, 0, 0)),
        ],
        out_shape=[
            jax.ShapeDtypeStruct((N, lo, Cout), jnp.bfloat16),
            jax.ShapeDtypeStruct((N, 1, Cout), jnp.float32),
            jax.ShapeDtypeStruct((N, 1, Cout), jnp.float32),
        ],
        compiler_params=pltpu.CompilerParams(
            dimension_semantics=("parallel",),
            vmem_limit_bytes=_VMEM_LIMIT),
    )(*srcs, w9, bias)

    # drop the zeroed garbage columns (cheap bf16 slice, layout plumbing only)
    y = y_flat.reshape(N, Ho, wq, Cout)[:, :, :Wo, :]
    return y, jnp.sum(psum, axis=0), jnp.sum(pssq, axis=0)


# --------------------------------------------------------------------------
# Kernel 3: BN apply (batch stats) + optional residual add + ReLU, tiled over rows
# --------------------------------------------------------------------------
def _bn_relu_kernel(y_ref, sum_ref, ssq_ref, g_ref, b_ref, o_ref, *, inv_count):
    mean = sum_ref[...] * inv_count
    var = jnp.maximum(ssq_ref[...] * inv_count - mean * mean, 0.0)
    scale = jax.lax.rsqrt(var + _BN_EPS) * g_ref[...]
    shift = b_ref[...] - mean * scale
    o_ref[...] = jnp.maximum(y_ref[...] * scale + shift, 0.0).astype(o_ref.dtype)


def _bn_add_relu_kernel(y_ref, sum_ref, ssq_ref, g_ref, b_ref, res_ref, o_ref, *, inv_count):
    mean = sum_ref[...] * inv_count
    var = jnp.maximum(ssq_ref[...] * inv_count - mean * mean, 0.0)
    scale = jax.lax.rsqrt(var + _BN_EPS) * g_ref[...]
    shift = b_ref[...] - mean * scale
    out = y_ref[...] * scale + shift + res_ref[...]
    o_ref[...] = jnp.maximum(out, 0.0).astype(o_ref.dtype)


def _bn_relu_rows(y, s, q, gamma, beta, residual=None, out_dtype=jnp.float32):
    M, C = y.shape
    tm = _pick_row_tile(M)
    row_spec = pl.BlockSpec((tm, C), lambda i: (i, 0))
    par_spec = pl.BlockSpec((1, C), lambda i: (0, 0))
    inv_count = 1.0 / float(M)

    if residual is None:
        kern = functools.partial(_bn_relu_kernel, inv_count=inv_count)
        in_specs = [row_spec, par_spec, par_spec, par_spec, par_spec]
        args = (y, s, q, gamma, beta)
    else:
        kern = functools.partial(_bn_add_relu_kernel, inv_count=inv_count)
        in_specs = [row_spec, par_spec, par_spec, par_spec, par_spec, row_spec]
        args = (y, s, q, gamma, beta, residual)

    return pl.pallas_call(
        kern,
        grid=(M // tm,),
        in_specs=in_specs,
        out_specs=pl.BlockSpec((tm, C), lambda i: (i, 0)),
        out_shape=jax.ShapeDtypeStruct((M, C), out_dtype),
        compiler_params=pltpu.CompilerParams(
            dimension_semantics=("parallel",),
            vmem_limit_bytes=_VMEM_LIMIT),
    )(*args)


# --------------------------------------------------------------------------
# parameter packing / padding helpers (layout plumbing only)
# --------------------------------------------------------------------------
def _pad_cols(a, target):
    pad = target - a.shape[-1]
    if pad == 0:
        return a
    cfg = [(0, 0)] * (a.ndim - 1) + [(0, pad)]
    return jnp.pad(a, cfg)


def _w1x1(w_oihw, cin_p, cout_p):
    # PyTorch (Cout, Cin, 1, 1) -> (Cin_p, Cout_p) bf16
    w = jnp.transpose(w_oihw[:, :, 0, 0], (1, 0))
    w = jnp.pad(w, ((0, cin_p - w.shape[0]), (0, cout_p - w.shape[1])))
    return w.astype(jnp.bfloat16)


def _w3x3(w_oihw, cin_p, cout_p):
    # PyTorch (Cout, Cin, 3, 3) -> (9, Cin_p, Cout_p) bf16, tap order (di, dj)
    w = jnp.transpose(w_oihw, (2, 3, 1, 0))  # (3, 3, Cin, Cout)
    w = jnp.pad(w, ((0, 0), (0, 0), (0, cin_p - w.shape[2]), (0, cout_p - w.shape[3])))
    return w.reshape(9, cin_p, cout_p).astype(jnp.bfloat16)


def _vec(p, c_p):
    return _pad_cols(p.reshape(1, -1).astype(jnp.float32), c_p)


# --------------------------------------------------------------------------
# BottleneckBlock: parameters + forward
# --------------------------------------------------------------------------
def init_bottleneck_params(key, indim, outdim, half_res):
    """Deterministic parameter construction mirroring BottleneckBlock.__init__ + init_layer."""
    bneck = outdim // 4
    ks = jax.random.split(key, 5)
    params = {}
    params["C1_w"] = jax.random.normal(ks[0], (bneck, indim, 1, 1), jnp.float32) * math.sqrt(2.0 / bneck)
    params["BN1_g"] = jnp.ones((bneck,), jnp.float32)
    params["BN1_b"] = jnp.zeros((bneck,), jnp.float32)
    params["C2_w"] = jax.random.normal(ks[1], (bneck, bneck, 3, 3), jnp.float32) * math.sqrt(2.0 / (9 * bneck))
    bound = 1.0 / math.sqrt(bneck * 9)
    params["C2_b"] = jax.random.uniform(ks[2], (bneck,), jnp.float32, -bound, bound)
    params["BN2_g"] = jnp.ones((bneck,), jnp.float32)
    params["BN2_b"] = jnp.zeros((bneck,), jnp.float32)
    params["C3_w"] = jax.random.normal(ks[3], (outdim, bneck, 1, 1), jnp.float32) * math.sqrt(2.0 / outdim)
    params["BN3_g"] = jnp.ones((outdim,), jnp.float32)
    params["BN3_b"] = jnp.zeros((outdim,), jnp.float32)
    if indim != outdim:
        params["SC_w"] = jax.random.normal(ks[4], (outdim, indim, 1, 1), jnp.float32) * math.sqrt(2.0 / outdim)
    return params


def bottleneck_block_forward(x_nchw, params, indim, outdim, half_res):
    """Forward matching BottleneckBlock.forward (BN normalizes with batch statistics)."""
    # TODO(synk): running-mean/var buffer updates are not tracked (the reference normalizes with
    # batch stats in training mode; running stats do not affect this forward's output).
    stride = 2 if half_res else 1
    bneck = outdim // 4
    cin_p = _round_up(indim, _LANE)
    cb_p = _round_up(bneck, _LANE)
    co_p = _round_up(outdim, _LANE)

    N, _, H, W = x_nchw.shape
    # TODO(synk): NCHW->NHWC transpose, channel/spatial zero-pads and the stride-2 parity split
    # remain wrapper-side layout ops (not expressible via BlockSpec index maps alone).
    x_nhwc = jnp.transpose(x_nchw, (0, 2, 3, 1)).astype(jnp.float32)

    # ---- C1 (1x1, no bias) -> BN1 -> ReLU ----
    m1 = N * H * W
    x_rows = _pad_cols(x_nhwc, cin_p).reshape(m1, cin_p).astype(jnp.bfloat16)
    y1, s1, q1 = _matmul_stats(x_rows, _w1x1(params["C1_w"], cin_p, cb_p))
    h1 = _bn_relu_rows(y1, s1, q1, _vec(params["BN1_g"], cb_p), _vec(params["BN1_b"], cb_p),
                       out_dtype=jnp.bfloat16)
    h1 = h1.reshape(N, H, W, cb_p)

    # ---- C2 (3x3, stride, pad=1, bias) -> BN2 -> ReLU ----
    y2, s2, q2 = _conv3x3_stats(h1, _w3x3(params["C2_w"], cb_p, cb_p),
                                _vec(params["C2_b"], cb_p), stride)
    _, Ho, Wo, _ = y2.shape
    m2 = N * Ho * Wo
    h2 = _bn_relu_rows(y2.reshape(m2, cb_p), s2, q2,
                       _vec(params["BN2_g"], cb_p), _vec(params["BN2_b"], cb_p),
                       out_dtype=jnp.bfloat16)

    # ---- C3 (1x1, no bias) ----
    y3, s3, q3 = _matmul_stats(h2, _w1x1(params["C3_w"], cb_p, co_p))

    # ---- shortcut ----
    if indim != outdim:
        xs = x_nhwc[:, ::stride, ::stride, :] if half_res else x_nhwc
        xs_rows = _pad_cols(xs, cin_p).reshape(m2, cin_p).astype(jnp.bfloat16)
        short = _matmul_plain(xs_rows, _w1x1(params["SC_w"], cin_p, co_p))
    else:
        # TODO(synk): identity shortcut with half_res is ill-defined in the reference module
        # (shape mismatch at the residual add) -- kept faithful to the PyTorch behavior.
        short = _pad_cols(x_nhwc, co_p).reshape(-1, co_p)

    # ---- BN3 -> residual add -> ReLU ----
    out = _bn_relu_rows(y3, s3, q3, _vec(params["BN3_g"], co_p), _vec(params["BN3_b"], co_p),
                        residual=short, out_dtype=jnp.float32)
    out = out.reshape(N, Ho, Wo, co_p)[..., :outdim]
    return jnp.transpose(out, (0, 3, 1, 2))  # NHWC -> NCHW


if __name__ == "__main__":
    key = jax.random.PRNGKey(0)
    kx, kp = jax.random.split(key)

    N, indim, H, W = 2, 4, 16, 16
    outdim = 8          # bottleneckdim = 2
    half_res = True     # C2 / shortcut use stride 2 -> spatial 16 -> 8

    x = jax.random.normal(kx, (N, indim, H, W), jnp.float32)
    params = init_bottleneck_params(kp, indim, outdim, half_res)

    fwd = jax.jit(functools.partial(bottleneck_block_forward,
                                    indim=indim, outdim=outdim, half_res=half_res))
    out = jax.block_until_ready(fwd(x, params))

    expected_hw = (H + 1) // 2 if half_res else H
    assert out.shape == (N, outdim, expected_hw, expected_hw), out.shape
    assert bool(jnp.all(jnp.isfinite(out)))
    assert bool(jnp.all(out >= 0.0))  # final ReLU

    print("KERNEL_OK")
</pallas_src>

<mosaic_0001>
module attributes {stable_mosaic.version = 11 : i64} {
  func.func @_bn_relu_kernel(%arg0: i32, %arg1: memref<256x128xbf16, #tpu.memory_space<vmem>>, %arg2: memref<1x128xf32, #tpu.memory_space<vmem>>, %arg3: memref<1x128xf32, #tpu.memory_space<vmem>>, %arg4: memref<1x128xf32, #tpu.memory_space<vmem>>, %arg5: memref<1x128xf32, #tpu.memory_space<vmem>>, %arg6: memref<256x128xbf16, #tpu.memory_space<vmem>>) attributes {dimension_semantics = [#tpu.dimension_semantics<parallel>], iteration_bounds = array<i64: 2>, scalar_prefetch = 0 : i64, scratch_operands = 0 : i64, tpu.core_type = #tpu.core_type<tc>, window_params = [{transform_indices = @transform_0, window_bounds = array<i64: 256, 128>}, {pipeline_mode = #tpu.pipeline_mode<synchronous>, transform_indices = @transform_1, window_bounds = array<i64: 1, 128>}, {pipeline_mode = #tpu.pipeline_mode<synchronous>, transform_indices = @transform_2, window_bounds = array<i64: 1, 128>}, {pipeline_mode = #tpu.pipeline_mode<synchronous>, transform_indices = @transform_3, window_bounds = array<i64: 1, 128>}, {pipeline_mode = #tpu.pipeline_mode<synchronous>, transform_indices = @transform_4, window_bounds = array<i64: 1, 128>}, {transform_indices = @transform_5, window_bounds = array<i64: 256, 128>}]} {
    %c0 = arith.constant 0 : index
    %c0_0 = arith.constant 0 : index
    %0 = vector.load %arg2[%c0, %c0_0] : memref<1x128xf32, #tpu.memory_space<vmem>>, vector<1x128xf32>
    %cst = arith.constant 0.001953125 : f32
    %1 = vector.broadcast %cst : f32 to vector<1x128xf32>
    %2 = arith.mulf %0, %1 : vector<1x128xf32>
    %c0_1 = arith.constant 0 : index
    %c0_2 = arith.constant 0 : index
    %3 = vector.load %arg3[%c0_1, %c0_2] : memref<1x128xf32, #tpu.memory_space<vmem>>, vector<1x128xf32>
    %cst_3 = arith.constant 0.001953125 : f32
    %4 = vector.broadcast %cst_3 : f32 to vector<1x128xf32>
    %5 = arith.mulf %3, %4 : vector<1x128xf32>
    %6 = arith.mulf %2, %2 : vector<1x128xf32>
    %7 = arith.subf %5, %6 : vector<1x128xf32>
    %cst_4 = arith.constant 0.000000e+00 : f32
    %8 = vector.broadcast %cst_4 : f32 to vector<1x128xf32>
    %9 = arith.maximumf %7, %8 : vector<1x128xf32>
    %cst_5 = arith.constant 9.99999974E-6 : f32
    %10 = vector.broadcast %cst_5 : f32 to vector<1x128xf32>
    %11 = arith.addf %9, %10 : vector<1x128xf32>
    %12 = math.rsqrt %11 : vector<1x128xf32>
    %c0_6 = arith.constant 0 : index
    %c0_7 = arith.constant 0 : index
    %13 = vector.load %arg4[%c0_6, %c0_7] : memref<1x128xf32, #tpu.memory_space<vmem>>, vector<1x128xf32>
    %14 = arith.mulf %12, %13 : vector<1x128xf32>
    %c0_8 = arith.constant 0 : index
    %c0_9 = arith.constant 0 : index
    %15 = vector.load %arg5[%c0_8, %c0_9] : memref<1x128xf32, #tpu.memory_space<vmem>>, vector<1x128xf32>
    %16 = arith.mulf %2, %14 : vector<1x128xf32>
    %17 = arith.subf %15, %16 : vector<1x128xf32>
    %c0_10 = arith.constant 0 : index
    %c0_11 = arith.constant 0 : index
    %18 = vector.load %arg1[%c0_10, %c0_11] : memref<256x128xbf16, #tpu.memory_space<vmem>>, vector<256x128xbf16>
    %19 = arith.extf %18 : vector<256x128xbf16> to vector<256x128xf32>
    %20 = vector.broadcast %14 : vector<1x128xf32> to vector<256x128xf32>
    %21 = arith.mulf %19, %20 : vector<256x128xf32>
    %22 = vector.broadcast %17 : vector<1x128xf32> to vector<256x128xf32>
    %23 = arith.addf %21, %22 : vector<256x128xf32>
    %cst_12 = arith.constant 0.000000e+00 : f32
    %24 = vector.broadcast %cst_12 : f32 to vector<256x128xf32>
    %25 = arith.maximumf %23, %24 : vector<256x128xf32>
    %26 = arith.truncf %25 : vector<256x128xf32> to vector<256x128xbf16>
    %c0_13 = arith.constant 0 : index
    %c0_14 = arith.constant 0 : index
    %27 = vector.load %arg6[%c0_13, %c0_14] : memref<256x128xbf16, #tpu.memory_space<vmem>>, vector<256x128xbf16>
    tpu.vector_store %arg6[%c0_13, %c0_14], %26 {strides = array<i32>} : memref<256x128xbf16, #tpu.memory_space<vmem>>, vector<256x128xbf16>,
    return
  }
  func.func @transform_0(%arg0: i32) -> (i32, i32) {
    %c0_i32 = arith.constant 0 : i32
    %c0_i32_0 = arith.constant 0 : i32
    return %arg0, %c0_i32 : i32, i32
  }
  func.func @transform_1(%arg0: i32) -> (i32, i32) {
    %c0_i32 = arith.constant 0 : i32
    %c0_i32_0 = arith.constant 0 : i32
    %c0_i32_1 = arith.constant 0 : i32
    return %c0_i32, %c0_i32_0 : i32, i32
  }
  func.func @transform_2(%arg0: i32) -> (i32, i32) {
    %c0_i32 = arith.constant 0 : i32
    %c0_i32_0 = arith.constant 0 : i32
    %c0_i32_1 = arith.constant 0 : i32
    return %c0_i32, %c0_i32_0 : i32, i32
  }
  func.func @transform_3(%arg0: i32) -> (i32, i32) {
    %c0_i32 = arith.constant 0 : i32
    %c0_i32_0 = arith.constant 0 : i32
    %c0_i32_1 = arith.constant 0 : i32
    return %c0_i32, %c0_i32_0 : i32, i32
  }
  func.func @transform_4(%arg0: i32) -> (i32, i32) {
    %c0_i32 = arith.constant 0 : i32
    %c0_i32_0 = arith.constant 0 : i32
    %c0_i32_1 = arith.constant 0 : i32
    return %c0_i32, %c0_i32_0 : i32, i32
  }
  func.func @transform_5(%arg0: i32) -> (i32, i32) {
    %c0_i32 = arith.constant 0 : i32
    %c0_i32_0 = arith.constant 0 : i32
    return %arg0, %c0_i32 : i32, i32
  }
}

module attributes {stable_mosaic.version = 11 : i64} {
  func.func @_mm_stats_kernel(%arg0: i32, %arg1: i32, %arg2: i32, %arg3: memref<256x128xbf16, #tpu.memory_space<vmem>>, %arg4: memref<128x128xbf16, #tpu.memory_space<vmem>>, %arg5: memref<256x128xbf16, #tpu.memory_space<vmem>>, %arg6: memref<1x1x128xf32, #tpu.memory_space<vmem>>, %arg7: memref<1x1x128xf32, #tpu.memory_space<vmem>>, %arg8: memref<256x128xf32, #tpu.memory_space<vmem>>) attributes {dimension_semantics = [#tpu.dimension_semantics<parallel>, #tpu.dimension_semantics<parallel>, #tpu.dimension_semantics<arbitrary>], iteration_bounds = array<i64: 1, 2, 1>, scalar_prefetch = 0 : i64, scratch_operands = 1 : i64, tpu.core_type = #tpu.core_type<tc>, window_params = [{transform_indices = @transform_0, window_bounds = array<i64: 256, 128>}, {transform_indices = @transform_1, window_bounds = array<i64: 128, 128>}, {transform_indices = @transform_2, window_bounds = array<i64: 256, 128>}, {transform_indices = @transform_3, window_bounds = array<i64: 1, 1, 128>}, {transform_indices = @transform_4, window_bounds = array<i64: 1, 1, 128>}]} {
    %c0_i32 = arith.constant 0 : i32
    %0 = arith.cmpi eq, %arg2, %c0_i32 : i32
    %1 = arith.extui %0 : i1 to i32
    %c0_i32_0 = arith.constant 0 : i32
    %2 = arith.cmpi ne, %1, %c0_i32_0 : i32
    scf.if %2 {
      %cst_10 = arith.constant 0.000000e+00 : f32
      %12 = vector.broadcast %cst_10 : f32 to vector<256x128xf32>
      %c0_11 = arith.constant 0 : index
      %c0_12 = arith.constant 0 : index
      %13 = vector.load %arg8[%c0_11, %c0_12] : memref<256x128xf32, #tpu.memory_space<vmem>>, vector<256x128xf32>
      tpu.vector_store %arg8[%c0_11, %c0_12], %12 {strides = array<i32>} : memref<256x128xf32, #tpu.memory_space<vmem>>, vector<256x128xf32>,
    } else {
    }
    %c0 = arith.constant 0 : index
    %c0_1 = arith.constant 0 : index
    %3 = vector.load %arg8[%c0, %c0_1] : memref<256x128xf32, #tpu.memory_space<vmem>>, vector<256x128xf32>
    %c0_2 = arith.constant 0 : index
    %c0_3 = arith.constant 0 : index
    %4 = vector.load %arg3[%c0_2, %c0_3] : memref<256x128xbf16, #tpu.memory_space<vmem>>, vector<256x128xbf16>
    %c0_4 = arith.constant 0 : index
    %c0_5 = arith.constant 0 : index
    %5 = vector.load %arg4[%c0_4, %c0_5] : memref<128x128xbf16, #tpu.memory_space<vmem>>, vector<128x128xbf16>
    %cst = arith.constant dense<0.000000e+00> : vector<256x128xf32>
    %6 = tpu.matmul %4, %5, %cst {dimension_numbers = #tpu.dot_dimension_numbers<[1], [0], [0], [1], [0, 0, 1, 1], [], []>} : vector<256x128xbf16>, vector<128x128xbf16>, vector<256x128xf32> -> vector<256x128xf32>
    %7 = arith.addf %3, %6 : vector<256x128xf32>
    %c0_6 = arith.constant 0 : index
    %c0_7 = arith.constant 0 : index
    %8 = vector.load %arg8[%c0_6, %c0_7] : memref<256x128xf32, #tpu.memory_space<vmem>>, vector<256x128xf32>
    tpu.vector_store %arg8[%c0_6, %c0_7], %7 {strides = array<i32>} : memref<256x128xf32, #tpu.memory_space<vmem>>, vector<256x128xf32>,
    %c0_i32_8 = arith.constant 0 : i32
    %9 = arith.cmpi eq, %arg2, %c0_i32_8 : i32
    %10 = arith.extui %9 : i1 to i32
    %c0_i32_9 = arith.constant 0 : i32
    %11 = arith.cmpi ne, %10, %c0_i32_9 : i32
    scf.if %11 {
      %c0_10 = arith.constant 0 : index
      %c0_11 = arith.constant 0 : index
      %12 = vector.load %arg8[%c0_10, %c0_11] : memref<256x128xf32, #tpu.memory_space<vmem>>, vector<256x128xf32>
      %13 = arith.truncf %12 : vector<256x128xf32> to vector<256x128xbf16>
      %c0_12 = arith.constant 0 : index
      %c0_13 = arith.constant 0 : index
      %14 = vector.load %arg5[%c0_12, %c0_13] : memref<256x128xbf16, #tpu.memory_space<vmem>>, vector<256x128xbf16>
      tpu.vector_store %arg5[%c0_12, %c0_13], %13 {strides = array<i32>} : memref<256x128xbf16, #tpu.memory_space<vmem>>, vector<256x128xbf16>,
      %cst_14 = arith.constant dense<0.000000e+00> : vector<128xf32>
      %15 = vector.multi_reduction <add>, %12, %cst_14 [0] : vector<256x128xf32> to vector<128xf32>
      %16 = vector.shape_cast %15 : vector<128xf32> to vector<1x128xf32>
      %c0_15 = arith.constant 0 : index
      %c0_16 = arith.constant 0 : index
      %c0_17 = arith.constant 0 : index
      %17 = vector.load %arg6[%c0_15, %c0_16, %c0_17] : memref<1x1x128xf32, #tpu.memory_space<vmem>>, vector<1x1x128xf32>
      %18 = vector.shape_cast %17 : vector<1x1x128xf32> to vector<1x128xf32>
      %19 = vector.shape_cast %16 : vector<1x128xf32> to vector<1x1x128xf32>
      tpu.vector_store %arg6[%c0_15, %c0_16, %c0_17], %19 {strides = array<i32>} : memref<1x1x128xf32, #tpu.memory_space<vmem>>, vector<1x1x128xf32>,
      %20 = arith.mulf %12, %12 : vector<256x128xf32>
      %cst_18 = arith.constant dense<0.000000e+00> : vector<128xf32>
      %21 = vector.multi_reduction <add>, %20, %cst_18 [0] : vector<256x128xf32> to vector<128xf32>
      %22 = vector.shape_cast %21 : vector<128xf32> to vector<1x128xf32>
      %c0_19 = arith.constant 0 : index
      %c0_20 = arith.constant 0 : index
      %c0_21 = arith.constant 0 : index
      %23 = vector.load %arg7[%c0_19, %c0_20, %c0_21] : memref<1x1x128xf32, #tpu.memory_space<vmem>>, vector<1x1x128xf32>
      %24 = vector.shape_cast %23 : vector<1x1x128xf32> to vector<1x128xf32>
      %25 = vector.shape_cast %22 : vector<1x128xf32> to vector<1x1x128xf32>
      tpu.vector_store %arg7[%c0_19, %c0_20, %c0_21], %25 {strides = array<i32>} : memref<1x1x128xf32, #tpu.memory_space<vmem>>, vector<1x1x128xf32>,
    } else {
    }
    return
  }
  func.func @transform_0(%arg0: i32, %arg1: i32, %arg2: i32) -> (i32, i32) {
    %c0_i32 = arith.constant 0 : i32
    return %arg1, %arg2 : i32, i32
  }
  func.func @transform_1(%arg0: i32, %arg1: i32, %arg2: i32) -> (i32, i32) {
    %c0_i32 = arith.constant 0 : i32
    return %arg2, %arg0 : i32, i32
  }
  func.func @transform_2(%arg0: i32, %arg1: i32, %arg2: i32) -> (i32, i32) {
    %c0_i32 = arith.constant 0 : i32
    return %arg1, %arg0 : i32, i32
  }
  func.func @transform_3(%arg0: i32, %arg1: i32, %arg2: i32) -> (i32, i32, i32) {
    %c0_i32 = arith.constant 0 : i32
    %c0_i32_0 = arith.constant 0 : i32
    return %arg1, %c0_i32, %arg0 : i32, i32, i32
  }
  func.func @transform_4(%arg0: i32, %arg1: i32, %arg2: i32) -> (i32, i32, i32) {
    %c0_i32 = arith.constant 0 : i32
    %c0_i32_0 = arith.constant 0 : i32
    return %arg1, %c0_i32, %arg0 : i32, i32, i32
  }
}

module attributes {stable_mosaic.version = 11 : i64} {
  func.func @_conv3x3_kernel(%arg0: i32, %arg1: memref<1x90x128xbf16, #tpu.memory_space<vmem>>, %arg2: memref<1x90x128xbf16, #tpu.memory_space<vmem>>, %arg3: memref<1x90x128xbf16, #tpu.memory_space<vmem>>, %arg4: memref<1x90x128xbf16, #tpu.memory_space<vmem>>, %arg5: memref<9x128x128xbf16, #tpu.memory_space<vmem>>, %arg6: memref<1x128xf32, #tpu.memory_space<vmem>>, %arg7: memref<1x72x128xbf16, #tpu.memory_space<vmem>>, %arg8: memref<1x1x128xf32, #tpu.memory_space<vmem>>, %arg9: memref<1x1x128xf32, #tpu.memory_space<vmem>>) attributes {dimension_semantics = [#tpu.dimension_semantics<parallel>], iteration_bounds = array<i64: 2>, scalar_prefetch = 0 : i64, scratch_operands = 0 : i64, tpu.core_type = #tpu.core_type<tc>, window_params = [{transform_indices = @transform_0, window_bounds = array<i64: 1, 90, 128>}, {transform_indices = @transform_1, window_bounds = array<i64: 1, 90, 128>}, {transform_indices = @transform_2, window_bounds = array<i64: 1, 90, 128>}, {transform_indices = @transform_3, window_bounds = array<i64: 1, 90, 128>}, {pipeline_mode = #tpu.pipeline_mode<synchronous>, transform_indices = @transform_4, window_bounds = array<i64: 9, 128, 128>}, {pipeline_mode = #tpu.pipeline_mode<synchronous>, transform_indices = @transform_5, window_bounds = array<i64: 1, 128>}, {transform_indices = @transform_6, window_bounds = array<i64: 1, 72, 128>}, {transform_indices = @transform_7, window_bounds = array<i64: 1, 1, 128>}, {transform_indices = @transform_8, window_bounds = array<i64: 1, 1, 128>}]} {
    %cst = arith.constant 0.000000e+00 : f32
    %0 = vector.broadcast %cst : f32 to vector<72x128xf32>
    %c0 = arith.constant 0 : index
    %c0_0 = arith.constant 0 : index
    %c0_1 = arith.constant 0 : index
    %1 = vector.load %arg1[%c0, %c0_0, %c0_1] : memref<1x90x128xbf16, #tpu.memory_space<vmem>>, vector<1x72x128xbf16>
    %2 = vector.shape_cast %1 : vector<1x72x128xbf16> to vector<72x128xbf16>
    %c0_2 = arith.constant 0 : index
    %c0_3 = arith.constant 0 : index
    %c0_4 = arith.constant 0 : index
    %3 = vector.load %arg5[%c0_2, %c0_3, %c0_4] : memref<9x128x128xbf16, #tpu.memory_space<vmem>>, vector<1x128x128xbf16>
    %4 = vector.shape_cast %3 : vector<1x128x128xbf16> to vector<128x128xbf16>
    %cst_5 = arith.constant dense<0.000000e+00> : vector<72x128xf32>
    %5 = tpu.matmul %2, %4, %cst_5 {dimension_numbers = #tpu.dot_dimension_numbers<[1], [0], [0], [1], [0, 0, 1, 1], [], []>} : vector<72x128xbf16>, vector<128x128xbf16>, vector<72x128xf32> -> vector<72x128xf32>
    %6 = arith.addf %0, %5 : vector<72x128xf32>
    %c0_6 = arith.constant 0 : index
    %c0_7 = arith.constant 0 : index
    %c0_8 = arith.constant 0 : index
    %7 = vector.load %arg2[%c0_6, %c0_7, %c0_8] : memref<1x90x128xbf16, #tpu.memory_space<vmem>>, vector<1x72x128xbf16>
    %8 = vector.shape_cast %7 : vector<1x72x128xbf16> to vector<72x128xbf16>
    %c1 = arith.constant 1 : index
    %c0_9 = arith.constant 0 : index
    %c0_10 = arith.constant 0 : index
    %9 = vector.load %arg5[%c1, %c0_9, %c0_10] : memref<9x128x128xbf16, #tpu.memory_space<vmem>>, vector<1x128x128xbf16>
    %10 = vector.shape_cast %9 : vector<1x128x128xbf16> to vector<128x128xbf16>
    %cst_11 = arith.constant dense<0.000000e+00> : vector<72x128xf32>
    %11 = tpu.matmul %8, %10, %cst_11 {dimension_numbers = #tpu.dot_dimension_numbers<[1], [0], [0], [1], [0, 0, 1, 1], [], []>} : vector<72x128xbf16>, vector<128x128xbf16>, vector<72x128xf32> -> vector<72x128xf32>
    %12 = arith.addf %6, %11 : vector<72x128xf32>
    %c0_12 = arith.constant 0 : index
    %c1_13 = arith.constant 1 : index
    %c0_14 = arith.constant 0 : index
    %13 = vector.load %arg1[%c0_12, %c1_13, %c0_14] : memref<1x90x128xbf16, #tpu.memory_space<vmem>>, vector<1x72x128xbf16>
    %14 = vector.shape_cast %13 : vector<1x72x128xbf16> to vector<72x128xbf16>
    %c2 = arith.constant 2 : index
    %c0_15 = arith.constant 0 : index
    %c0_16 = arith.constant 0 : index
    %15 = vector.load %arg5[%c2, %c0_15, %c0_16] : memref<9x128x128xbf16, #tpu.memory_space<vmem>>, vector<1x128x128xbf16>
    %16 = vector.shape_cast %15 : vector<1x128x128xbf16> to vector<128x128xbf16>
    %cst_17 = arith.constant dense<0.000000e+00> : vector<72x128xf32>
    %17 = tpu.matmul %14, %16, %cst_17 {dimension_numbers = #tpu.dot_dimension_numbers<[1], [0], [0], [1], [0, 0, 1, 1], [], []>} : vector<72x128xbf16>, vector<128x128xbf16>, vector<72x128xf32> -> vector<72x128xf32>
    %18 = arith.addf %12, %17 : vector<72x128xf32>
    %c0_18 = arith.constant 0 : index
    %c0_19 = arith.constant 0 : index
    %c0_20 = arith.constant 0 : index
    %19 = vector.load %arg3[%c0_18, %c0_19, %c0_20] : memref<1x90x128xbf16, #tpu.memory_space<vmem>>, vector<1x72x128xbf16>
    %20 = vector.shape_cast %19 : vector<1x72x128xbf16> to vector<72x128xbf16>
    %c3 = arith.constant 3 : index
    %c0_21 = arith.constant 0 : index
    %c0_22 = arith.constant 0 : index
    %21 = vector.load %arg5[%c3, %c0_21, %c0_22] : memref<9x128x128xbf16, #tpu.memory_space<vmem>>, vector<1x128x128xbf16>
    %22 = vector.shape_cast %21 : vector<1x128x128xbf16> to vector<128x128xbf16>
    %cst_23 = arith.constant dense<0.000000e+00> : vector<72x128xf32>
    %23 = tpu.matmul %20, %22, %cst_23 {dimension_numbers = #tpu.dot_dimension_numbers<[1], [0], [0], [1], [0, 0, 1, 1], [], []>} : vector<72x128xbf16>, vector<128x128xbf16>, vector<72x128xf32> -> vector<72x128xf32>
    %24 = arith.addf %18, %23 : vector<72x128xf32>
    %c0_24 = arith.constant 0 : index
    %c0_25 = arith.constant 0 : index
    %c0_26 = arith.constant 0 : index
    %25 = vector.load %arg4[%c0_24, %c0_25, %c0_26] : memref<1x90x128xbf16, #tpu.memory_space<vmem>>, vector<1x72x128xbf16>
    %26 = vector.shape_cast %25 : vector<1x72x128xbf16> to vector<72x128xbf16>
    %c4 = arith.constant 4 : index
    %c0_27 = arith.constant 0 : index
    %c0_28 = arith.constant 0 : index
    %27 = vector.load %arg5[%c4, %c0_27, %c0_28] : memref<9x128x128xbf16, #tpu.memory_space<vmem>>, vector<1x128x128xbf16>
    %28 = vector.shape_cast %27 : vector<1x128x128xbf16> to vector<128x128xbf16>
    %cst_29 = arith.constant dense<0.000000e+00> : vector<72x128xf32>
    %29 = tpu.matmul %26, %28, %cst_29 {dimension_numbers = #tpu.dot_dimension_numbers<[1], [0], [0], [1], [0, 0, 1, 1], [], []>} : vector<72x128xbf16>, vector<128x128xbf16>, vector<72x128xf32> -> vector<72x128xf32>
    %30 = arith.addf %24, %29 : vector<72x128xf32>
    %c0_30 = arith.constant 0 : index
    %c1_31 = arith.constant 1 : index
    %c0_32 = arith.constant 0 : index
    %31 = vector.load %arg3[%c0_30, %c1_31, %c0_32] : memref<1x90x128xbf16, #tpu.memory_space<vmem>>, vector<1x72x128xbf16>
    %32 = vector.shape_cast %31 : vector<1x72x128xbf16> to vector<72x128xbf16>
    %c5 = arith.constant 5 : index
    %c0_33 = arith.constant 0 : index
    %c0_34 = arith.constant 0 : index
    %33 = vector.load %arg5[%c5, %c0_33, %c0_34] : memref<9x128x128xbf16, #tpu.memory_space<vmem>>, vector<1x128x128xbf16>
    %34 = vector.shape_cast %33 : vector<1x128x128xbf16> to vector<128x128xbf16>
    %cst_35 = arith.constant dense<0.000000e+00> : vector<72x128xf32>
    %35 = tpu.matmul %32, %34, %cst_35 {dimension_numbers = #tpu.dot_dimension_numbers<[1], [0], [0], [1], [0, 0, 1, 1], [], []>} : vector<72x128xbf16>, vector<128x128xbf16>, vector<72x128xf32> -> vector<72x128xf32>
    %36 = arith.addf %30, %35 : vector<72x128xf32>
    %c0_36 = arith.constant 0 : index
    %c9 = arith.constant 9 : index
    %c0_37 = arith.constant 0 : index
    %37 = vector.load %arg1[%c0_36, %c9, %c0_37] : memref<1x90x128xbf16, #tpu.memory_space<vmem>>, vector<1x72x128xbf16>
    %38 = vector.shape_cast %37 : vector<1x72x128xbf16> to vector<72x128xbf16>
    %c6 = arith.constant 6 : index
    %c0_38 = arith.constant 0 : index
    %c0_39 = arith.constant 0 : index
    %39 = vector.load %arg5[%c6, %c0_38, %c0_39] : memref<9x128x128xbf16, #tpu.memory_space<vmem>>, vector<1x128x128xbf16>
    %40 = vector.shape_cast %39 : vector<1x128x128xbf16> to vector<128x128xbf16>
    %cst_40 = arith.constant dense<0.000000e+00> : vector<72x128xf32>
    %41 = tpu.matmul %38, %40, %cst_40 {dimension_numbers = #tpu.dot_dimension_numbers<[1], [0], [0], [1], [0, 0, 1, 1], [], []>} : vector<72x128xbf16>, vector<128x128xbf16>, vector<72x128xf32> -> vector<72x128xf32>
    %42 = arith.addf %36, %41 : vector<72x128xf32>
    %c0_41 = arith.constant 0 : index
    %c9_42 = arith.constant 9 : index
    %c0_43 = arith.constant 0 : index
    %43 = vector.load %arg2[%c0_41, %c9_42, %c0_43] : memref<1x90x128xbf16, #tpu.memory_space<vmem>>, vector<1x72x128xbf16>
    %44 = vector.shape_cast %43 : vector<1x72x128xbf16> to vector<72x128xbf16>
    %c7 = arith.constant 7 : index
    %c0_44 = arith.constant 0 : index
    %c0_45 = arith.constant 0 : index
    %45 = vector.load %arg5[%c7, %c0_44, %c0_45] : memref<9x128x128xbf16, #tpu.memory_space<vmem>>, vector<1x128x128xbf16>
    %46 = vector.shape_cast %45 : vector<1x128x128xbf16> to vector<128x128xbf16>
    %cst_46 = arith.constant dense<0.000000e+00> : vector<72x128xf32>
    %47 = tpu.matmul %44, %46, %cst_46 {dimension_numbers = #tpu.dot_dimension_numbers<[1], [0], [0], [1], [0, 0, 1, 1], [], []>} : vector<72x128xbf16>, vector<128x128xbf16>, vector<72x128xf32> -> vector<72x128xf32>
    %48 = arith.addf %42, %47 : vector<72x128xf32>
    %c0_47 = arith.constant 0 : index
    %c10 = arith.constant 10 : index
    %c0_48 = arith.constant 0 : index
    %49 = vector.load %arg1[%c0_47, %c10, %c0_48] : memref<1x90x128xbf16, #tpu.memory_space<vmem>>, vector<1x72x128xbf16>
    %50 = vector.shape_cast %49 : vector<1x72x128xbf16> to vector<72x128xbf16>
    %c8 = arith.constant 8 : index
    %c0_49 = arith.constant 0 : index
    %c0_50 = arith.constant 0 : index
    %51 = vector.load %arg5[%c8, %c0_49, %c0_50] : memref<9x128x128xbf16, #tpu.memory_space<vmem>>, vector<1x128x128xbf16>
    %52 = vector.shape_cast %51 : vector<1x128x128xbf16> to vector<128x128xbf16>
    %cst_51 = arith.constant dense<0.000000e+00> : vector<72x128xf32>
    %53 = tpu.matmul %50, %52, %cst_51 {dimension_numbers = #tpu.dot_dimension_numbers<[1], [0], [0], [1], [0, 0, 1, 1], [], []>} : vector<72x128xbf16>, vector<128x128xbf16>, vector<72x128xf32> -> vector<72x128xf32>
    %54 = arith.addf %48, %53 : vector<72x128xf32>
    %c0_52 = arith.constant 0 : index
    %c0_53 = arith.constant 0 : index
    %55 = vector.load %arg6[%c0_52, %c0_53] : memref<1x128xf32, #tpu.memory_space<vmem>>, vector<1x128xf32>
    %56 = vector.broadcast %55 : vector<1x128xf32> to vector<72x128xf32>
    %57 = arith.addf %54, %56 : vector<72x128xf32>
    %58 = tpu.iota {dimensions = array<i32: 0>} : vector<72x1xi32>
    %c9_i32 = arith.constant 9 : i32
    %c0_i32 = arith.constant 0 : i32
    %59 = arith.cmpi eq, %c9_i32, %c0_i32 : i32
    %c1_i32 = arith.constant 1 : i32
    %60 = arith.select %59, %c1_i32, %c9_i32 : i32
    %61 = vector.broadcast %60 : i32 to vector<72x1xi32>
    %62 = arith.remsi %58, %61 : vector<72x1xi32>
    %c0_i32_54 = arith.constant 0 : i32
    %63 = vector.broadcast %c0_i32_54 : i32 to vector<72x1xi32>
    %64 = arith.cmpi ne, %62, %63 : vector<72x1xi32>
    %c0_i32_55 = arith.constant 0 : i32
    %65 = vector.broadcast %c0_i32_55 : i32 to vector<72x1xi32>
    %66 = arith.cmpi slt, %62, %65 : vector<72x1xi32>
    %c0_i32_56 = arith.constant 0 : i32
    %67 = arith.cmpi slt, %60, %c0_i32_56 : i32
    %68 = vector.broadcast %67 : i1 to vector<72x1xi1>
    %69 = vector.broadcast %68 : vector<72x1xi1> to vector<72x1xi1>
    %70 = arith.xori %66, %69 : vector<72x1xi1>
    %71 = arith.andi %70, %64 : vector<72x1xi1>
    %72 = vector.broadcast %60 : i32 to vector<72x1xi32>
    %73 = arith.addi %62, %72 : vector<72x1xi32>
    %74 = arith.select %71, %73, %62 : vector<72x1xi1>, vector<72x1xi32>
    %c8_i32 = arith.constant 8 : i32
    %75 = vector.broadcast %c8_i32 : i32 to vector<72x1xi32>
    %76 = arith.cmpi slt, %74, %75 : vector<72x1xi32>
    %cst_57 = arith.constant 0.000000e+00 : f32
    %77 = vector.shape_cast %76 : vector<72x1xi1> to vector<72x1xi1>
    %78 = vector.broadcast %77 : vector<72x1xi1> to vector<72x128xi1>
    %79 = vector.broadcast %cst_57 : f32 to vector<72x128xf32>
    %80 = arith.select %78, %57, %79 : vector<72x128xi1>, vector<72x128xf32>
    %81 = arith.truncf %80 : vector<72x128xf32> to vector<72x128xbf16>
    %c0_58 = arith.constant 0 : index
    %c0_59 = arith.constant 0 : index
    %c0_60 = arith.constant 0 : index
    %82 = vector.load %arg7[%c0_58, %c0_59, %c0_60] : memref<1x72x128xbf16, #tpu.memory_space<vmem>>, vector<1x72x128xbf16>
    %83 = vector.shape_cast %82 : vector<1x72x128xbf16> to vector<72x128xbf16>
    %84 = vector.shape_cast %81 : vector<72x128xbf16> to vector<1x72x128xbf16>
    tpu.vector_store %arg7[%c0_58, %c0_59, %c0_60], %84 {strides = array<i32>} : memref<1x72x128xbf16, #tpu.memory_space<vmem>>, vector<1x72x128xbf16>,
    %cst_61 = arith.constant dense<0.000000e+00> : vector<128xf32>
    %85 = vector.multi_reduction <add>, %80, %cst_61 [0] : vector<72x128xf32> to vector<128xf32>
    %86 = vector.shape_cast %85 : vector<128xf32> to vector<1x128xf32>
    %c0_62 = arith.constant 0 : index
    %c0_63 = arith.constant 0 : index
    %c0_64 = arith.constant 0 : index
    %87 = vector.load %arg8[%c0_62, %c0_63, %c0_64] : memref<1x1x128xf32, #tpu.memory_space<vmem>>, vector<1x1x128xf32>
    %88 = vector.shape_cast %87 : vector<1x1x128xf32> to vector<1x128xf32>
    %89 = vector.shape_cast %86 : vector<1x128xf32> to vector<1x1x128xf32>
    tpu.vector_store %arg8[%c0_62, %c0_63, %c0_64], %89 {strides = array<i32>} : memref<1x1x128xf32, #tpu.memory_space<vmem>>, vector<1x1x128xf32>,
    %90 = arith.mulf %80, %80 : vector<72x128xf32>
    %cst_65 = arith.constant dense<0.000000e+00> : vector<128xf32>
    %91 = vector.multi_reduction <add>, %90, %cst_65 [0] : vector<72x128xf32> to vector<128xf32>
    %92 = vector.shape_cast %91 : vector<128xf32> to vector<1x128xf32>
    %c0_66 = arith.constant 0 : index
    %c0_67 = arith.constant 0 : index
    %c0_68 = arith.constant 0 : index
    %93 = vector.load %arg9[%c0_66, %c0_67, %c0_68] : memref<1x1x128xf32, #tpu.memory_space<vmem>>, vector<1x1x128xf32>
    %94 = vector.shape_cast %93 : vector<1x1x128xf32> to vector<1x128xf32>
    %95 = vector.shape_cast %92 : vector<1x128xf32> to vector<1x1x128xf32>
    tpu.vector_store %arg9[%c0_66, %c0_67, %c0_68], %95 {strides = array<i32>} : memref<1x1x128xf32, #tpu.memory_space<vmem>>, vector<1x1x128xf32>,
    return
  }
  func.func @transform_0(%arg0: i32) -> (i32, i32, i32) {
    %c0_i32 = arith.constant 0 : i32
    %c0_i32_0 = arith.constant 0 : i32
    %c0_i32_1 = arith.constant 0 : i32
    return %arg0, %c0_i32, %c0_i32_0 : i32, i32, i32
  }
  func.func @transform_1(%arg0: i32) -> (i32, i32, i32) {
    %c0_i32 = arith.constant 0 : i32
    %c0_i32_0 = arith.constant 0 : i32
    %c0_i32_1 = arith.constant 0 : i32
    return %arg0, %c0_i32, %c0_i32_0 : i32, i32, i32
  }
  func.func @transform_2(%arg0: i32) -> (i32, i32, i32) {
    %c0_i32 = arith.constant 0 : i32
    %c0_i32_0 = arith.constant 0 : i32
    %c0_i32_1 = arith.constant 0 : i32
    return %arg0, %c0_i32, %c0_i32_0 : i32, i32, i32
  }
  func.func @transform_3(%arg0: i32) -> (i32, i32, i32) {
    %c0_i32 = arith.constant 0 : i32
    %c0_i32_0 = arith.constant 0 : i32
    %c0_i32_1 = arith.constant 0 : i32
    return %arg0, %c0_i32, %c0_i32_0 : i32, i32, i32
  }
  func.func @transform_4(%arg0: i32) -> (i32, i32, i32) {
    %c0_i32 = arith.constant 0 : i32
    %c0_i32_0 = arith.constant 0 : i32
    %c0_i32_1 = arith.constant 0 : i32
    %c0_i32_2 = arith.constant 0 : i32
    return %c0_i32, %c0_i32_0, %c0_i32_1 : i32, i32, i32
  }
  func.func @transform_5(%arg0: i32) -> (i32, i32) {
    %c0_i32 = arith.constant 0 : i32
    %c0_i32_0 = arith.constant 0 : i32
    %c0_i32_1 = arith.constant 0 : i32
    return %c0_i32, %c0_i32_0 : i32, i32
  }
  func.func @transform_6(%arg0: i32) -> (i32, i32, i32) {
    %c0_i32 = arith.constant 0 : i32
    %c0_i32_0 = arith.constant 0 : i32
    %c0_i32_1 = arith.constant 0 : i32
    return %arg0, %c0_i32, %c0_i32_0 : i32, i32, i32
  }
  func.func @transform_7(%arg0: i32) -> (i32, i32, i32) {
    %c0_i32 = arith.constant 0 : i32
    %c0_i32_0 = arith.constant 0 : i32
    %c0_i32_1 = arith.constant 0 : i32
    return %arg0, %c0_i32, %c0_i32_0 : i32, i32, i32
  }
  func.func @transform_8(%arg0: i32) -> (i32, i32, i32) {
    %c0_i32 = arith.constant 0 : i32
    %c0_i32_0 = arith.constant 0 : i32
    %c0_i32_1 = arith.constant 0 : i32
    return %arg0, %c0_i32, %c0_i32_0 : i32, i32, i32
  }
}

module attributes {stable_mosaic.version = 11 : i64} {
  func.func @_bn_relu_kernel(%arg0: i32, %arg1: memref<128x128xbf16, #tpu.memory_space<vmem>>, %arg2: memref<1x128xf32, #tpu.memory_space<vmem>>, %arg3: memref<1x128xf32, #tpu.memory_space<vmem>>, %arg4: memref<1x128xf32, #tpu.memory_space<vmem>>, %arg5: memref<1x128xf32, #tpu.memory_space<vmem>>, %arg6: memref<128x128xbf16, #tpu.memory_space<vmem>>) attributes {dimension_semantics = [#tpu.dimension_semantics<parallel>], iteration_bounds = array<i64: 1>, scalar_prefetch = 0 : i64, scratch_operands = 0 : i64, tpu.core_type = #tpu.core_type<tc>, window_params = [{transform_indices = @transform_0, window_bounds = array<i64: 128, 128>}, {pipeline_mode = #tpu.pipeline_mode<synchronous>, transform_indices = @transform_1, window_bounds = array<i64: 1, 128>}, {pipeline_mode = #tpu.pipeline_mode<synchronous>, transform_indices = @transform_2, window_bounds = array<i64: 1, 128>}, {pipeline_mode = #tpu.pipeline_mode<synchronous>, transform_indices = @transform_3, window_bounds = array<i64: 1, 128>}, {pipeline_mode = #tpu.pipeline_mode<synchronous>, transform_indices = @transform_4, window_bounds = array<i64: 1, 128>}, {transform_indices = @transform_5, window_bounds = array<i64: 128, 128>}]} {
    %c0 = arith.constant 0 : index
    %c0_0 = arith.constant 0 : index
    %0 = vector.load %arg2[%c0, %c0_0] : memref<1x128xf32, #tpu.memory_space<vmem>>, vector<1x128xf32>
    %cst = arith.constant 7.812500e-03 : f32
    %1 = vector.broadcast %cst : f32 to vector<1x128xf32>
    %2 = arith.mulf %0, %1 : vector<1x128xf32>
    %c0_1 = arith.constant 0 : index
    %c0_2 = arith.constant 0 : index
    %3 = vector.load %arg3[%c0_1, %c0_2] : memref<1x128xf32, #tpu.memory_space<vmem>>, vector<1x128xf32>
    %cst_3 = arith.constant 7.812500e-03 : f32
    %4 = vector.broadcast %cst_3 : f32 to vector<1x128xf32>
    %5 = arith.mulf %3, %4 : vector<1x128xf32>
    %6 = arith.mulf %2, %2 : vector<1x128xf32>
    %7 = arith.subf %5, %6 : vector<1x128xf32>
    %cst_4 = arith.constant 0.000000e+00 : f32
    %8 = vector.broadcast %cst_4 : f32 to vector<1x128xf32>
    %9 = arith.maximumf %7, %8 : vector<1x128xf32>
    %cst_5 = arith.constant 9.99999974E-6 : f32
    %10 = vector.broadcast %cst_5 : f32 to vector<1x128xf32>
    %11 = arith.addf %9, %10 : vector<1x128xf32>
    %12 = math.rsqrt %11 : vector<1x128xf32>
    %c0_6 = arith.constant 0 : index
    %c0_7 = arith.constant 0 : index
    %13 = vector.load %arg4[%c0_6, %c0_7] : memref<1x128xf32, #tpu.memory_space<vmem>>, vector<1x128xf32>
    %14 = arith.mulf %12, %13 : vector<1x128xf32>
    %c0_8 = arith.constant 0 : index
    %c0_9 = arith.constant 0 : index
    %15 = vector.load %arg5[%c0_8, %c0_9] : memref<1x128xf32, #tpu.memory_space<vmem>>, vector<1x128xf32>
    %16 = arith.mulf %2, %14 : vector<1x128xf32>
    %17 = arith.subf %15, %16 : vector<1x128xf32>
    %c0_10 = arith.constant 0 : index
    %c0_11 = arith.constant 0 : index
    %18 = vector.load %arg1[%c0_10, %c0_11] : memref<128x128xbf16, #tpu.memory_space<vmem>>, vector<128x128xbf16>
    %19 = arith.extf %18 : vector<128x128xbf16> to vector<128x128xf32>
    %20 = vector.broadcast %14 : vector<1x128xf32> to vector<128x128xf32>
    %21 = arith.mulf %19, %20 : vector<128x128xf32>
    %22 = vector.broadcast %17 : vector<1x128xf32> to vector<128x128xf32>
    %23 = arith.addf %21, %22 : vector<128x128xf32>
    %cst_12 = arith.constant 0.000000e+00 : f32
    %24 = vector.broadcast %cst_12 : f32 to vector<128x128xf32>
    %25 = arith.maximumf %23, %24 : vector<128x128xf32>
    %26 = arith.truncf %25 : vector<128x128xf32> to vector<128x128xbf16>
    %c0_13 = arith.constant 0 : index
    %c0_14 = arith.constant 0 : index
    %27 = vector.load %arg6[%c0_13, %c0_14] : memref<128x128xbf16, #tpu.memory_space<vmem>>, vector<128x128xbf16>
    tpu.vector_store %arg6[%c0_13, %c0_14], %26 {strides = array<i32>} : memref<128x128xbf16, #tpu.memory_space<vmem>>, vector<128x128xbf16>,
    return
  }
  func.func @transform_0(%arg0: i32) -> (i32, i32) {
    %c0_i32 = arith.constant 0 : i32
    %c0_i32_0 = arith.constant 0 : i32
    return %arg0, %c0_i32 : i32, i32
  }
  func.func @transform_1(%arg0: i32) -> (i32, i32) {
    %c0_i32 = arith.constant 0 : i32
    %c0_i32_0 = arith.constant 0 : i32
    %c0_i32_1 = arith.constant 0 : i32
    return %c0_i32, %c0_i32_0 : i32, i32
  }
  func.func @transform_2(%arg0: i32) -> (i32, i32) {
    %c0_i32 = arith.constant 0 : i32
    %c0_i32_0 = arith.constant 0 : i32
    %c0_i32_1 = arith.constant 0 : i32
    return %c0_i32, %c0_i32_0 : i32, i32
  }
  func.func @transform_3(%arg0: i32) -> (i32, i32) {
    %c0_i32 = arith.constant 0 : i32
    %c0_i32_0 = arith.constant 0 : i32
    %c0_i32_1 = arith.constant 0 : i32
    return %c0_i32, %c0_i32_0 : i32, i32
  }
  func.func @transform_4(%arg0: i32) -> (i32, i32) {
    %c0_i32 = arith.constant 0 : i32
    %c0_i32_0 = arith.constant 0 : i32
    %c0_i32_1 = arith.constant 0 : i32
    return %c0_i32, %c0_i32_0 : i32, i32
  }
  func.func @transform_5(%arg0: i32) -> (i32, i32) {
    %c0_i32 = arith.constant 0 : i32
    %c0_i32_0 = arith.constant 0 : i32
    return %arg0, %c0_i32 : i32, i32
  }
}

module attributes {stable_mosaic.version = 11 : i64} {
  func.func @_mm_stats_kernel(%arg0: i32, %arg1: i32, %arg2: i32, %arg3: memref<128x128xbf16, #tpu.memory_space<vmem>>, %arg4: memref<128x128xbf16, #tpu.memory_space<vmem>>, %arg5: memref<128x128xbf16, #tpu.memory_space<vmem>>, %arg6: memref<1x1x128xf32, #tpu.memory_space<vmem>>, %arg7: memref<1x1x128xf32, #tpu.memory_space<vmem>>, %arg8: memref<128x128xf32, #tpu.memory_space<vmem>>) attributes {dimension_semantics = [#tpu.dimension_semantics<parallel>, #tpu.dimension_semantics<parallel>, #tpu.dimension_semantics<arbitrary>], iteration_bounds = array<i64: 1, 1, 1>, scalar_prefetch = 0 : i64, scratch_operands = 1 : i64, tpu.core_type = #tpu.core_type<tc>, window_params = [{transform_indices = @transform_0, window_bounds = array<i64: 128, 128>}, {transform_indices = @transform_1, window_bounds = array<i64: 128, 128>}, {transform_indices = @transform_2, window_bounds = array<i64: 128, 128>}, {transform_indices = @transform_3, window_bounds = array<i64: 1, 1, 128>}, {transform_indices = @transform_4, window_bounds = array<i64: 1, 1, 128>}]} {
    %c0_i32 = arith.constant 0 : i32
    %0 = arith.cmpi eq, %arg2, %c0_i32 : i32
    %1 = arith.extui %0 : i1 to i32
    %c0_i32_0 = arith.constant 0 : i32
    %2 = arith.cmpi ne, %1, %c0_i32_0 : i32
    scf.if %2 {
      %cst_10 = arith.constant 0.000000e+00 : f32
      %12 = vector.broadcast %cst_10 : f32 to vector<128x128xf32>
      %c0_11 = arith.constant 0 : index
      %c0_12 = arith.constant 0 : index
      %13 = vector.load %arg8[%c0_11, %c0_12] : memref<128x128xf32, #tpu.memory_space<vmem>>, vector<128x128xf32>
      tpu.vector_store %arg8[%c0_11, %c0_12], %12 {strides = array<i32>} : memref<128x128xf32, #tpu.memory_space<vmem>>, vector<128x128xf32>,
    } else {
    }
    %c0 = arith.constant 0 : index
    %c0_1 = arith.constant 0 : index
    %3 = vector.load %arg8[%c0, %c0_1] : memref<128x128xf32, #tpu.memory_space<vmem>>, vector<128x128xf32>
    %c0_2 = arith.constant 0 : index
    %c0_3 = arith.constant 0 : index
    %4 = vector.load %arg3[%c0_2, %c0_3] : memref<128x128xbf16, #tpu.memory_space<vmem>>, vector<128x128xbf16>
    %c0_4 = arith.constant 0 : index
    %c0_5 = arith.constant 0 : index
    %5 = vector.load %arg4[%c0_4, %c0_5] : memref<128x128xbf16, #tpu.memory_space<vmem>>, vector<128x128xbf16>
    %cst = arith.constant dense<0.000000e+00> : vector<128x128xf32>
    %6 = tpu.matmul %4, %5, %cst {dimension_numbers = #tpu.dot_dimension_numbers<[1], [0], [0], [1], [0, 0, 1, 1], [], []>} : vector<128x128xbf16>, vector<128x128xbf16>, vector<128x128xf32> -> vector<128x128xf32>
    %7 = arith.addf %3, %6 : vector<128x128xf32>
    %c0_6 = arith.constant 0 : index
    %c0_7 = arith.constant 0 : index
    %8 = vector.load %arg8[%c0_6, %c0_7] : memref<128x128xf32, #tpu.memory_space<vmem>>, vector<128x128xf32>
    tpu.vector_store %arg8[%c0_6, %c0_7], %7 {strides = array<i32>} : memref<128x128xf32, #tpu.memory_space<vmem>>, vector<128x128xf32>,
    %c0_i32_8 = arith.constant 0 : i32
    %9 = arith.cmpi eq, %arg2, %c0_i32_8 : i32
    %10 = arith.extui %9 : i1 to i32
    %c0_i32_9 = arith.constant 0 : i32
    %11 = arith.cmpi ne, %10, %c0_i32_9 : i32
    scf.if %11 {
      %c0_10 = arith.constant 0 : index
      %c0_11 = arith.constant 0 : index
      %12 = vector.load %arg8[%c0_10, %c0_11] : memref<128x128xf32, #tpu.memory_space<vmem>>, vector<128x128xf32>
      %13 = arith.truncf %12 : vector<128x128xf32> to vector<128x128xbf16>
      %c0_12 = arith.constant 0 : index
      %c0_13 = arith.constant 0 : index
      %14 = vector.load %arg5[%c0_12, %c0_13] : memref<128x128xbf16, #tpu.memory_space<vmem>>, vector<128x128xbf16>
      tpu.vector_store %arg5[%c0_12, %c0_13], %13 {strides = array<i32>} : memref<128x128xbf16, #tpu.memory_space<vmem>>, vector<128x128xbf16>,
      %cst_14 = arith.constant dense<0.000000e+00> : vector<128xf32>
      %15 = vector.multi_reduction <add>, %12, %cst_14 [0] : vector<128x128xf32> to vector<128xf32>
      %16 = vector.shape_cast %15 : vector<128xf32> to vector<1x128xf32>
      %c0_15 = arith.constant 0 : index
      %c0_16 = arith.constant 0 : index
      %c0_17 = arith.constant 0 : index
      %17 = vector.load %arg6[%c0_15, %c0_16, %c0_17] : memref<1x1x128xf32, #tpu.memory_space<vmem>>, vector<1x1x128xf32>
      %18 = vector.shape_cast %17 : vector<1x1x128xf32> to vector<1x128xf32>
      %19 = vector.shape_cast %16 : vector<1x128xf32> to vector<1x1x128xf32>
      tpu.vector_store %arg6[%c0_15, %c0_16, %c0_17], %19 {strides = array<i32>} : memref<1x1x128xf32, #tpu.memory_space<vmem>>, vector<1x1x128xf32>,
      %20 = arith.mulf %12, %12 : vector<128x128xf32>
      %cst_18 = arith.constant dense<0.000000e+00> : vector<128xf32>
      %21 = vector.multi_reduction <add>, %20, %cst_18 [0] : vector<128x128xf32> to vector<128xf32>
      %22 = vector.shape_cast %21 : vector<128xf32> to vector<1x128xf32>
      %c0_19 = arith.constant 0 : index
      %c0_20 = arith.constant 0 : index
      %c0_21 = arith.constant 0 : index
      %23 = vector.load %arg7[%c0_19, %c0_20, %c0_21] : memref<1x1x128xf32, #tpu.memory_space<vmem>>, vector<1x1x128xf32>
      %24 = vector.shape_cast %23 : vector<1x1x128xf32> to vector<1x128xf32>
      %25 = vector.shape_cast %22 : vector<1x128xf32> to vector<1x1x128xf32>
      tpu.vector_store %arg7[%c0_19, %c0_20, %c0_21], %25 {strides = array<i32>} : memref<1x1x128xf32, #tpu.memory_space<vmem>>, vector<1x1x128xf32>,
    } else {
    }
    return
  }
  func.func @transform_0(%arg0: i32, %arg1: i32, %arg2: i32) -> (i32, i32) {
    %c0_i32 = arith.constant 0 : i32
    return %arg1, %arg2 : i32, i32
  }
  func.func @transform_1(%arg0: i32, %arg1: i32, %arg2: i32) -> (i32, i32) {
    %c0_i32 = arith.constant 0 : i32
    return %arg2, %arg0 : i32, i32
  }
  func.func @transform_2(%arg0: i32, %arg1: i32, %arg2: i32) -> (i32, i32) {
    %c0_i32 = arith.constant 0 : i32
    return %arg1, %arg0 : i32, i32
  }
  func.func @transform_3(%arg0: i32, %arg1: i32, %arg2: i32) -> (i32, i32, i32) {
    %c0_i32 = arith.constant 0 : i32
    %c0_i32_0 = arith.constant 0 : i32
    return %arg1, %c0_i32, %arg0 : i32, i32, i32
  }
  func.func @transform_4(%arg0: i32, %arg1: i32, %arg2: i32) -> (i32, i32, i32) {
    %c0_i32 = arith.constant 0 : i32
    %c0_i32_0 = arith.constant 0 : i32
    return %arg1, %c0_i32, %arg0 : i32, i32, i32
  }
}

module attributes {stable_mosaic.version = 11 : i64} {
  func.func @_mm_kernel(%arg0: i32, %arg1: i32, %arg2: i32, %arg3: memref<128x128xbf16, #tpu.memory_space<vmem>>, %arg4: memref<128x128xbf16, #tpu.memory_space<vmem>>, %arg5: memref<128x128xbf16, #tpu.memory_space<vmem>>, %arg6: memref<128x128xf32, #tpu.memory_space<vmem>>) attributes {dimension_semantics = [#tpu.dimension_semantics<parallel>, #tpu.dimension_semantics<parallel>, #tpu.dimension_semantics<arbitrary>], iteration_bounds = array<i64: 1, 1, 1>, scalar_prefetch = 0 : i64, scratch_operands = 1 : i64, tpu.core_type = #tpu.core_type<tc>, window_params = [{transform_indices = @transform_0, window_bounds = array<i64: 128, 128>}, {transform_indices = @transform_1, window_bounds = array<i64: 128, 128>}, {transform_indices = @transform_2, window_bounds = array<i64: 128, 128>}]} {
    %c0_i32 = arith.constant 0 : i32
    %0 = arith.cmpi eq, %arg2, %c0_i32 : i32
    %1 = arith.extui %0 : i1 to i32
    %c0_i32_0 = arith.constant 0 : i32
    %2 = arith.cmpi ne, %1, %c0_i32_0 : i32
    scf.if %2 {
      %cst_10 = arith.constant 0.000000e+00 : f32
      %12 = vector.broadcast %cst_10 : f32 to vector<128x128xf32>
      %c0_11 = arith.constant 0 : index
      %c0_12 = arith.constant 0 : index
      %13 = vector.load %arg6[%c0_11, %c0_12] : memref<128x128xf32, #tpu.memory_space<vmem>>, vector<128x128xf32>
      tpu.vector_store %arg6[%c0_11, %c0_12], %12 {strides = array<i32>} : memref<128x128xf32, #tpu.memory_space<vmem>>, vector<128x128xf32>,
    } else {
    }
    %c0 = arith.constant 0 : index
    %c0_1 = arith.constant 0 : index
    %3 = vector.load %arg6[%c0, %c0_1] : memref<128x128xf32, #tpu.memory_space<vmem>>, vector<128x128xf32>
    %c0_2 = arith.constant 0 : index
    %c0_3 = arith.constant 0 : index
    %4 = vector.load %arg3[%c0_2, %c0_3] : memref<128x128xbf16, #tpu.memory_space<vmem>>, vector<128x128xbf16>
    %c0_4 = arith.constant 0 : index
    %c0_5 = arith.constant 0 : index
    %5 = vector.load %arg4[%c0_4, %c0_5] : memref<128x128xbf16, #tpu.memory_space<vmem>>, vector<128x128xbf16>
    %cst = arith.constant dense<0.000000e+00> : vector<128x128xf32>
    %6 = tpu.matmul %4, %5, %cst {dimension_numbers = #tpu.dot_dimension_numbers<[1], [0], [0], [1], [0, 0, 1, 1], [], []>} : vector<128x128xbf16>, vector<128x128xbf16>, vector<128x128xf32> -> vector<128x128xf32>
    %7 = arith.addf %3, %6 : vector<128x128xf32>
    %c0_6 = arith.constant 0 : index
    %c0_7 = arith.constant 0 : index
    %8 = vector.load %arg6[%c0_6, %c0_7] : memref<128x128xf32, #tpu.memory_space<vmem>>, vector<128x128xf32>
    tpu.vector_store %arg6[%c0_6, %c0_7], %7 {strides = array<i32>} : memref<128x128xf32, #tpu.memory_space<vmem>>, vector<128x128xf32>,
    %c0_i32_8 = arith.constant 0 : i32
    %9 = arith.cmpi eq, %arg2, %c0_i32_8 : i32
    %10 = arith.extui %9 : i1 to i32
    %c0_i32_9 = arith.constant 0 : i32
    %11 = arith.cmpi ne, %10, %c0_i32_9 : i32
    scf.if %11 {
      %c0_10 = arith.constant 0 : index
      %c0_11 = arith.constant 0 : index
      %12 = vector.load %arg6[%c0_10, %c0_11] : memref<128x128xf32, #tpu.memory_space<vmem>>, vector<128x128xf32>
      %13 = arith.truncf %12 : vector<128x128xf32> to vector<128x128xbf16>
      %c0_12 = arith.constant 0 : index
      %c0_13 = arith.constant 0 : index
      %14 = vector.load %arg5[%c0_12, %c0_13] : memref<128x128xbf16, #tpu.memory_space<vmem>>, vector<128x128xbf16>
      tpu.vector_store %arg5[%c0_12, %c0_13], %13 {strides = array<i32>} : memref<128x128xbf16, #tpu.memory_space<vmem>>, vector<128x128xbf16>,
    } else {
    }
    return
  }
  func.func @transform_0(%arg0: i32, %arg1: i32, %arg2: i32) -> (i32, i32) {
    %c0_i32 = arith.constant 0 : i32
    return %arg1, %arg2 : i32, i32
  }
  func.func @transform_1(%arg0: i32, %arg1: i32, %arg2: i32) -> (i32, i32) {
    %c0_i32 = arith.constant 0 : i32
    return %arg2, %arg0 : i32, i32
  }
  func.func @transform_2(%arg0: i32, %arg1: i32, %arg2: i32) -> (i32, i32) {
    %c0_i32 = arith.constant 0 : i32
    return %arg1, %arg0 : i32, i32
  }
}

module attributes {stable_mosaic.version = 11 : i64} {
  func.func @_bn_add_relu_kernel(%arg0: i32, %arg1: memref<128x128xbf16, #tpu.memory_space<vmem>>, %arg2: memref<1x128xf32, #tpu.memory_space<vmem>>, %arg3: memref<1x128xf32, #tpu.memory_space<vmem>>, %arg4: memref<1x128xf32, #tpu.memory_space<vmem>>, %arg5: memref<1x128xf32, #tpu.memory_space<vmem>>, %arg6: memref<128x128xbf16, #tpu.memory_space<vmem>>, %arg7: memref<128x128xf32, #tpu.memory_space<vmem>>) attributes {dimension_semantics = [#tpu.dimension_semantics<parallel>], iteration_bounds = array<i64: 1>, scalar_prefetch = 0 : i64, scratch_operands = 0 : i64, tpu.core_type = #tpu.core_type<tc>, window_params = [{transform_indices = @transform_0, window_bounds = array<i64: 128, 128>}, {pipeline_mode = #tpu.pipeline_mode<synchronous>, transform_indices = @transform_1, window_bounds = array<i64: 1, 128>}, {pipeline_mode = #tpu.pipeline_mode<synchronous>, transform_indices = @transform_2, window_bounds = array<i64: 1, 128>}, {pipeline_mode = #tpu.pipeline_mode<synchronous>, transform_indices = @transform_3, window_bounds = array<i64: 1, 128>}, {pipeline_mode = #tpu.pipeline_mode<synchronous>, transform_indices = @transform_4, window_bounds = array<i64: 1, 128>}, {transform_indices = @transform_5, window_bounds = array<i64: 128, 128>}, {transform_indices = @transform_6, window_bounds = array<i64: 128, 128>}]} {
    %c0 = arith.constant 0 : index
    %c0_0 = arith.constant 0 : index
    %0 = vector.load %arg2[%c0, %c0_0] : memref<1x128xf32, #tpu.memory_space<vmem>>, vector<1x128xf32>
    %cst = arith.constant 7.812500e-03 : f32
    %1 = vector.broadcast %cst : f32 to vector<1x128xf32>
    %2 = arith.mulf %0, %1 : vector<1x128xf32>
    %c0_1 = arith.constant 0 : index
    %c0_2 = arith.constant 0 : index
    %3 = vector.load %arg3[%c0_1, %c0_2] : memref<1x128xf32, #tpu.memory_space<vmem>>, vector<1x128xf32>
    %cst_3 = arith.constant 7.812500e-03 : f32
    %4 = vector.broadcast %cst_3 : f32 to vector<1x128xf32>
    %5 = arith.mulf %3, %4 : vector<1x128xf32>
    %6 = arith.mulf %2, %2 : vector<1x128xf32>
    %7 = arith.subf %5, %6 : vector<1x128xf32>
    %cst_4 = arith.constant 0.000000e+00 : f32
    %8 = vector.broadcast %cst_4 : f32 to vector<1x128xf32>
    %9 = arith.maximumf %7, %8 : vector<1x128xf32>
    %cst_5 = arith.constant 9.99999974E-6 : f32
    %10 = vector.broadcast %cst_5 : f32 to vector<1x128xf32>
    %11 = arith.addf %9, %10 : vector<1x128xf32>
    %12 = math.rsqrt %11 : vector<1x128xf32>
    %c0_6 = arith.constant 0 : index
    %c0_7 = arith.constant 0 : index
    %13 = vector.load %arg4[%c0_6, %c0_7] : memref<1x128xf32, #tpu.memory_space<vmem>>, vector<1x128xf32>
    %14 = arith.mulf %12, %13 : vector<1x128xf32>
    %c0_8 = arith.constant 0 : index
    %c0_9 = arith.constant 0 : index
    %15 = vector.load %arg5[%c0_8, %c0_9] : memref<1x128xf32, #tpu.memory_space<vmem>>, vector<1x128xf32>
    %16 = arith.mulf %2, %14 : vector<1x128xf32>
    %17 = arith.subf %15, %16 : vector<1x128xf32>
    %c0_10 = arith.constant 0 : index
    %c0_11 = arith.constant 0 : index
    %18 = vector.load %arg1[%c0_10, %c0_11] : memref<128x128xbf16, #tpu.memory_space<vmem>>, vector<128x128xbf16>
    %19 = arith.extf %18 : vector<128x128xbf16> to vector<128x128xf32>
    %20 = vector.broadcast %14 : vector<1x128xf32> to vector<128x128xf32>
    %21 = arith.mulf %19, %20 : vector<128x128xf32>
    %22 = vector.broadcast %17 : vector<1x128xf32> to vector<128x128xf32>
    %23 = arith.addf %21, %22 : vector<128x128xf32>
    %c0_12 = arith.constant 0 : index
    %c0_13 = arith.constant 0 : index
    %24 = vector.load %arg6[%c0_12, %c0_13] : memref<128x128xbf16, #tpu.memory_space<vmem>>, vector<128x128xbf16>
    %25 = arith.extf %24 : vector<128x128xbf16> to vector<128x128xf32>
    %26 = arith.addf %23, %25 : vector<128x128xf32>
    %cst_14 = arith.constant 0.000000e+00 : f32
    %27 = vector.broadcast %cst_14 : f32 to vector<128x128xf32>
    %28 = arith.maximumf %26, %27 : vector<128x128xf32>
    %c0_15 = arith.constant 0 : index
    %c0_16 = arith.constant 0 : index
    %29 = vector.load %arg7[%c0_15, %c0_16] : memref<128x128xf32, #tpu.memory_space<vmem>>, vector<128x128xf32>
    tpu.vector_store %arg7[%c0_15, %c0_16], %28 {strides = array<i32>} : memref<128x128xf32, #tpu.memory_space<vmem>>, vector<128x128xf32>,
    return
  }
  func.func @transform_0(%arg0: i32) -> (i32, i32) {
    %c0_i32 = arith.constant 0 : i32
    %c0_i32_0 = arith.constant 0 : i32
    return %arg0, %c0_i32 : i32, i32
  }
  func.func @transform_1(%arg0: i32) -> (i32, i32) {
    %c0_i32 = arith.constant 0 : i32
    %c0_i32_0 = arith.constant 0 : i32
    %c0_i32_1 = arith.constant 0 : i32
    return %c0_i32, %c0_i32_0 : i32, i32
  }
  func.func @transform_2(%arg0: i32) -> (i32, i32) {
    %c0_i32 = arith.constant 0 : i32
    %c0_i32_0 = arith.constant 0 : i32
    %c0_i32_1 = arith.constant 0 : i32
    return %c0_i32, %c0_i32_0 : i32, i32
  }
  func.func @transform_3(%arg0: i32) -> (i32, i32) {
    %c0_i32 = arith.constant 0 : i32
    %c0_i32_0 = arith.constant 0 : i32
    %c0_i32_1 = arith.constant 0 : i32
    return %c0_i32, %c0_i32_0 : i32, i32
  }
  func.func @transform_4(%arg0: i32) -> (i32, i32) {
    %c0_i32 = arith.constant 0 : i32
    %c0_i32_0 = arith.constant 0 : i32
    %c0_i32_1 = arith.constant 0 : i32
    return %c0_i32, %c0_i32_0 : i32, i32
  }
  func.func @transform_5(%arg0: i32) -> (i32, i32) {
    %c0_i32 = arith.constant 0 : i32
    %c0_i32_0 = arith.constant 0 : i32
    return %arg0, %c0_i32 : i32, i32
  }
  func.func @transform_6(%arg0: i32) -> (i32, i32) {
    %c0_i32 = arith.constant 0 : i32
    %c0_i32_0 = arith.constant 0 : i32
    return %arg0, %c0_i32 : i32, i32
  }
}

</mosaic_0001>

<bundles_post_ra>
// kernel: bottleneck_block_forward.8
= control target key start
LH: loop header
LB: loop body
LE: loop exit
PB: predicated region body
PF: predicated region fallthrough
CT: control target
= control target key end

     0   :  { %s927_s18 = smov 0   ;;  %s1150_s0 = inlined_call_operand.vmem [shape: bf16[512,128], index: 0, kind: input, shape index: {}]   ;;  %s1151_s1 = inlined_call_operand.vmem [shape: f32[1,128], index: 1, kind: input, shape index: {}]   ;;  %s1152_s2 = inlined_call_operand.vmem [shape: f32[1,128], index: 2, kind: input, shape index: {}]   ;;  %s1153_s3 = inlined_call_operand.vmem [shape: f32[1,128], index: 3, kind: input, shape index: {}]   ;;  %s1154_s4 = inlined_call_operand.vmem [shape: f32[1,128], index: 4, kind: input, shape index: {}]   ;;  %s1155_s5 = inlined_call_operand.vmem [shape: bf16[512,128], index: 5, kind: output, shape index: {}]  }
   0x1 LB: > { %s630_s19 = sadd.s32 4294967295, %s895_s18   ;;  %p634_p0 = scmp.ge.s32.totalorder %s895_s18, 1  ;;  %s895_s18 = sphi %s927_s18, %s15_s18  }
   0x2   : > { %p188_p1 = scmp.lt.s32.totalorder %s895_s18, 3 }
   0x4   : > { %p189_p2 = pnand %p634_p0, %p188_p1 }
   0x5   : > { %s635_s20 = sshll.u32 (!%p189_p2), %s630_s19, 5 }
   0x6   : > { %192 = sbr.rel (%p189_p2) target bundleno = 74 (0x4a), region = 40  ;;  %p217_p3 = scmp.lt.s32.totalorder (!%p189_p2), %s635_s20, 63 }
   0xb   : > { %v228_v0 = vld [vmem:[%s1151_s1] sm:$0x1]  ;;  %s1157_s20 = smov (!%p217_p3, %s635_s20), 63  ;;  %v307_v8 = vlaneseq }
   0xc   : > { %v230_v1 = vld [vmem:[%s1152_s2] sm:$0x1]  ;;  %v229_v2 = vmul.f32 0.001953125, %v228_v0  ;;  %s636_s25 = sshll.u32 %s1157_s20, 2 }
   0xd   : > { %v231_v3 = vmul.f32 0.001953125, %v230_v1  ;;  %s949_s28 = scalar_lea.vmem %s1150_s0, %s636_s25  ;;  %v951_v9 = vshrl.u32 %v307_v8, 7  ;;  %v237_v28 = vld [vmem:[%s1153_s3] sm:$0x1]  ;;  %s1051_s10 = scalar_lea.vmem %s1155_s5, %s636_s25 }
   0xe   : > { %v232_v4 = vmul.f32 %v229_v2, %v229_v2  ;;  %v706_v10 = vld [vmem:[%s949_s28] sm:$0xff]   ;;  %v849_v11 = vld [vmem:[%s949_s28 + $0x8] sm:$0xff]   ;;  %v850_v12 = vld [vmem:[%s949_s28 + $0x10] sm:$0xff]  }
   0xf   : > { %v851_v13 = vld [vmem:[%s949_s28 + $0x18] sm:$0xff]   ;;  %v958_v14 = vld [vmem:[%s949_s28 + $0x20] sm:$0xff]   ;;  %v961_v15 = vld [vmem:[%s949_s28 + $0x28] sm:$0xff]   ;;  %v707_v16 = vunpack.c.l.bf16 %v706_v10  ;;  %v708_v17 = vunpack.c.h.bf16 %v706_v10  ;;  %v309_v18 = vsub.s32 0, %v951_v9  ;;  %v711_v19 = vunpack.c.l.bf16 %v849_v11 }
  0x10   : > { %v233_v5 = vsub.f32 %v231_v3, %v232_v4  ;;  %v854_v20 = vld [vmem:[%s949_s28 + $0x30] sm:$0xff]   ;;  %v966_v21 = vld [vmem:[%s949_s28 + $0x38] sm:$0xff]   ;;  %v712_v22 = vunpack.c.h.bf16 %v849_v11  ;;  %v715_v23 = vunpack.c.l.bf16 %v850_v12  ;;  %v716_v24 = vunpack.c.h.bf16 %v850_v12  ;;  %v969_v26 = vld [vmem:[%s949_s28 + $0x40] sm:$0xff]  }
  0x11   : > { %v719_v25 = vunpack.c.l.bf16 %v851_v13  ;;  %v972_v27 = vld [vmem:[%s949_s28 + $0x48] sm:$0xff]   ;;  %v720_v29 = vunpack.c.h.bf16 %v851_v13  ;;  %v723_v30 = vunpack.c.l.bf16 %v958_v14  ;;  %v724_v31 = vunpack.c.h.bf16 %v958_v14  ;;  %v981_v33 = vld [vmem:[%s949_s28 + $0x50] sm:$0xff]   ;;  %v986_v38 = vld [vmem:[%s949_s28 + $0x58] sm:$0xff]  }
  0x12   : > { %v234_v6 = vmax.f32 %v233_v5, 0.0  ;;  %v727_v32 = vunpack.c.l.bf16 %v961_v15  ;;  %v728_v34 = vunpack.c.h.bf16 %v961_v15  ;;  %v731_v35 = vunpack.c.l.bf16 %v854_v20  ;;  %v989_v39 = vld [vmem:[%s949_s28 + $0x60] sm:$0xff]   ;;  %v996_v45 = vld [vmem:[%s949_s28 + $0x68] sm:$0xff]   ;;  %v1002_v50 = vld [vmem:[%s949_s28 + $0x70] sm:$0xff]  }
  0x13   : > { %v732_v36 = vunpack.c.h.bf16 %v854_v20  ;;  %v735_v37 = vunpack.c.l.bf16 %v966_v21  ;;  %v736_v41 = vunpack.c.h.bf16 %v966_v21  ;;  %v739_v42 = vunpack.c.l.bf16 %v969_v26  ;;  %v1005_v51 = vld [vmem:[%s949_s28 + $0x78] sm:$0xff]   ;;  %v239_v52 = vld [vmem:[%s1154_s4] sm:$0x1] }
  0x14   : > { %v235_v7 = vadd.f32 1e-05, %v234_v6  ;;  %v740_v43 = vunpack.c.h.bf16 %v969_v26  ;;  %v743_v44 = vunpack.c.l.bf16 %v972_v27  ;;  %v744_v47 = vunpack.c.h.bf16 %v972_v27 }
  0x15   : > { %v747_v48 = vunpack.c.l.bf16 %v981_v33  ;;  %v748_v49 = vunpack.c.h.bf16 %v981_v33  ;;  %v751_v53 = vunpack.c.l.bf16 %v986_v38  ;;  %v752_v54 = vunpack.c.h.bf16 %v986_v38 }
  0x16   : > { %887 = vrsqrt.f32 %v235_v7  ;;  %v755_v55 = vunpack.c.l.bf16 %v989_v39  ;;  %v756_v56 = vunpack.c.h.bf16 %v989_v39  ;;  %v759_v59 = vunpack.c.l.bf16 %v996_v45 }
  0x17   : > { %v760_v60 = vunpack.c.h.bf16 %v996_v45  ;;  %v763_v61 = vunpack.c.l.bf16 %v1002_v50  ;;  %v764_v62 = vunpack.c.h.bf16 %v1002_v50  ;;  %v767_v63 = vunpack.c.l.bf16 %v1005_v51 }
  0x18   : > { %v768_v0 = vunpack.c.h.bf16 %v1005_v51 }
  0x23   : > { %v888_v40 = vpop.eup %887 }
  0x24   : > { %v238_v46 = vmul.f32 %v888_v40, %v237_v28 }
  0x26   : > { %v240_v57 = vmul.f32 %v238_v46, %v229_v2  ;;  %v1014_v58 = vrot.slane %v238_v46, %v309_v18 }
  0x28   : > { %v241_v1 = vsub.f32 %v239_v52, %v240_v57  ;;  %v312_v3 = vmul.f32 %v707_v16, %v1014_v58  ;;  %v313_v4 = vmul.f32 %v708_v17, %v1014_v58  ;;  %v314_v2 = vmul.f32 %v711_v19, %v1014_v58 }
  0x29   : > { %v315_v5 = vmul.f32 %v712_v22, %v1014_v58  ;;  %v316_v6 = vmul.f32 %v715_v23, %v1014_v58  ;;  %v317_v7 = vmul.f32 %v716_v24, %v1014_v58  ;;  %v318_v8 = vmul.f32 %v719_v25, %v1014_v58 }
  0x2a   : > { %v1029_v9 = vrot.slane %v241_v1, %v309_v18  ;;  %v319_v10 = vmul.f32 %v720_v29, %v1014_v58  ;;  %v320_v11 = vmul.f32 %v723_v30, %v1014_v58  ;;  %v321_v12 = vmul.f32 %v724_v31, %v1014_v58 }
  0x2b   : > { %v322_v13 = vmul.f32 %v727_v32, %v1014_v58  ;;  %v323_v14 = vmul.f32 %v728_v34, %v1014_v58  ;;  %v324_v15 = vmul.f32 %v731_v35, %v1014_v58  ;;  %v325_v16 = vmul.f32 %v732_v36, %v1014_v58 }
  0x2c   : > { %v350_v17 = vadd.f32 %v1029_v9, %v312_v3  ;;  %v351_v18 = vadd.f32 %v1029_v9, %v313_v4  ;;  %v352_v19 = vadd.f32 %v1029_v9, %v314_v2  ;;  %v353_v20 = vadd.f32 %v1029_v9, %v315_v5 }
  0x2d   : > { %v354_v22 = vadd.f32 %v1029_v9, %v316_v6  ;;  %v355_v23 = vadd.f32 %v1029_v9, %v317_v7  ;;  %v356_v24 = vadd.f32 %v1029_v9, %v318_v8  ;;  %v357_v25 = vadd.f32 %v1029_v9, %v319_v10 }
  0x2e   : > { %v382_v28 = vmax.f32 %v350_v17, 0.0  ;;  %v383_v29 = vmax.f32 %v351_v18, 0.0  ;;  %v384_v30 = vmax.f32 %v352_v19, 0.0  ;;  %v385_v31 = vmax.f32 %v353_v20, 0.0 }
  0x2f   : > { %v386_v32 = vmax.f32 %v354_v22, 0.0  ;;  %v387_v34 = vmax.f32 %v355_v23, 0.0  ;;  %v388_v35 = vmax.f32 %v356_v24, 0.0  ;;  %v389_v36 = vmax.f32 %v357_v25, 0.0 }
  0x30   : > { %v772_v40 = vpack.c.bf16 %v383_v29, %v382_v28  ;;  %v777_v46 = vpack.c.bf16 %v385_v31, %v384_v30  ;;  %v358_v52 = vadd.f32 %v1029_v9, %v320_v11  ;;  %v359_v57 = vadd.f32 %v1029_v9, %v321_v12 }
  0x31   : > { %v782_v1 = vpack.c.bf16 %v387_v34, %v386_v32  ;;  %v787_v3 = vpack.c.bf16 %v389_v36, %v388_v35  ;;  %v360_v4 = vadd.f32 %v1029_v9, %v322_v13  ;;  %v361_v2 = vadd.f32 %v1029_v9, %v323_v14 }
  0x32   : > { %773 = vst [vmem:[%s1051_s10] sm:$0xff] %v772_v40   ;;  %864 = vst [vmem:[%s1051_s10 + $0x8] sm:$0xff] %v777_v46   ;;  %v390_v5 = vmax.f32 %v358_v52, 0.0  ;;  %v391_v6 = vmax.f32 %v359_v57, 0.0  ;;  %v362_v7 = vadd.f32 %v1029_v9, %v324_v15  ;;  %v363_v8 = vadd.f32 %v1029_v9, %v325_v16 }
  0x33   : > { %865 = vst [vmem:[%s1051_s10 + $0x10] sm:$0xff] %v782_v1   ;;  %866 = vst [vmem:[%s1051_s10 + $0x18] sm:$0xff] %v787_v3   ;;  %v392_v10 = vmax.f32 %v360_v4, 0.0  ;;  %v393_v11 = vmax.f32 %v361_v2, 0.0  ;;  %v326_v12 = vmul.f32 %v735_v37, %v1014_v58  ;;  %v327_v13 = vmul.f32 %v736_v41, %v1014_v58 }
  0x34   : > { %v792_v14 = vpack.c.bf16 %v391_v6, %v390_v5  ;;  %v394_v17 = vmax.f32 %v362_v7, 0.0  ;;  %v395_v18 = vmax.f32 %v363_v8, 0.0  ;;  %v328_v15 = vmul.f32 %v739_v42, %v1014_v58 }
  0x35   : > { %v797_v16 = vpack.c.bf16 %v393_v11, %v392_v10  ;;  %v364_v19 = vadd.f32 %v1029_v9, %v326_v12  ;;  %v365_v20 = vadd.f32 %v1029_v9, %v327_v13  ;;  %v329_v37 = vmul.f32 %v740_v43, %v1014_v58 }
  0x36   : > { %867 = vst [vmem:[%s1051_s10 + $0x20] sm:$0xff] %v792_v14   ;;  %v802_v21 = vpack.c.bf16 %v395_v18, %v394_v17  ;;  %v366_v41 = vadd.f32 %v1029_v9, %v328_v15  ;;  %v330_v22 = vmul.f32 %v743_v44, %v1014_v58  ;;  %v331_v42 = vmul.f32 %v744_v47, %v1014_v58 }
  0x37   : > { %868 = vst [vmem:[%s1051_s10 + $0x28] sm:$0xff] %v797_v16   ;;  %v396_v23 = vmax.f32 %v364_v19, 0.0  ;;  %v397_v24 = vmax.f32 %v365_v20, 0.0  ;;  %v367_v25 = vadd.f32 %v1029_v9, %v329_v37  ;;  %v332_v26 = vmul.f32 %v747_v48, %v1014_v58 }
  0x38   : > { %869 = vst [vmem:[%s1051_s10 + $0x30] sm:$0xff] %v802_v21   ;;  %v398_v43 = vmax.f32 %v366_v41, 0.0  ;;  %v368_v28 = vadd.f32 %v1029_v9, %v330_v22  ;;  %v369_v44 = vadd.f32 %v1029_v9, %v331_v42  ;;  %v333_v27 = vmul.f32 %v748_v49, %v1014_v58 }
  0x39   : > { %v807_v47 = vpack.c.bf16 %v397_v24, %v396_v23  ;;  %v399_v29 = vmax.f32 %v367_v25, 0.0  ;;  %v370_v30 = vadd.f32 %v1029_v9, %v332_v26  ;;  %v334_v31 = vmul.f32 %v751_v53, %v1014_v58 }
  0x3a   : > { %v400_v48 = vmax.f32 %v368_v28, 0.0  ;;  %v401_v32 = vmax.f32 %v369_v44, 0.0  ;;  %v371_v34 = vadd.f32 %v1029_v9, %v333_v27  ;;  %v335_v35 = vmul.f32 %v752_v54, %v1014_v58 }
  0x3b   : > { %870 = vst [vmem:[%s1051_s10 + $0x38] sm:$0xff] %v807_v47   ;;  %v812_v33 = vpack.c.bf16 %v399_v29, %v398_v43  ;;  %v402_v49 = vmax.f32 %v370_v30, 0.0  ;;  %v372_v36 = vadd.f32 %v1029_v9, %v334_v31  ;;  %v336_v40 = vmul.f32 %v755_v55, %v1014_v58 }
  0x3c   : > { %v817_v46 = vpack.c.bf16 %v401_v32, %v400_v48  ;;  %v403_v53 = vmax.f32 %v371_v34, 0.0  ;;  %v373_v52 = vadd.f32 %v1029_v9, %v335_v35  ;;  %v337_v38 = vmul.f32 %v756_v56, %v1014_v58 }
  0x3d   : > { %871 = vst [vmem:[%s1051_s10 + $0x40] sm:$0xff] %v812_v33   ;;  %v404_v54 = vmax.f32 %v372_v36, 0.0  ;;  %v374_v57 = vadd.f32 %v1029_v9, %v336_v40  ;;  %v338_v1 = vmul.f32 %v759_v59, %v1014_v58  ;;  %v339_v55 = vmul.f32 %v760_v60, %v1014_v58 }
  0x3e   : > { %872 = vst [vmem:[%s1051_s10 + $0x48] sm:$0xff] %v817_v46   ;;  %v822_v3 = vpack.c.bf16 %v403_v53, %v402_v49  ;;  %v405_v4 = vmax.f32 %v373_v52, 0.0  ;;  %v375_v39 = vadd.f32 %v1029_v9, %v337_v38  ;;  %v340_v56 = vmul.f32 %v763_v61, %v1014_v58 }
  0x3f   : > { %v406_v2 = vmax.f32 %v374_v57, 0.0  ;;  %v376_v5 = vadd.f32 %v1029_v9, %v338_v1  ;;  %v377_v6 = vadd.f32 %v1029_v9, %v339_v55  ;;  %v341_v45 = vmul.f32 %v764_v62, %v1014_v58 }
  0x40   : > { %873 = vst [vmem:[%s1051_s10 + $0x50] sm:$0xff] %v822_v3   ;;  %v827_v59 = vpack.c.bf16 %v405_v4, %v404_v54  ;;  %v407_v60 = vmax.f32 %v375_v39, 0.0  ;;  %v378_v7 = vadd.f32 %v1029_v9, %v340_v56  ;;  %v342_v61 = vmul.f32 %v767_v63, %v1014_v58 }
  0x41   : > { %v408_v8 = vmax.f32 %v376_v5, 0.0  ;;  %v409_v10 = vmax.f32 %v377_v6, 0.0  ;;  %v379_v11 = vadd.f32 %v1029_v9, %v341_v45  ;;  %v343_v50 = vmul.f32 %v768_v0, %v1014_v58 }
  0x42   : > { %874 = vst [vmem:[%s1051_s10 + $0x58] sm:$0xff] %v827_v59   ;;  %v832_v62 = vpack.c.bf16 %v407_v60, %v406_v2  ;;  %v410_v12 = vmax.f32 %v378_v7, 0.0  ;;  %v380_v13 = vadd.f32 %v1029_v9, %v342_v61 }
  0x43   : > { %v837_v14 = vpack.c.bf16 %v409_v10, %v408_v8  ;;  %v411_v17 = vmax.f32 %v379_v11, 0.0  ;;  %v381_v18 = vadd.f32 %v1029_v9, %v343_v50 }
  0x44   : > { %875 = vst [vmem:[%s1051_s10 + $0x60] sm:$0xff] %v832_v62   ;;  %v412_v63 = vmax.f32 %v380_v13, 0.0 }
  0x45   : > { %876 = vst [vmem:[%s1051_s10 + $0x68] sm:$0xff] %v837_v14   ;;  %v842_v15 = vpack.c.bf16 %v411_v17, %v410_v12  ;;  %v413_v16 = vmax.f32 %v381_v18, 0.0 }
  0x47   : > { %877 = vst [vmem:[%s1051_s10 + $0x70] sm:$0xff] %v842_v15   ;;  %v847_v19 = vpack.c.bf16 %v413_v16, %v412_v63 }
  0x49   : > { %878 = vst [vmem:[%s1051_s10 + $0x78] sm:$0xff] %v847_v19  }
  0x4a PF: > { %s15_s18 = sadd.s32 1, %s895_s18  }
  0x4b   : > { %p12_p4 = scmp.ge.s32.totalorder %s15_s18, 4  }
  0x4d   :  { %14 = sbr.rel (!%p12_p4) target bundleno = 1 (0x1), region = 70 }

// kernel: bottleneck_block_forward.7
= control target key start
LH: loop header
LB: loop body
LE: loop exit
PB: predicated region body
PF: predicated region fallthrough
CT: control target
= control target key end

     0   :  { %s1643_s15 = smov 0   ;;  %s1645_s16 = smov 0   ;;  %s1844_s0 = inlined_call_operand.vmem [shape: bf16[512,128], index: 0, kind: input, shape index: {}]   ;;  %s1845_s1 = inlined_call_operand.vmem [shape: bf16[128,128], index: 1, kind: input, shape index: {}]   ;;  %s1846_s2 = inlined_call_operand.vmem [shape: bf16[512,128], index: 2, kind: output, shape index: {0}]   ;;  %s1847_s3 = inlined_call_operand.vmem [shape: f32[2,1,128], index: 3, kind: output, shape index: {1}]   ;;  %s1848_s4 = inlined_call_operand.vmem [shape: f32[2,1,128], index: 4, kind: output, shape index: {2}]  }
   0x1   :  { %s1647_s17 = smov 0  }
   0x2 LB: > { %s30_s18 = sadd.s32 1, %s1612_s16  ;;  %p1268_p0 = scmp.ge.s32.totalorder %s1616_s17, 1  ;;  %s1616_s17 = sphi %s1647_s17, %s15_s17   ;;  %s1612_s16 = sphi %s1645_s16, %s1850_s16   ;;  %s1608_s15 = sphi %s1643_s15, %s1849_s15  }
   0x3   : > { %p32_p1 = scmp.ge.s32.totalorder %s30_s18, 2  ;;  %p214_p2 = scmp.lt.s32.totalorder %s1616_s17, 3 }
   0x5   : > { %s1852_s18 = smov (%p32_p1, %s30_s18), 0  ;;  %p215_p3 = pnand %p1268_p0, %p214_p2 }
   0x6   : > { %s1269_s21 = sshll.u32 (!%p215_p3), %s1608_s15, 5  ;;  %p293_p5 = scmp.lt.s32.totalorder (!%p215_p3), %s1608_s15, 1 }
   0x7   : > { %218 = sbr.rel (%p215_p3) target bundleno = 321 (0x141), region = 28  ;;  %p267_p4 = scmp.lt.s32.totalorder (!%p215_p3), %s1269_s21, 63 }
   0xc   : > { %v1570_v0 = vld [vmem:[%s1845_s1 + $0x38] sm:$0xff]   ;;  %v1571_v1 = vld [vmem:[%s1845_s1 + $0x30] sm:$0xff]   ;;  %s1854_s21 = smov (!%p267_p4, %s1269_s21), 63  ;;  %v1572_v2 = vld [vmem:[%s1845_s1 + $0x28] sm:$0xff]   ;;  %s1856_s15 = smov (!%p293_p5, %s1608_s15), 1 }
   0xd   : > { %1482 = vmatprep.subr.bf16.mxu0 %v1570_v0  ;;  %1530 = vmatprep.subr.bf16.mxu1 %v1570_v0  ;;  %s1270_s26 = sshll.u32 %s1854_s21, 2  ;;  %v1573_v3 = vld [vmem:[%s1845_s1 + $0x20] sm:$0xff]   ;;  %v1574_v5 = vld [vmem:[%s1845_s1 + $0x18] sm:$0xff]   ;;  %v1575_v6 = vld [vmem:[%s1845_s1 + $0x10] sm:$0xff]   ;;  %s298_s23 = scalar_lea.vmem %s1847_s3, %s1856_s15 }
   0xe   : > { %1483 = vmatpush3.bf16.msra.mxu0 %v1570_v0  ;;  %1538 = vmatpush3.bf16.msra.mxu1 %v1570_v0  ;;  %s1681_s29 = scalar_lea.vmem %s1844_s0, %s1270_s26  ;;  %v1576_v8 = vld [vmem:[%s1845_s1 + $0x8] sm:$0xff]   ;;  %v1577_v9 = vld [vmem:[%s1845_s1] sm:$0xff]   ;;  %s1723_s20 = scalar_lea.vmem %s1846_s2, %s1270_s26 }
   0xf   : > { %1484 = vmatprep.subr.bf16.mxu0 %v1571_v1  ;;  %1531 = vmatprep.subr.bf16.mxu1 %v1571_v1  ;;  %v1578_v4 = vld [vmem:[%s1681_s29] sm:$0xff]   ;;  %v1579_v10 = vld [vmem:[%s1681_s29 + $0x8] sm:$0xff]   ;;  %v1580_v12 = vld [vmem:[%s1681_s29 + $0x10] sm:$0xff]   ;;  %s304_s26 = scalar_lea.vmem %s1848_s4, %s1856_s15 }
  0x10   : > { %1498 = vmatprep.mubr.bf16.mxu0 %v1578_v4  ;;  %v1586_v7 = vld [vmem:[%s1681_s29 + $0x40] sm:$0xff]   ;;  %v1587_v11 = vld [vmem:[%s1681_s29 + $0x48] sm:$0xff]   ;;  %v1588_v13 = vld [vmem:[%s1681_s29 + $0x50] sm:$0xff]  }
  0x11   : > { %1514 = vmatprep.mubr.bf16.mxu1 %v1586_v7  ;;  %v1581_v14 = vld [vmem:[%s1681_s29 + $0x18] sm:$0xff]   ;;  %v1582_v16 = vld [vmem:[%s1681_s29 + $0x20] sm:$0xff]   ;;  %v1583_v18 = vld [vmem:[%s1681_s29 + $0x28] sm:$0xff]  }
  0x12   : > { %1485 = vmatpush3.bf16.msra.mxu0 %v1571_v1  ;;  %1539 = vmatpush3.bf16.msra.mxu1 %v1571_v1  ;;  %v1589_v15 = vld [vmem:[%s1681_s29 + $0x58] sm:$0xff]   ;;  %v1590_v17 = vld [vmem:[%s1681_s29 + $0x60] sm:$0xff]   ;;  %v1591_v19 = vld [vmem:[%s1681_s29 + $0x68] sm:$0xff]  }
  0x13   : > { %1486 = vmatprep.subr.bf16.mxu0 %v1572_v2  ;;  %1532 = vmatprep.subr.bf16.mxu1 %v1572_v2  ;;  %v1584_v20 = vld [vmem:[%s1681_s29 + $0x30] sm:$0xff]   ;;  %v1585_v22 = vld [vmem:[%s1681_s29 + $0x38] sm:$0xff]  }
  0x14   : > { %v1592_v21 = vld [vmem:[%s1681_s29 + $0x70] sm:$0xff]   ;;  %v1593_v23 = vld [vmem:[%s1681_s29 + $0x78] sm:$0xff]  }
  0x16   : > { %1487 = vmatpush3.bf16.msra.mxu0 %v1572_v2  ;;  %1540 = vmatpush3.bf16.msra.mxu1 %v1572_v2 }
  0x17   : > { %1488 = vmatprep.subr.bf16.mxu0 %v1573_v3  ;;  %1533 = vmatprep.subr.bf16.mxu1 %v1573_v3 }
  0x1a   : > { %1489 = vmatpush3.bf16.msra.mxu0 %v1573_v3  ;;  %1541 = vmatpush3.bf16.msra.mxu1 %v1573_v3 }
  0x1b   : > { %1490 = vmatprep.subr.bf16.mxu0 %v1574_v5  ;;  %1534 = vmatprep.subr.bf16.mxu1 %v1574_v5 }
  0x1e   : > { %1491 = vmatpush3.bf16.msra.mxu0 %v1574_v5  ;;  %1542 = vmatpush3.bf16.msra.mxu1 %v1574_v5 }
  0x1f   : > { %1492 = vmatprep.subr.bf16.mxu0 %v1575_v6  ;;  %1535 = vmatprep.subr.bf16.mxu1 %v1575_v6 }
  0x22   : > { %1493 = vmatpush3.bf16.msra.mxu0 %v1575_v6  ;;  %1543 = vmatpush3.bf16.msra.mxu1 %v1575_v6 }
  0x23   : > { %1494 = vmatprep.subr.bf16.mxu0 %v1576_v8  ;;  %1536 = vmatprep.subr.bf16.mxu1 %v1576_v8 }
  0x26   : > { %1495 = vmatpush3.bf16.msra.mxu0 %v1576_v8  ;;  %1544 = vmatpush3.bf16.msra.mxu1 %v1576_v8 }
  0x27   : > { %1496 = vmatprep.subr.bf16.mxu0 %v1577_v9  ;;  %1537 = vmatprep.subr.bf16.mxu1 %v1577_v9 }
  0x2a   : > { %1497 = vmatpush3.bf16.msra.mxu0 %v1577_v9  ;;  %1545 = vmatpush3.bf16.msra.mxu1 %v1577_v9 }
  0x2d   : > { %1499 = vmatmul.mubr.bf16.vlgmr.msra.gmra.mxu0 %v1579_v10  ;;  %1515 = vmatmul.mubr.bf16.vlgmr.msra.gmra.mxu1 %v1587_v11 }
  0x2e   : > { %1502 = vmatprep.mubr.bf16.mxu0 %v1580_v12  ;;  %1518 = vmatprep.mubr.bf16.mxu1 %v1588_v13 }
  0x35   : > { %1503 = vmatmul.mubr.bf16.gmra.mxu0 %v1581_v14  ;;  %1519 = vmatmul.mubr.bf16.gmra.mxu1 %v1589_v15 }
  0x36   : > { %1506 = vmatprep.mubr.bf16.mxu0 %v1582_v16  ;;  %1522 = vmatprep.mubr.bf16.mxu1 %v1590_v17 }
  0x3d   : > { %1507 = vmatmul.mubr.bf16.gmra.mxu0 %v1583_v18  ;;  %1523 = vmatmul.mubr.bf16.gmra.mxu1 %v1591_v19 }
  0x3e   : > { %1510 = vmatprep.mubr.bf16.mxu0 %v1584_v20  ;;  %1526 = vmatprep.mubr.bf16.mxu1 %v1592_v21 }
  0x45   : > { %1511 = vmatmul.mubr.bf16.gmra.mxu0 %v1585_v22  ;;  %1527 = vmatmul.mubr.bf16.gmra.mxu1 %v1593_v23 }
  0xed   : > { %v1500_v24 = vpop.f32.mrf.mxu0  ;;  %v1714_v25 = vpop.f32.mrf.mxu1 }
  0xee   : > { %v1026_v41 = vmul.f32 %v1500_v24, %v1500_v24 }
  0xef   : > { %v600_v26 = vpop.f32.mrf.mxu0  ;;  %v1716_v27 = vpop.f32.mrf.mxu1 }
  0xf0   : > { %v1024_v32 = vmul.f32 %v600_v26, %v600_v26 }
  0xf1   : > { %v1501_v28 = vpop.f32.mrf.mxu0  ;;  %v1725_v29 = vpop.f32.mrf.mxu1 }
  0xf2   : > { %v1371_v30 = vpack.c.bf16 %v1501_v28, %v1500_v24  ;;  %v1411_v31 = vpack.c.bf16 %v1725_v29, %v1714_v25  ;;  %v1027_v46 = vmul.f32 %v1501_v28, %v1501_v28 }
  0xf3   : > { %v603_v33 = vpop.f32.mrf.mxu0  ;;  %v1729_v34 = vpop.f32.mrf.mxu1 }
  0xf4   : > { %1443 = vst [vmem:[%s1723_s20 + $0x8] sm:$0xff] %v1371_v30   ;;  %v1366_v35 = vpack.c.bf16 %v603_v33, %v600_v26  ;;  %v986_v36 = vadd.f32 %v603_v33, %v600_v26  ;;  %v1025_v37 = vmul.f32 %v603_v33, %v603_v33  ;;  %1451 = vst [vmem:[%s1723_s20 + $0x48] sm:$0xff] %v1411_v31  }
  0xf5   : > { %v1406_v38 = vpack.c.bf16 %v1729_v34, %v1716_v27  ;;  %v1504_v39 = vpop.f32.mrf.mxu0  ;;  %v1735_v40 = vpop.f32.mrf.mxu1 }
  0xf6   : > { %1367 = vst [vmem:[%s1723_s20] sm:$0xff] %v1366_v35   ;;  %v987_v42 = vadd.f32 %v1500_v24, %v986_v36  ;;  %v1056_v43 = vadd.f32 %v1025_v37, %v1024_v32  ;;  %v1030_v1 = vmul.f32 %v1504_v39, %v1504_v39 }
  0xf7   : > { %1450 = vst [vmem:[%s1723_s20 + $0x40] sm:$0xff] %v1406_v38   ;;  %v616_v44 = vpop.f32.mrf.mxu0  ;;  %v1739_v45 = vpop.f32.mrf.mxu1 }
  0xf8   : > { %v1057_v47 = vadd.f32 %v1056_v43, %v1026_v41  ;;  %v988_v48 = vadd.f32 %v1501_v28, %v987_v42  ;;  %v1028_v52 = vmul.f32 %v616_v44, %v616_v44 }
  0xf9   : > { %v1505_v49 = vpop.f32.mrf.mxu0  ;;  %v1741_v50 = vpop.f32.mrf.mxu1 }
  0xfa   : > { %v989_v51 = vadd.f32 %v988_v48, %v616_v44  ;;  %v1058_v53 = vadd.f32 %v1057_v47, %v1027_v46  ;;  %v1381_v54 = vpack.c.bf16 %v1505_v49, %v1504_v39  ;;  %v1421_v56 = vpack.c.bf16 %v1741_v50, %v1735_v40 }
  0xfb   : > { %v619_v55 = vpop.f32.mrf.mxu0  ;;  %v1745_v57 = vpop.f32.mrf.mxu1  ;;  %v1031_v6 = vmul.f32 %v1505_v49, %v1505_v49 }
  0xfc   : > { %v1059_v58 = vadd.f32 %v1058_v53, %v1028_v52  ;;  %1445 = vst [vmem:[%s1723_s20 + $0x18] sm:$0xff] %v1381_v54   ;;  %v1376_v59 = vpack.c.bf16 %v619_v55, %v616_v44  ;;  %v990_v60 = vadd.f32 %v989_v51, %v619_v55  ;;  %v1029_v61 = vmul.f32 %v619_v55, %v619_v55 }
  0xfd   : > { %v1508_v62 = vpop.f32.mrf.mxu0  ;;  %1453 = vst [vmem:[%s1723_s20 + $0x58] sm:$0xff] %v1421_v56   ;;  %v1416_v63 = vpack.c.bf16 %v1745_v57, %v1739_v45  ;;  %v1751_v0 = vpop.f32.mrf.mxu1 }
  0xfe   : > { %1444 = vst [vmem:[%s1723_s20 + $0x10] sm:$0xff] %v1376_v59   ;;  %v991_v2 = vadd.f32 %v1504_v39, %v990_v60  ;;  %v1060_v3 = vadd.f32 %v1059_v58, %v1029_v61  ;;  %v1034_v26 = vmul.f32 %v1508_v62, %v1508_v62  ;;  %v1040_v61 = vmul.f32 %v1716_v27, %v1716_v27 }
  0xff   : > { %v632_v4 = vpop.f32.mrf.mxu0  ;;  %1452 = vst [vmem:[%s1723_s20 + $0x50] sm:$0xff] %v1416_v63   ;;  %v1755_v5 = vpop.f32.mrf.mxu1 }
 0x100   : > { %v1061_v7 = vadd.f32 %v1060_v3, %v1030_v1  ;;  %v992_v8 = vadd.f32 %v1505_v49, %v991_v2  ;;  %v1032_v12 = vmul.f32 %v632_v4, %v632_v4  ;;  %v1041_v2 = vmul.f32 %v1729_v34, %v1729_v34 }
 0x101   : > { %v1509_v9 = vpop.f32.mrf.mxu0  ;;  %v1757_v10 = vpop.f32.mrf.mxu1 }
 0x102   : > { %v993_v11 = vadd.f32 %v992_v8, %v632_v4  ;;  %v1062_v13 = vadd.f32 %v1061_v7, %v1031_v6  ;;  %v1391_v14 = vpack.c.bf16 %v1509_v9, %v1508_v62  ;;  %v1431_v16 = vpack.c.bf16 %v1757_v10, %v1751_v0 }
 0x103   : > { %v635_v15 = vpop.f32.mrf.mxu0  ;;  %v1761_v17 = vpop.f32.mrf.mxu1  ;;  %v1035_v33 = vmul.f32 %v1509_v9, %v1509_v9  ;;  %v1043_v8 = vmul.f32 %v1725_v29, %v1725_v29 }
 0x104   : > { %v1063_v18 = vadd.f32 %v1062_v13, %v1032_v12  ;;  %1447 = vst [vmem:[%s1723_s20 + $0x28] sm:$0xff] %v1391_v14   ;;  %v1386_v19 = vpack.c.bf16 %v635_v15, %v632_v4  ;;  %v994_v20 = vadd.f32 %v993_v11, %v635_v15  ;;  %v1033_v21 = vmul.f32 %v635_v15, %v635_v15 }
 0x105   : > { %v1512_v22 = vpop.f32.mrf.mxu0  ;;  %1455 = vst [vmem:[%s1723_s20 + $0x68] sm:$0xff] %v1431_v16   ;;  %v1426_v23 = vpack.c.bf16 %v1761_v17, %v1755_v5  ;;  %v1767_v24 = vpop.f32.mrf.mxu1  ;;  %v1042_v4 = vmul.f32 %v1714_v25, %v1714_v25  ;;  %v1044_v12 = vmul.f32 %v1739_v45, %v1739_v45  ;;  %v1045_v15 = vmul.f32 %v1745_v57, %v1745_v57 }
 0x106   : > { %1446 = vst [vmem:[%s1723_s20 + $0x20] sm:$0xff] %v1386_v19   ;;  %v995_v28 = vadd.f32 %v1508_v62, %v994_v20  ;;  %v1064_v30 = vadd.f32 %v1063_v18, %v1033_v21  ;;  %v1038_v54 = vmul.f32 %v1512_v22, %v1512_v22  ;;  %v1048_v21 = vmul.f32 %v1755_v5, %v1755_v5 }
 0x107   : > { %v648_v31 = vpop.f32.mrf.mxu0  ;;  %1454 = vst [vmem:[%s1723_s20 + $0x60] sm:$0xff] %v1426_v23   ;;  %v1771_v32 = vpop.f32.mrf.mxu1 }
 0x108   : > { %v1065_v35 = vadd.f32 %v1064_v30, %v1034_v26  ;;  %v996_v36 = vadd.f32 %v1509_v9, %v995_v28  ;;  %v1036_v41 = vmul.f32 %v648_v31, %v648_v31  ;;  %v1049_v26 = vmul.f32 %v1761_v17, %v1761_v17 }
 0x109   : > { %v1513_v37 = vpop.f32.mrf.mxu0  ;;  %v1773_v38 = vpop.f32.mrf.mxu1 }
 0x10a   : > { %v997_v39 = vadd.f32 %v996_v36, %v648_v31  ;;  %v1066_v42 = vadd.f32 %v1065_v35, %v1035_v33  ;;  %v1401_v43 = vpack.c.bf16 %v1513_v37, %v1512_v22  ;;  %v1441_v46 = vpack.c.bf16 %v1773_v38, %v1767_v24 }
 0x10b   : > { %v651_v44 = vpop.f32.mrf.mxu0  ;;  %v715_v47 = vpop.f32.mrf.mxu1  ;;  %v1039_v58 = vmul.f32 %v1513_v37, %v1513_v37  ;;  %v1052_v35 = vmul.f32 %v1771_v32, %v1771_v32 }
 0x10c   : > { %v1067_v48 = vadd.f32 %v1066_v42, %v1036_v41  ;;  %1449 = vst [vmem:[%s1723_s20 + $0x38] sm:$0xff] %v1401_v43   ;;  %v1396_v49 = vpack.c.bf16 %v651_v44, %v648_v31  ;;  %v998_v51 = vadd.f32 %v997_v39, %v651_v44  ;;  %v1037_v52 = vmul.f32 %v651_v44, %v651_v44 }
 0x10d   : > { %1457 = vst [vmem:[%s1723_s20 + $0x78] sm:$0xff] %v1441_v46   ;;  %v1436_v53 = vpack.c.bf16 %v715_v47, %v1771_v32  ;;  %v1053_v39 = vmul.f32 %v715_v47, %v715_v47  ;;  %v1055_v43 = vmul.f32 %v1773_v38, %v1773_v38 }
 0x10e   : > { %1448 = vst [vmem:[%s1723_s20 + $0x30] sm:$0xff] %v1396_v49   ;;  %v999_v55 = vadd.f32 %v1512_v22, %v998_v51  ;;  %v1068_v56 = vadd.f32 %v1067_v48, %v1037_v52 }
 0x10f   : > { %1456 = vst [vmem:[%s1723_s20 + $0x70] sm:$0xff] %v1436_v53  }
 0x110   : > { %v1000_v59 = vadd.f32 %v1513_v37, %v999_v55  ;;  %v1069_v60 = vadd.f32 %v1068_v56, %v1038_v54 }
 0x112   : > { %v1070_v62 = vadd.f32 %v1069_v60, %v1039_v58  ;;  %v1001_v63 = vadd.f32 %v1000_v59, %v1716_v27 }
 0x114   : > { %v1002_v1 = vadd.f32 %v1001_v63, %v1729_v34  ;;  %v1071_v3 = vadd.f32 %v1070_v62, %v1040_v61 }
 0x116   : > { %v1003_v6 = vadd.f32 %v1714_v25, %v1002_v1  ;;  %v1072_v7 = vadd.f32 %v1071_v3, %v1041_v2  ;;  %v1046_v25 = vmul.f32 %v1735_v40, %v1735_v40 }
 0x118   : > { %v1073_v9 = vadd.f32 %v1072_v7, %v1042_v4  ;;  %v1004_v11 = vadd.f32 %v1725_v29, %v1003_v6  ;;  %v1047_v29 = vmul.f32 %v1741_v50, %v1741_v50 }
 0x11a   : > { %v1005_v27 = vadd.f32 %v1004_v11, %v1739_v45  ;;  %v1074_v13 = vadd.f32 %v1073_v9, %v1043_v8 }
 0x11c   : > { %v1075_v34 = vadd.f32 %v1074_v13, %v1044_v12  ;;  %v1006_v14 = vadd.f32 %v1005_v27, %v1745_v57 }
 0x11e   : > { %v1007_v16 = vadd.f32 %v1735_v40, %v1006_v14  ;;  %v1076_v18 = vadd.f32 %v1075_v34, %v1045_v15  ;;  %v1050_v40 = vmul.f32 %v1751_v0, %v1751_v0 }
 0x120   : > { %v1077_v19 = vadd.f32 %v1076_v18, %v1046_v25  ;;  %v1008_v20 = vadd.f32 %v1741_v50, %v1007_v16  ;;  %v1051_v50 = vmul.f32 %v1757_v10, %v1757_v10 }
 0x122   : > { %v1009_v45 = vadd.f32 %v1008_v20, %v1755_v5  ;;  %v1078_v22 = vadd.f32 %v1077_v19, %v1047_v29 }
 0x124   : > { %v1079_v23 = vadd.f32 %v1078_v22, %v1048_v21  ;;  %v1010_v57 = vadd.f32 %v1009_v45, %v1761_v17 }
 0x126   : > { %v1011_v28 = vadd.f32 %v1751_v0, %v1010_v57  ;;  %v1080_v30 = vadd.f32 %v1079_v23, %v1049_v26  ;;  %v1054_v0 = vmul.f32 %v1767_v24, %v1767_v24 }
 0x128   : > { %v1081_v31 = vadd.f32 %v1080_v30, %v1050_v40  ;;  %v1012_v5 = vadd.f32 %v1757_v10, %v1011_v28 }
 0x12a   : > { %v1013_v33 = vadd.f32 %v1012_v5, %v1771_v32  ;;  %v1082_v36 = vadd.f32 %v1081_v31, %v1051_v50 }
 0x12c   : > { %v1083_v17 = vadd.f32 %v1082_v36, %v1052_v35  ;;  %v1014_v37 = vadd.f32 %v1013_v33, %v715_v47 }
 0x12e   : > { %v1015_v41 = vadd.f32 %v1767_v24, %v1014_v37  ;;  %v1084_v42 = vadd.f32 %v1083_v17, %v1053_v39 }
 0x130   : > { %v1016_v10 = vadd.f32 %v1773_v38, %v1015_v41  ;;  %v1085_v44 = vadd.f32 %v1084_v42, %v1054_v0 }
 0x132   : > { %v1017_v46 = vrot.slane %v1016_v10, 4  ;;  %v1086_v48 = vadd.f32 %v1085_v44, %v1055_v43 }
 0x134   : > { %v1018_v32 = vadd.f32 %v1017_v46, %v1016_v10  ;;  %v1087_v49 = vrot.slane %v1086_v48, 4 }
 0x136   : > { %v1019_v51 = vrot.slane %v1018_v32, 2  ;;  %v1088_v52 = vadd.f32 %v1087_v49, %v1086_v48 }
 0x138   : > { %v1020_v47 = vadd.f32 %v1019_v51, %v1018_v32  ;;  %v1089_v53 = vrot.slane %v1088_v52, 2 }
 0x13a   : > { %v1021_v54 = vrot.slane %v1020_v47, 1  ;;  %v1090_v55 = vadd.f32 %v1089_v53, %v1088_v52 }
 0x13c   : > { %v1022_v24 = vadd.f32 %v1021_v54, %v1020_v47  ;;  %v1091_v56 = vrot.slane %v1090_v55, 1 }
 0x13e   : > { %1023 = vst [vmem:[%s298_s23] sm:$0x1] %v1022_v24  ;;  %v1092_v38 = vadd.f32 %v1091_v56, %v1090_v55 }
 0x140   : > { %1093 = vst [vmem:[%s304_s26] sm:$0x1] %v1092_v38 }
 0x141 PF: > { %s15_s17 = sadd.s32 1, %s1616_s17   ;;  %s1849_s15 = smov %s1612_s16 }
 0x142   : > { %p12_p6 = scmp.ge.s32.totalorder %s15_s17, 4   ;;  %s1850_s16 = smov %s1852_s18 }
 0x144   :  { %14 = sbr.rel (!%p12_p6) target bundleno = 2 (0x2), region = 93 }

// kernel: bottleneck_block_forward.10
= control target key start
LH: loop header
LB: loop body
LE: loop exit
PB: predicated region body
PF: predicated region fallthrough
CT: control target
= control target key end

     0   :  { %v67_v8 = vlaneseq  ;;  %s424_s1 = inlined_call_operand.vmem [shape: f32[1,128], index: 1, kind: input, shape index: {}]   ;;  %s425_s2 = inlined_call_operand.vmem [shape: f32[1,128], index: 2, kind: input, shape index: {}]   ;;  %s426_s0 = inlined_call_operand.vmem [shape: bf16[128,128], index: 0, kind: input, shape index: {}]   ;;  %s427_s3 = inlined_call_operand.vmem [shape: f32[1,128], index: 3, kind: input, shape index: {}]   ;;  %s428_s4 = inlined_call_operand.vmem [shape: f32[1,128], index: 4, kind: input, shape index: {}]   ;;  %s429_s5 = inlined_call_operand.vmem [shape: bf16[128,128], index: 5, kind: output, shape index: {}]  }
   0x1   :  { %v20_v0 = vld [vmem:[%s424_s1] sm:$0x1]  ;;  %v314_v11 = vld [vmem:[%s426_s0 + $0x8] sm:$0xff]   ;;  %v315_v13 = vld [vmem:[%s426_s0 + $0x10] sm:$0xff]  }
   0x2   :  { %v22_v1 = vld [vmem:[%s425_s2] sm:$0x1]  ;;  %v21_v2 = vmul.f32 0.0078125, %v20_v0  ;;  %v68_v9 = vshrl.u32 %v67_v8, 7  ;;  %v316_v15 = vld [vmem:[%s426_s0 + $0x18] sm:$0xff]   ;;  %v248_v20 = vunpack.c.l.bf16 %v314_v11  ;;  %v318_v21 = vld [vmem:[%s426_s0 + $0x28] sm:$0xff]   ;;  %v249_v23 = vunpack.c.h.bf16 %v314_v11 }
   0x3   :  { %v23_v3 = vmul.f32 0.0078125, %v22_v1  ;;  %v243_v10 = vld [vmem:[%s426_s0] sm:$0xff]   ;;  %v252_v24 = vunpack.c.l.bf16 %v315_v13  ;;  %v253_v25 = vunpack.c.h.bf16 %v315_v13  ;;  %v319_v26 = vld [vmem:[%s426_s0 + $0x30] sm:$0xff]   ;;  %v393_v27 = vld [vmem:[%s426_s0 + $0x38] sm:$0xff]   ;;  %v256_v29 = vunpack.c.l.bf16 %v316_v15 }
   0x4   :  { %v24_v4 = vmul.f32 %v21_v2, %v21_v2  ;;  %v29_v12 = vld [vmem:[%s427_s3] sm:$0x1]  ;;  %v69_v14 = vsub.s32 0, %v68_v9  ;;  %v244_v18 = vunpack.c.l.bf16 %v243_v10  ;;  %v245_v19 = vunpack.c.h.bf16 %v243_v10 }
   0x5   :  { %v317_v16 = vld [vmem:[%s426_s0 + $0x20] sm:$0xff]   ;;  %v257_v30 = vunpack.c.h.bf16 %v316_v15  ;;  %v264_v35 = vunpack.c.l.bf16 %v318_v21  ;;  %v265_v36 = vunpack.c.h.bf16 %v318_v21  ;;  %v268_v37 = vunpack.c.l.bf16 %v319_v26 }
   0x6   :  { %v25_v5 = vsub.f32 %v23_v3, %v24_v4  ;;  %v31_v28 = vld [vmem:[%s428_s4] sm:$0x1]  ;;  %v260_v31 = vunpack.c.l.bf16 %v317_v16  ;;  %v261_v32 = vunpack.c.h.bf16 %v317_v16  ;;  %v269_v38 = vunpack.c.h.bf16 %v319_v26 }
   0x7   :  { %v272_v39 = vunpack.c.l.bf16 %v393_v27  ;;  %v273_v40 = vunpack.c.h.bf16 %v393_v27 }
   0x8   :  { %v26_v6 = vmax.f32 %v25_v5, 0.0 }
   0xa   :  { %v27_v7 = vadd.f32 1e-05, %v26_v6 }
   0xc   :  { %328 = vrsqrt.f32 %v27_v7 }
  0x19   :  { %v329_v17 = vpop.eup %328 }
  0x1a   :  { %v30_v22 = vmul.f32 %v329_v17, %v29_v12 }
  0x1c   :  { %v32_v33 = vmul.f32 %v30_v22, %v21_v2  ;;  %v70_v34 = vrot.slane %v30_v22, %v69_v14 }
  0x1e   :  { %v33_v41 = vsub.f32 %v31_v28, %v32_v33  ;;  %v72_v42 = vmul.f32 %v244_v18, %v70_v34  ;;  %v73_v43 = vmul.f32 %v245_v19, %v70_v34  ;;  %v74_v44 = vmul.f32 %v248_v20, %v70_v34 }
  0x1f   :  { %v75_v45 = vmul.f32 %v249_v23, %v70_v34  ;;  %v76_v46 = vmul.f32 %v252_v24, %v70_v34  ;;  %v77_v47 = vmul.f32 %v253_v25, %v70_v34  ;;  %v78_v48 = vmul.f32 %v256_v29, %v70_v34 }
  0x20   :  { %v92_v49 = vrot.slane %v33_v41, %v69_v14  ;;  %v79_v50 = vmul.f32 %v257_v30, %v70_v34  ;;  %v80_v51 = vmul.f32 %v260_v31, %v70_v34  ;;  %v81_v52 = vmul.f32 %v261_v32, %v70_v34 }
  0x21   :  { %v82_v53 = vmul.f32 %v264_v35, %v70_v34  ;;  %v83_v54 = vmul.f32 %v265_v36, %v70_v34  ;;  %v84_v55 = vmul.f32 %v268_v37, %v70_v34  ;;  %v85_v56 = vmul.f32 %v269_v38, %v70_v34 }
  0x22   :  { %v94_v57 = vadd.f32 %v92_v49, %v72_v42  ;;  %v95_v58 = vadd.f32 %v92_v49, %v73_v43  ;;  %v96_v59 = vadd.f32 %v92_v49, %v74_v44  ;;  %v97_v60 = vadd.f32 %v92_v49, %v75_v45 }
  0x23   :  { %v98_v61 = vadd.f32 %v92_v49, %v76_v46  ;;  %v99_v62 = vadd.f32 %v92_v49, %v77_v47  ;;  %v100_v63 = vadd.f32 %v92_v49, %v78_v48  ;;  %v101_v0 = vadd.f32 %v92_v49, %v79_v50 }
  0x24   :  { %v110_v1 = vmax.f32 %v94_v57, 0.0  ;;  %v111_v2 = vmax.f32 %v95_v58, 0.0  ;;  %v112_v3 = vmax.f32 %v96_v59, 0.0  ;;  %v113_v4 = vmax.f32 %v97_v60, 0.0 }
  0x25   :  { %v114_v5 = vmax.f32 %v98_v61, 0.0  ;;  %v115_v6 = vmax.f32 %v99_v62, 0.0  ;;  %v116_v7 = vmax.f32 %v100_v63, 0.0  ;;  %v117_v8 = vmax.f32 %v101_v0, 0.0 }
  0x26   :  { %v277_v9 = vpack.c.bf16 %v111_v2, %v110_v1  ;;  %v282_v10 = vpack.c.bf16 %v113_v4, %v112_v3  ;;  %v102_v11 = vadd.f32 %v92_v49, %v80_v51  ;;  %v103_v12 = vadd.f32 %v92_v49, %v81_v52 }
  0x27   :  { %v287_v13 = vpack.c.bf16 %v115_v6, %v114_v5  ;;  %v292_v14 = vpack.c.bf16 %v117_v8, %v116_v7  ;;  %v104_v15 = vadd.f32 %v92_v49, %v82_v53  ;;  %v105_v16 = vadd.f32 %v92_v49, %v83_v54 }
  0x28   :  { %278 = vst [vmem:[%s429_s5] sm:$0xff] %v277_v9   ;;  %321 = vst [vmem:[%s429_s5 + $0x8] sm:$0xff] %v282_v10   ;;  %v118_v17 = vmax.f32 %v102_v11, 0.0  ;;  %v119_v18 = vmax.f32 %v103_v12, 0.0  ;;  %v106_v19 = vadd.f32 %v92_v49, %v84_v55  ;;  %v107_v20 = vadd.f32 %v92_v49, %v85_v56 }
  0x29   :  { %322 = vst [vmem:[%s429_s5 + $0x10] sm:$0xff] %v287_v13   ;;  %323 = vst [vmem:[%s429_s5 + $0x18] sm:$0xff] %v292_v14   ;;  %v120_v21 = vmax.f32 %v104_v15, 0.0  ;;  %v121_v22 = vmax.f32 %v105_v16, 0.0  ;;  %v86_v23 = vmul.f32 %v272_v39, %v70_v34  ;;  %v87_v24 = vmul.f32 %v273_v40, %v70_v34 }
  0x2a   :  { %v297_v25 = vpack.c.bf16 %v119_v18, %v118_v17  ;;  %v122_v26 = vmax.f32 %v106_v19, 0.0  ;;  %v123_v27 = vmax.f32 %v107_v20, 0.0 }
  0x2b   :  { %v302_v28 = vpack.c.bf16 %v121_v22, %v120_v21  ;;  %v108_v29 = vadd.f32 %v92_v49, %v86_v23  ;;  %v109_v30 = vadd.f32 %v92_v49, %v87_v24 }
  0x2c   :  { %324 = vst [vmem:[%s429_s5 + $0x20] sm:$0xff] %v297_v25   ;;  %v307_v31 = vpack.c.bf16 %v123_v27, %v122_v26 }
  0x2d   :  { %325 = vst [vmem:[%s429_s5 + $0x28] sm:$0xff] %v302_v28   ;;  %v124_v32 = vmax.f32 %v108_v29, 0.0  ;;  %v125_v33 = vmax.f32 %v109_v30, 0.0 }
  0x2e   :  { %326 = vst [vmem:[%s429_s5 + $0x30] sm:$0xff] %v307_v31  }
  0x2f   :  { %v312_v34 = vpack.c.bf16 %v125_v33, %v124_v32 }
  0x31   :  { %327 = vst [vmem:[%s429_s5 + $0x38] sm:$0xff] %v312_v34  }

// kernel: bottleneck_block_forward.9
= control target key start
LH: loop header
LB: loop body
LE: loop exit
PB: predicated region body
PF: predicated region fallthrough
CT: control target
= control target key end

     0   :  { %s3545_s27 = smov 0   ;;  %s4414_s0 = inlined_call_operand.vmem [shape: bf16[2,90,128], index: 0, kind: input, shape index: {}]   ;;  %s4415_s1 = inlined_call_operand.vmem [shape: bf16[2,90,128], index: 1, kind: input, shape index: {}]   ;;  %s4416_s2 = inlined_call_operand.vmem [shape: bf16[2,90,128], index: 2, kind: input, shape index: {}]   ;;  %s4417_s3 = inlined_call_operand.vmem [shape: bf16[2,90,128], index: 3, kind: input, shape index: {}]   ;;  %s4418_s4 = inlined_call_operand.vmem [shape: bf16[9,128,128], index: 4, kind: input, shape index: {}]   ;;  %s4419_s5 = inlined_call_operand.vmem [shape: f32[1,128], index: 5, kind: input, shape index: {}]   ;;  %s4420_s6 = inlined_call_operand.vmem [shape: bf16[2,72,128], index: 6, kind: output, shape index: {0}]   ;;  %s4421_s7 = inlined_call_operand.vmem [shape: f32[2,1,128], index: 7, kind: output, shape index: {1}]   ;;  %s4422_s8 = inlined_call_operand.vmem [shape: f32[2,1,128], index: 8, kind: output, shape index: {2}]  }
   0x1 LB: > { %s2595_s28 = sadd.s32 4294967295, %s3496_s27   ;;  %p2599_p0 = scmp.ge.s32.totalorder %s3496_s27, 1  ;;  %s3496_s27 = sphi %s3545_s27, %s19_s27  }
   0x2   : > { %p297_p1 = scmp.lt.s32.totalorder %s3496_s27, 3 }
   0x4   : > { %p298_p2 = pnand %p2599_p0, %p297_p1 }
   0x5   : > { %p352_p3 = scmp.lt.s32.totalorder (!%p298_p2), %s2595_s28, 1 }
   0x6   : > { %301 = sbr.rel (%p298_p2) target bundleno = 445 (0x1bd), region = 44 }
   0xb   : > { %v3377_v0 = vld [vmem:[%s4418_s4 + $0x78] sm:$0xff]   ;;  %v3498_v1 = vmov 0.0   ;;  %v3379_v3 = vld [vmem:[%s4418_s4 + $0x70] sm:$0xff]   ;;  %vm3499_vm0 = vmmov 0   ;;  %v3381_v5 = vld [vmem:[%s4418_s4 + $0x68] sm:$0xff]   ;;  %s4456_s28 = smov (!%p352_p3, %s2595_s28), 1 }
   0xc   : > { %3007 = vmatprep.subr.bf16.mxu0 %v3498_v1  ;;  %3043 = vmatprep.subr.bf16.mxu1 %v3498_v1  ;;  %v3378_v2 = vld [vmem:[%s4418_s4 + $0x38] sm:$0xff]   ;;  %v3380_v4 = vld [vmem:[%s4418_s4 + $0x30] sm:$0xff]   ;;  %v3382_v6 = vld [vmem:[%s4418_s4 + $0x28] sm:$0xff]   ;;  %s3591_s23 = smul.u32 48, %s4456_s28  ;;  %vm783_vm1 = vsmask.f32 7424 }
   0xd   : > { %3008 = vmatpush3.bf16.msra.mxu0 %v3377_v0  ;;  %3023 = vmatprep.mubr.msk.bf16.mxu0 %vm3499_vm0, %v3498_v1  ;;  %v3383_v7 = vld [vmem:[%s4418_s4 + $0x60] sm:$0xff]   ;;  %v3385_v9 = vld [vmem:[%s4418_s4 + $0x58] sm:$0xff]   ;;  %v3387_v11 = vld [vmem:[%s4418_s4 + $0x50] sm:$0xff]   ;;  %vm2019_vm2 = vcmask 1046528   ;;  %s3348_s30 = smul.u32 36, %s4456_s28 }
   0xe   : > { %3044 = vmatpush3.bf16.msra.mxu1 %v3378_v2  ;;  %3009 = vmatprep.subr.bf16.mxu0 %v3498_v1  ;;  %v3384_v8 = vld [vmem:[%s4418_s4 + $0x20] sm:$0xff]   ;;  %v3386_v10 = vld [vmem:[%s4418_s4 + $0x18] sm:$0xff]   ;;  %s3605_s10 = scalar_lea.vmem %s4415_s1, %s3591_s23  ;;  %s3612_s13 = scalar_lea.vmem %s4414_s0, %s3591_s23  ;;  %v3388_v12 = vld [vmem:[%s4418_s4 + $0x10] sm:$0xff]  }
   0xf   : > { %3045 = vmatprep.subr.bf16.mxu1 %v3498_v1  ;;  %3059 = vmatprep.mubr.msk.bf16.mxu1 %vm3499_vm0, %v3498_v1  ;;  %v3389_v13 = vld [vmem:[%s4418_s4 + $0x48] sm:$0xff]   ;;  %v3391_v15 = vld [vmem:[%s4418_s4 + $0x40] sm:$0xff]   ;;  %v3395_v19 = vld [vmem:[%s4418_s4 + $0xb8] sm:$0xff]   ;;  %s3677_s26 = scalar_lea.vmem %s4416_s2, %s3591_s23  ;;  %s3745_s12 = scalar_lea.vmem %s4417_s3, %s3591_s23 }
  0x10   : > { %v3390_v14 = vld [vmem:[%s4418_s4 + $0x8] sm:$0xff]   ;;  %v3392_v16 = vld [vmem:[%s4418_s4] sm:$0xff]   ;;  %v3399_v20 = vld [vmem:[%s4418_s4 + $0xf8] sm:$0xff]   ;;  %s4338_s11 = scalar_lea.vmem %s4420_s6, %s3348_s30  ;;  %s382_s23 = scalar_lea.vmem %s4422_s8, %s4456_s28 }
  0x11   : > { %3010 = vmatpush3.bf16.msra.mxu0 %v3379_v3  ;;  %v3393_v17 = vld [vmem:[%s3605_s10] sm:$0xff]   ;;  %v3396_v21 = vld [vmem:[%s4418_s4 + $0xb0] sm:$0xff]   ;;  %v3397_v22 = vld [vmem:[%s3605_s10 + $0x8] sm:$0xff]  }
  0x12   : > { %3046 = vmatpush3.bf16.msra.mxu1 %v3380_v4  ;;  %3011 = vmatprep.subr.bf16.mxu0 %v3498_v1  ;;  %v3394_v18 = vld [vmem:[%s3612_s13] sm:$0xff]   ;;  %v3401_v23 = vld [vmem:[%s4418_s4 + $0xf0] sm:$0xff]   ;;  %v3398_v24 = vld [vmem:[%s3612_s13 + $0x8] sm:$0xff]  }
  0x13   : > { %3047 = vmatprep.subr.bf16.mxu1 %v3498_v1  ;;  %v3400_v25 = vld [vmem:[%s4418_s4 + $0xa8] sm:$0xff]   ;;  %v3404_v27 = vld [vmem:[%s4418_s4 + $0xa0] sm:$0xff]   ;;  %v3402_v28 = vld [vmem:[%s3605_s10 + $0x10] sm:$0xff]  }
  0x14   : > { %v3405_v26 = vld [vmem:[%s4418_s4 + $0xe8] sm:$0xff]   ;;  %v3407_v29 = vld [vmem:[%s4418_s4 + $0xe0] sm:$0xff]   ;;  %v3403_v30 = vld [vmem:[%s3612_s13 + $0x10] sm:$0xff]  }
  0x15   : > { %3012 = vmatpush3.bf16.msra.mxu0 %v3381_v5  ;;  %v3406_v31 = vld [vmem:[%s4418_s4 + $0x98] sm:$0xff]   ;;  %v3411_v33 = vld [vmem:[%s4418_s4 + $0x90] sm:$0xff]   ;;  %v3419_v37 = vld [vmem:[%s3612_s13] sm:$0xff]  }
  0x16   : > { %3048 = vmatpush3.bf16.msra.mxu1 %v3382_v6  ;;  %3013 = vmatprep.subr.bf16.mxu0 %v3498_v1  ;;  %v3410_v32 = vld [vmem:[%s4418_s4 + $0xd8] sm:$0xff]   ;;  %v3412_v35 = vld [vmem:[%s4418_s4 + $0xd0] sm:$0xff]   ;;  %v3413_v38 = vld [vmem:[%s4418_s4 + $0x88] sm:$0xff]   ;;  %v787_v41 = vshll.u32 %v3419_v37, 16  ;;  %v785_v46 = vshrl.u32 %v3419_v37, 16 }
  0x17   : > { %3049 = vmatprep.subr.bf16.mxu1 %v3498_v1  ;;  %v3408_v34 = vld [vmem:[%s3605_s10 + $0x18] sm:$0xff]   ;;  %v3416_v39 = vld [vmem:[%s4418_s4 + $0xc8] sm:$0xff]   ;;  %v3414_v42 = vld [vmem:[%s3605_s10 + $0x20] ss:$0 sps:$4 sm:$0xff]  }
  0x18   : > { %v3409_v36 = vld [vmem:[%s3612_s13 + $0x18] sm:$0xff]   ;;  %v3420_v40 = vld [vmem:[%s3612_s13 + $0x8] sm:$0xff]   ;;  %v3417_v43 = vld [vmem:[%s4418_s4 + $0x80] sm:$0xff]   ;;  %v789_v47 = vrot.slane %v787_v41, 1 }
  0x19   : > { %3014 = vmatpush3.bf16.msra.mxu0 %v3383_v7  ;;  %v3415_v44 = vld [vmem:[%s3612_s13 + $0x20] ss:$0 sps:$4 sm:$0xff]   ;;  %v792_v48 = vshll.u32 %v3420_v40, 16  ;;  %v3424_v51 = vld [vmem:[%s3612_s13 + $0x10] sm:$0xff]   ;;  %v3422_v53 = vld [vmem:[%s4418_s4 + $0x138] sm:$0xff]   ;;  %v796_v55 = vshrl.u32 %v3420_v40, 16 }
  0x1a   : > { %3050 = vmatpush3.bf16.msra.mxu1 %v3384_v8  ;;  %3015 = vmatprep.subr.bf16.mxu0 %v3498_v1  ;;  %v3418_v45 = vld [vmem:[%s4418_s4 + $0xc0] sm:$0xff]   ;;  %v790_v49 = vor.u32 %v789_v47, %v785_v46  ;;  %v800_v56 = vshll.u32 %v3424_v51, 16  ;;  %v3426_v57 = vld [vmem:[%s4418_s4 + $0x178] sm:$0xff]   ;;  %v3423_v59 = vld [vmem:[%s4418_s4 + $0x130] sm:$0xff]   ;;  %v804_v4 = vshrl.u32 %v3424_v51, 16 }
  0x1b   : > { %3051 = vmatprep.subr.bf16.mxu1 %v3498_v1  ;;  %v794_v50 = vrot.slane %v792_v48, 1  ;;  %v3421_v52 = vld [vmem:[%s3677_s26] sm:$0xff]   ;;  %v3429_v58 = vld [vmem:[%s3612_s13 + $0x18] sm:$0xff]   ;;  %v3428_v62 = vld [vmem:[%s4418_s4 + $0x170] sm:$0xff]  }
  0x1c   : > { %v802_v61 = vrot.slane %v800_v56, 1  ;;  %v3425_v63 = vld [vmem:[%s3677_s26 + $0x8] sm:$0xff]   ;;  %v808_v0 = vshll.u32 %v3429_v58, 16  ;;  %v3431_v7 = vld [vmem:[%s4418_s4 + $0x120] sm:$0xff]   ;;  %v3448_v40 = vld [vmem:[%s4418_s4 + $0x1b8] sm:$0xff]  }
  0x1d   : > { %3016 = vmatpush3.bf16.msra.mxu0 %v3385_v9  ;;  %v795_v54 = vsel %vm783_vm1, %v790_v49, %v794_v50  ;;  %v798_v60 = vor.u32 %v796_v55, %v794_v50  ;;  %v3427_v3 = vld [vmem:[%s4418_s4 + $0x128] sm:$0xff]   ;;  %v3435_v9 = vld [vmem:[%s3612_s13 + $0x20] sm:$0x1f]   ;;  %v3456_v48 = vld [vmem:[%s3677_s26 + $0x18] sm:$0xff]  }
  0x1e   : > { %3052 = vmatpush3.bf16.msra.mxu1 %v3386_v10  ;;  %3017 = vmatprep.subr.bf16.mxu0 %v3498_v1  ;;  %v3432_v5 = vld [vmem:[%s4418_s4 + $0x168] sm:$0xff]   ;;  %v810_v6 = vrot.slane %v808_v0, 1  ;;  %v806_v8 = vor.u32 %v804_v4, %v802_v61  ;;  %v3434_v10 = vld [vmem:[%s4418_s4 + $0x160] sm:$0xff]   ;;  %v3454_v49 = vld [vmem:[%s4418_s4 + $0x1f0] sm:$0xff]   ;;  %v1403_v0 = vshrl.u32 %v3456_v48, 16 }
  0x1f   : > { %3053 = vmatprep.subr.bf16.mxu1 %v3498_v1  ;;  %v803_v2 = vsel %vm783_vm1, %v798_v60, %v802_v61  ;;  %v3450_v50 = vld [vmem:[%s3745_s12 + $0x8] sm:$0xff]   ;;  %v3457_v56 = vld [vmem:[%s4418_s4 + $0x1a0] sm:$0xff]   ;;  %v3455_v61 = vld [vmem:[%s3745_s12 + $0x10] sm:$0xff]  }
  0x20   : > { %v3453_v51 = vld [vmem:[%s4418_s4 + $0x1a8] sm:$0xff]   ;;  %v3460_v60 = vld [vmem:[%s4418_s4 + $0x1e0] sm:$0xff]   ;;  %v3464_v4 = vld [vmem:[%s4418_s4 + $0x190] sm:$0xff]  }
  0x21   : > { %3018 = vmatpush3.bf16.msra.mxu0 %v3387_v11  ;;  %v3430_v11 = vld [vmem:[%s3677_s26 + $0x10] sm:$0xff]   ;;  %v3458_v55 = vld [vmem:[%s4418_s4 + $0x1e8] sm:$0xff]  }
  0x22   : > { %3054 = vmatpush3.bf16.msra.mxu1 %v3388_v12  ;;  %3019 = vmatprep.subr.bf16.mxu0 %v3498_v1  ;;  %v812_v12 = vshrl.u32 %v3429_v58, 16 }
  0x23   : > { %3055 = vmatprep.subr.bf16.mxu1 %v3498_v1 }
  0x25   : > { %3020 = vmatpush3.bf16.msra.mxu0 %v3389_v13  ;;  %v811_v13 = vsel %vm783_vm1, %v806_v8, %v810_v6  ;;  %v3910_v8 = vld [vmem:[%s3612_s13 + $0x8] sm:$0xf] }
  0x26   : > { %3056 = vmatpush3.bf16.msra.mxu1 %v3390_v14  ;;  %3021 = vmatprep.subr.bf16.mxu0 %v3498_v1  ;;  %v3433_v14 = vld [vmem:[%s4418_s4 + $0x118] sm:$0xff]  }
  0x27   : > { %3057 = vmatprep.subr.bf16.mxu1 %v3498_v1 }
  0x29   : > { %3022 = vmatpush3.bf16.msra.mxu0 %v3391_v15  ;;  %v816_v15 = vshll.u32 %v3435_v9, 16 }
  0x2a   : > { %3058 = vmatpush3.bf16.msra.mxu1 %v3392_v16  ;;  %3079 = vmatprep.subr.bf16.mxu0 %v3498_v1  ;;  %v3437_v16 = vld [vmem:[%s4418_s4 + $0x158] sm:$0xff]  }
  0x2b   : > { %3115 = vmatprep.subr.bf16.mxu1 %v3498_v1 }
  0x2c   : > { %3024 = vmatmul.mubr.bf16.vlgmr.msra.gmra.mxu0 %v3393_v17  ;;  %v814_v17 = vor.u32 %v812_v12, %v810_v6 }
  0x2d   : > { %3060 = vmatmul.mubr.bf16.vlgmr.msra.gmra.mxu1 %v3394_v18  ;;  %3080 = vmatpush3.bf16.msra.mxu0 %v3395_v19  ;;  %v818_v18 = vrot.slane %v816_v15, 1  ;;  %v3438_v19 = vld [vmem:[%s4418_s4 + $0x110] sm:$0xff]   ;;  %v3468_v15 = vld [vmem:[%s4418_s4 + $0x1c8] sm:$0xff]  }
  0x2e   : > { %3081 = vmatprep.subr.bf16.mxu0 %v3498_v1  ;;  %3027 = vmatprep.mubr.msk.bf16.mxu0 %vm3499_vm0, %v3498_v1 }
  0x2f   : > { %3063 = vmatprep.mubr.msk.bf16.mxu1 %vm3499_vm0, %v3498_v1  ;;  %3116 = vmatpush3.bf16.msra.mxu1 %v3399_v20  ;;  %v3439_v20 = vld [vmem:[%s4418_s4 + $0x150] sm:$0xff]  }
  0x30   : > { %3117 = vmatprep.subr.bf16.mxu1 %v3498_v1 }
  0x31   : > { %3082 = vmatpush3.bf16.msra.mxu0 %v3396_v21  ;;  %v3436_v21 = vld [vmem:[%s3677_s26 + $0x18] sm:$0xff]  }
  0x32   : > { %3083 = vmatprep.subr.bf16.mxu0 %v3498_v1 }
  0x33   : > { %3118 = vmatpush3.bf16.msra.mxu1 %v3401_v23  ;;  %v819_v23 = vsel %vm783_vm1, %v814_v17, %v818_v18  ;;  %v3932_v17 = vld [vmem:[%s3612_s13 + $0xc] sm:$0xff]  }
  0x34   : > { %3028 = vmatmul.mubr.bf16.gmra.mxu0 %v3397_v22  ;;  %3119 = vmatprep.subr.bf16.mxu1 %v3498_v1  ;;  %v3440_v22 = vld [vmem:[%s4418_s4 + $0x108] sm:$0xff]  }
  0x35   : > { %3064 = vmatmul.mubr.bf16.gmra.mxu1 %v3398_v24  ;;  %3084 = vmatpush3.bf16.msra.mxu0 %v3400_v25  ;;  %v3446_v24 = vld [vmem:[%s3677_s26] sm:$0xff]   ;;  %v3442_v25 = vld [vmem:[%s4418_s4 + $0x148] sm:$0xff]  }
  0x36   : > { %3031 = vmatprep.mubr.msk.bf16.mxu0 %vm3499_vm0, %v3498_v1  ;;  %3067 = vmatprep.mubr.msk.bf16.mxu1 %vm3499_vm0, %v3498_v1 }
  0x37   : > { %3085 = vmatprep.subr.bf16.mxu0 %v3498_v1  ;;  %3120 = vmatpush3.bf16.msra.mxu1 %v3405_v26  ;;  %v820_v26 = vshrl.u32 %v3435_v9, 16  ;;  %v3465_v9 = vld [vmem:[%s4418_s4 + $0x1d0] sm:$0xff]  }
  0x38   : > { %3121 = vmatprep.subr.bf16.mxu1 %v3498_v1 }
  0x39   : > { %3086 = vmatpush3.bf16.msra.mxu0 %v3404_v27  ;;  %v3443_v27 = vld [vmem:[%s4418_s4 + $0x100] sm:$0xff]  }
  0x3a   : > { %3087 = vmatprep.subr.bf16.mxu0 %v3498_v1 }
  0x3b   : > { %3122 = vmatpush3.bf16.msra.mxu1 %v3407_v29  ;;  %v1378_v29 = vshll.u32 %v3446_v24, 16 }
  0x3c   : > { %3032 = vmatmul.mubr.bf16.gmra.mxu0 %v3402_v28  ;;  %3123 = vmatprep.subr.bf16.mxu1 %v3498_v1  ;;  %v3447_v28 = vld [vmem:[%s3677_s26 + $0x8] sm:$0xff]  }
  0x3d   : > { %3068 = vmatmul.mubr.bf16.gmra.mxu1 %v3403_v30  ;;  %3088 = vmatpush3.bf16.msra.mxu0 %v3406_v31  ;;  %v3444_v30 = vld [vmem:[%s4418_s4 + $0x140] sm:$0xff]   ;;  %v822_v31 = vor.u32 %v820_v26, %v818_v18 }
  0x3e   : > { %3035 = vmatprep.mubr.msk.bf16.mxu0 %vm3499_vm0, %v3498_v1  ;;  %3071 = vmatprep.mubr.msk.bf16.mxu1 %vm3499_vm0, %v3498_v1 }
  0x3f   : > { %3089 = vmatprep.subr.bf16.mxu0 %v3498_v1  ;;  %3124 = vmatpush3.bf16.msra.mxu1 %v3410_v32  ;;  %v3441_v32 = vld [vmem:[%s3677_s26 + $0x20] ss:$0 sps:$4 sm:$0xff]  }
  0x40   : > { %3125 = vmatprep.subr.bf16.mxu1 %v3498_v1 }
  0x41   : > { %3090 = vmatpush3.bf16.msra.mxu0 %v3411_v33  ;;  %v1376_v33 = vshrl.u32 %v3446_v24, 16 }
  0x42   : > { %3091 = vmatprep.subr.bf16.mxu0 %v3498_v1 }
  0x43   : > { %3126 = vmatpush3.bf16.msra.mxu1 %v3412_v35  ;;  %v1383_v35 = vshll.u32 %v3447_v28, 16 }
  0x44   : > { %3036 = vmatmul.mubr.bf16.gmra.mxu0 %v3408_v34  ;;  %3127 = vmatprep.subr.bf16.mxu1 %v3498_v1  ;;  %v1380_v34 = vrot.slane %v1378_v29, 1 }
  0x45   : > { %3072 = vmatmul.mubr.bf16.gmra.mxu1 %v3409_v36  ;;  %3039 = vmatprep.mubr.msk.bf16.mxu0 %vm3499_vm0, %v3498_v1  ;;  %v1385_v37 = vrot.slane %v1383_v35, 1 }
  0x46   : > { %3075 = vmatprep.mubr.msk.bf16.mxu1 %vm3499_vm0, %v3498_v1  ;;  %3092 = vmatpush3.bf16.msra.mxu0 %v3413_v38  ;;  %v1381_v36 = vor.u32 %v1380_v34, %v1376_v33  ;;  %v3451_v38 = vld [vmem:[%s3677_s26 + $0x10] sm:$0xff]  }
  0x47   : > { %3128 = vmatpush3.bf16.msra.mxu1 %v3416_v39  ;;  %3093 = vmatprep.subr.bf16.mxu0 %v3498_v1  ;;  %v3445_v39 = vld [vmem:[%s3745_s12] sm:$0xff]   ;;  %v3952_v33 = vld [vmem:[%s3612_s13 + $0x14] sm:$0xff]  }
  0x48   : > { %3129 = vmatprep.subr.bf16.mxu1 %v3498_v1  ;;  %v1386_v41 = vsel %vm783_vm1, %v1381_v36, %v1385_v37  ;;  %v3478_v36 = vld [vmem:[%s3605_s10 + $0x14] sm:$0xff]  }
  0x4a   : > { %3094 = vmatpush3.bf16.msra.mxu0 %v3417_v43  ;;  %v1391_v43 = vshll.u32 %v3451_v38, 16 }
  0x4b   : > { %3130 = vmatpush3.bf16.msra.mxu1 %v3418_v45  ;;  %3151 = vmatprep.subr.bf16.mxu0 %v3498_v1  ;;  %v3449_v45 = vld [vmem:[%s4418_s4 + $0x1b0] sm:$0xff]  }
  0x4c   : > { %3040 = vmatmul.mubr.bf16.gmra.mxu0 %v3414_v42  ;;  %3187 = vmatprep.subr.bf16.mxu1 %v3498_v1  ;;  %v1387_v42 = vshrl.u32 %v3447_v28, 16  ;;  %v1393_v47 = vrot.slane %v1391_v43, 1  ;;  %v1841_v43 = vshll.u32 %v3478_v36, 16 }
  0x4d   : > { %3076 = vmatmul.mubr.bf16.gmra.mxu1 %v3415_v44  ;;  %3095 = vmatprep.mubr.msk.bf16.mxu0 %vm3499_vm0, %v3498_v1  ;;  %v3452_v44 = vld [vmem:[%s4418_s4 + $0x1f8] sm:$0xff]  }
  0x4e   : > { %3131 = vmatprep.mubr.msk.bf16.mxu1 %vm3499_vm0, %v3498_v1  ;;  %v1389_v46 = vor.u32 %v1387_v42, %v1385_v37 }
  0x54   : > { %3096 = vmatmul.mubr.bf16.vlgmr.msra.gmra.mxu0 %v795_v54  ;;  %v1399_v54 = vshll.u32 %v3456_v48, 16 }
  0x55   : > { %3132 = vmatmul.mubr.bf16.vlgmr.msra.gmra.mxu1 %v3421_v52  ;;  %3152 = vmatpush3.bf16.msra.mxu0 %v3422_v53  ;;  %v1394_v52 = vsel %vm783_vm1, %v1389_v46, %v1393_v47  ;;  %v1395_v53 = vshrl.u32 %v3451_v38, 16  ;;  %v3475_v38 = vld [vmem:[%s4418_s4 + $0x238] sm:$0xff]  }
  0x56   : > { %3153 = vmatprep.subr.bf16.mxu0 %v3498_v1  ;;  %3099 = vmatprep.mubr.msk.bf16.mxu0 %vm3499_vm0, %v3498_v1  ;;  %v1401_v58 = vrot.slane %v1399_v54, 1 }
  0x57   : > { %3135 = vmatprep.mubr.msk.bf16.mxu1 %vm3499_vm0, %v3498_v1  ;;  %3188 = vmatpush3.bf16.msra.mxu1 %v3426_v57  ;;  %v1397_v57 = vor.u32 %v1395_v53, %v1393_v47  ;;  %v3968_v47 = vld [vmem:[%s3612_s13 + $0x1c] sm:$0xff]   ;;  %v1620_v53 = vshrl.u32 %v3952_v33, 16 }
  0x58   : > { %3189 = vmatprep.subr.bf16.mxu1 %v3498_v1  ;;  %v1624_v54 = vshll.u32 %v3968_v47, 16 }
  0x59   : > { %3154 = vmatpush3.bf16.msra.mxu0 %v3423_v59  ;;  %v3462_v59 = vld [vmem:[%s3677_s26 + $0x20] sm:$0x1f]   ;;  %s379_s26 = scalar_lea.vmem %s4421_s7, %s4456_s28 }
  0x5a   : > { %3155 = vmatprep.subr.bf16.mxu0 %v3498_v1 }
  0x5b   : > { %3190 = vmatpush3.bf16.msra.mxu1 %v3428_v62  ;;  %v3459_v62 = vld [vmem:[%s4418_s4 + $0x198] sm:$0xff]  }
  0x5c   : > { %3100 = vmatmul.mubr.bf16.gmra.mxu0 %v803_v2  ;;  %3191 = vmatprep.subr.bf16.mxu1 %v3498_v1  ;;  %v1407_v2 = vshll.u32 %v3462_v59, 16 }
  0x5d   : > { %3136 = vmatmul.mubr.bf16.gmra.mxu1 %v3425_v63  ;;  %3156 = vmatpush3.bf16.msra.mxu0 %v3427_v3  ;;  %v1402_v63 = vsel %vm783_vm1, %v1397_v57, %v1401_v58  ;;  %v3463_v3 = vld [vmem:[%s4418_s4 + $0x1d8] sm:$0xff]  }
  0x5e   : > { %3103 = vmatprep.mubr.msk.bf16.mxu0 %vm3499_vm0, %v3498_v1  ;;  %3139 = vmatprep.mubr.msk.bf16.mxu1 %vm3499_vm0, %v3498_v1  ;;  %v1409_v6 = vrot.slane %v1407_v2, 1 }
  0x5f   : > { %3157 = vmatprep.subr.bf16.mxu0 %v3498_v1  ;;  %3192 = vmatpush3.bf16.msra.mxu1 %v3432_v5  ;;  %v1405_v5 = vor.u32 %v1403_v0, %v1401_v58  ;;  %v3485_v0 = vld [vmem:[%s3605_s10 + $0x24] sm:$0x1f]  }
  0x60   : > { %3193 = vmatprep.subr.bf16.mxu1 %v3498_v1 }
  0x61   : > { %3158 = vmatpush3.bf16.msra.mxu0 %v3431_v7  ;;  %v1548_v7 = vld [vmem:[%s3612_s13 + $0x4] sm:$0xf]  ;;  %v1410_v12 = vsel %vm783_vm1, %v1405_v5, %v1409_v6 }
  0x62   : > { %3159 = vmatprep.subr.bf16.mxu0 %v3498_v1 }
  0x63   : > { %3194 = vmatpush3.bf16.msra.mxu1 %v3434_v10  ;;  %v3461_v10 = vld [vmem:[%s3745_s12 + $0x18] sm:$0xff]  }
  0x64   : > { %3104 = vmatmul.mubr.bf16.gmra.mxu0 %v811_v13  ;;  %3195 = vmatprep.subr.bf16.mxu1 %v3498_v1  ;;  %v3466_v13 = vld [vmem:[%s4418_s4 + $0x188] sm:$0xff]  }
  0x65   : > { %3140 = vmatmul.mubr.bf16.gmra.mxu1 %v3430_v11  ;;  %3160 = vmatpush3.bf16.msra.mxu0 %v3433_v14  ;;  %v2779_v11 = vcombine.low %v1548_v7, %v3910_v8  ;;  %v3473_v14 = vld [vmem:[%s3605_s10 + $0x4] sm:$0xff]  }
  0x66   : > { %3107 = vmatprep.mubr.msk.bf16.mxu0 %vm3499_vm0, %v3498_v1  ;;  %3143 = vmatprep.mubr.msk.bf16.mxu1 %vm3499_vm0, %v3498_v1  ;;  %v1826_v28 = vshrl.u32 %v3473_v14, 16 }
  0x67   : > { %3161 = vmatprep.subr.bf16.mxu0 %v3498_v1  ;;  %3196 = vmatpush3.bf16.msra.mxu1 %v3437_v16  ;;  %v1411_v16 = vshrl.u32 %v3462_v59, 16  ;;  %v1603_v18 = vshll.u32 %v2779_v11, 16  ;;  %v1626_v59 = vrot.slane %v1624_v54, 1 }
  0x68   : > { %3197 = vmatprep.subr.bf16.mxu1 %v3498_v1 }
  0x69   : > { %3162 = vmatpush3.bf16.msra.mxu0 %v3438_v19  ;;  %v3469_v19 = vld [vmem:[%s4418_s4 + $0x180] sm:$0xff]   ;;  %v1413_v24 = vor.u32 %v1411_v16, %v1409_v6  ;;  %v1605_v26 = vrot.slane %v1603_v18, 1  ;;  %v3487_v18 = vld [vmem:[%s4418_s4 + $0x208] sm:$0xff]  }
  0x6a   : > { %3163 = vmatprep.subr.bf16.mxu0 %v3498_v1 }
  0x6b   : > { %3198 = vmatpush3.bf16.msra.mxu1 %v3439_v20  ;;  %v3474_v20 = vld [vmem:[%s3605_s10 + $0xc] sm:$0xff]  }
  0x6c   : > { %3108 = vmatmul.mubr.bf16.gmra.mxu0 %v819_v23  ;;  %3199 = vmatprep.subr.bf16.mxu1 %v3498_v1  ;;  %v3467_v23 = vld [vmem:[%s3745_s12 + $0x20] ss:$0 sps:$4 sm:$0xff]   ;;  %v1837_v42 = vshrl.u32 %v3474_v20, 16 }
  0x6d   : > { %3144 = vmatmul.mubr.bf16.gmra.mxu1 %v3436_v21  ;;  %3111 = vmatprep.mubr.msk.bf16.mxu0 %vm3499_vm0, %v3498_v1  ;;  %v1828_v21 = vshll.u32 %v3473_v14, 16 }
  0x6e   : > { %3147 = vmatprep.mubr.msk.bf16.mxu1 %vm3499_vm0, %v3498_v1  ;;  %3164 = vmatpush3.bf16.msra.mxu0 %v3440_v22  ;;  %v3470_v22 = vld [vmem:[%s4418_s4 + $0x1c0] sm:$0xff]  }
  0x6f   : > { %3200 = vmatpush3.bf16.msra.mxu1 %v3442_v25  ;;  %3165 = vmatprep.subr.bf16.mxu0 %v3498_v1  ;;  %v1601_v25 = vshrl.u32 %v2779_v11, 16  ;;  %v1830_v29 = vrot.slane %v1828_v21, 1  ;;  %v3488_v21 = vld [vmem:[%s4418_s4 + $0x200] sm:$0xff]  }
  0x70   : > { %3201 = vmatprep.subr.bf16.mxu1 %v3498_v1 }
  0x71   : > { %v1831_v34 = vor.u32 %v1830_v29, %v1826_v28  ;;  %v2025_v28 = vrot.slane %v3968_v47, 1 }
  0x72   : > { %3166 = vmatpush3.bf16.msra.mxu0 %v3443_v27  ;;  %v1608_v27 = vshll.u32 %v3932_v17, 16 }
  0x73   : > { %3202 = vmatpush3.bf16.msra.mxu1 %v3444_v30  ;;  %3223 = vmatprep.subr.bf16.mxu0 %v3498_v1  ;;  %v1833_v30 = vshll.u32 %v3474_v20, 16  ;;  %v1861_v20 = vshrl.u32 %v3485_v0, 16 }
  0x74   : > { %3112 = vmatmul.mubr.bf16.gmra.mxu0 %v822_v31  ;;  %3259 = vmatprep.subr.bf16.mxu1 %v3498_v1  ;;  %v1606_v31 = vor.u32 %v1605_v26, %v1601_v25 }
  0x75   : > { %3148 = vmatmul.mubr.bf16.gmra.mxu1 %v3441_v32  ;;  %3167 = vmatprep.mubr.msk.bf16.mxu0 %vm3499_vm0, %v3498_v1  ;;  %v1610_v32 = vrot.slane %v1608_v27, 1  ;;  %v1835_v35 = vrot.slane %v1833_v30, 1  ;;  %v2021_v27 = vrot.slane %v3932_v17, 1 }
  0x76   : > { %3203 = vmatprep.mubr.msk.bf16.mxu1 %vm3499_vm0, %v3498_v1 }
  0x77   : > { %v1611_v37 = vsel %vm783_vm1, %v1606_v31, %v1610_v32  ;;  %v1839_v48 = vor.u32 %v1837_v42, %v1835_v35  ;;  %v2023_v31 = vrot.slane %v3952_v33, 1 }
  0x7c   : > { %3168 = vmatmul.mubr.bf16.vlgmr.msra.gmra.mxu0 %v3445_v39  ;;  %v1612_v39 = vshrl.u32 %v3932_v17, 16  ;;  %v2024_v17 = vsel %vm2019_vm2, %v2021_v27, %v2023_v31 }
  0x7d   : > { %3204 = vmatmul.mubr.bf16.vlgmr.msra.gmra.mxu1 %v1386_v41  ;;  %3224 = vmatpush3.bf16.msra.mxu0 %v3448_v40  ;;  %v1616_v40 = vshll.u32 %v3952_v33, 16  ;;  %v1836_v41 = vsel %vm783_vm1, %v1831_v34, %v1835_v35 }
  0x7e   : > { %3225 = vmatprep.subr.bf16.mxu0 %v3498_v1  ;;  %3171 = vmatprep.mubr.msk.bf16.mxu0 %vm3499_vm0, %v3498_v1 }
  0x7f   : > { %3207 = vmatprep.mubr.msk.bf16.mxu1 %vm3499_vm0, %v3498_v1  ;;  %3260 = vmatpush3.bf16.msra.mxu1 %v3452_v44  ;;  %v3476_v44 = vld [vmem:[%s4418_s4 + $0x230] sm:$0xff]   ;;  %v1618_v46 = vrot.slane %v1616_v40, 1 }
  0x80   : > { %3261 = vmatprep.subr.bf16.mxu1 %v3498_v1 }
  0x81   : > { %3226 = vmatpush3.bf16.msra.mxu0 %v3449_v45  ;;  %v1614_v45 = vor.u32 %v1612_v39, %v1610_v32  ;;  %v1622_v58 = vor.u32 %v1620_v53, %v1618_v46  ;;  %v2026_v32 = vsel %vm2019_vm2, %v2023_v31, %v2025_v28 }
  0x82   : > { %3227 = vmatprep.subr.bf16.mxu0 %v3498_v1 }
  0x83   : > { %3262 = vmatpush3.bf16.msra.mxu1 %v3454_v49  ;;  %v1843_v49 = vrot.slane %v1841_v43, 1  ;;  %v1627_v2 = vsel %vm783_vm1, %v1622_v58, %v1626_v59 }
  0x84   : > { %3172 = vmatmul.mubr.bf16.gmra.mxu0 %v3450_v50  ;;  %3263 = vmatprep.subr.bf16.mxu1 %v3498_v1  ;;  %v3481_v50 = vld [vmem:[%s3605_s10 + $0x1c] sm:$0xff]  }
  0x85   : > { %3208 = vmatmul.mubr.bf16.gmra.mxu1 %v1394_v52  ;;  %3228 = vmatpush3.bf16.msra.mxu0 %v3453_v51  ;;  %v1619_v51 = vsel %vm783_vm1, %v1614_v45, %v1618_v46  ;;  %v3479_v52 = vld [vmem:[%s4418_s4 + $0x228] sm:$0xff]   ;;  %v1849_v57 = vshll.u32 %v3481_v50, 16  ;;  %v1853_v7 = vshrl.u32 %v3481_v50, 16 }
  0x86   : > { %3175 = vmatprep.mubr.msk.bf16.mxu0 %vm3499_vm0, %v3498_v1  ;;  %3211 = vmatprep.mubr.msk.bf16.mxu1 %vm3499_vm0, %v3498_v1 }
  0x87   : > { %3229 = vmatprep.subr.bf16.mxu0 %v3498_v1  ;;  %3264 = vmatpush3.bf16.msra.mxu1 %v3458_v55  ;;  %v1844_v55 = vsel %vm783_vm1, %v1839_v48, %v1843_v49 }
  0x88   : > { %3265 = vmatprep.subr.bf16.mxu1 %v3498_v1 }
  0x89   : > { %3230 = vmatpush3.bf16.msra.mxu0 %v3457_v56  ;;  %v1845_v56 = vshrl.u32 %v3478_v36, 16 }
  0x8a   : > { %3231 = vmatprep.subr.bf16.mxu0 %v3498_v1 }
  0x8b   : > { %3266 = vmatpush3.bf16.msra.mxu1 %v3460_v60  ;;  %v3482_v60 = vld [vmem:[%s4418_s4 + $0x220] sm:$0xff]  }
  0x8c   : > { %3176 = vmatmul.mubr.bf16.gmra.mxu0 %v3455_v61  ;;  %3267 = vmatprep.subr.bf16.mxu1 %v3498_v1  ;;  %v3990_v61 = vld [vmem:[%s3612_s13 + $0x24] sm:$0x1f]  }
  0x8d   : > { %3212 = vmatmul.mubr.bf16.gmra.mxu1 %v1402_v63  ;;  %3232 = vmatpush3.bf16.msra.mxu0 %v3459_v62  ;;  %v1847_v62 = vor.u32 %v1845_v56, %v1843_v49  ;;  %v1851_v63 = vrot.slane %v1849_v57, 1  ;;  %v1632_v5 = vshll.u32 %v3990_v61, 16  ;;  %v2027_v29 = vrot.slane %v3990_v61, 1 }
  0x8e   : > { %3179 = vmatprep.mubr.msk.bf16.mxu0 %vm3499_vm0, %v3498_v1  ;;  %3215 = vmatprep.mubr.msk.bf16.mxu1 %vm3499_vm0, %v3498_v1 }
  0x8f   : > { %3233 = vmatprep.subr.bf16.mxu0 %v3498_v1  ;;  %3268 = vmatpush3.bf16.msra.mxu1 %v3463_v3  ;;  %v3483_v3 = vld [vmem:[%s4418_s4 + $0x218] sm:$0xff]   ;;  %v1852_v6 = vsel %vm783_vm1, %v1847_v62, %v1851_v63  ;;  %v1634_v11 = vrot.slane %v1632_v5, 1 }
  0x90   : > { %3269 = vmatprep.subr.bf16.mxu1 %v3498_v1 }
  0x91   : > { %3234 = vmatpush3.bf16.msra.mxu0 %v3464_v4  ;;  %v1628_v4 = vshrl.u32 %v3968_v47, 16 }
  0x92   : > { %3235 = vmatprep.subr.bf16.mxu0 %v3498_v1 }
  0x93   : > { %3270 = vmatpush3.bf16.msra.mxu1 %v3465_v9  ;;  %v1857_v9 = vshll.u32 %v3485_v0, 16 }
  0x94   : > { %3180 = vmatmul.mubr.bf16.gmra.mxu0 %v3461_v10  ;;  %3271 = vmatprep.subr.bf16.mxu1 %v3498_v1  ;;  %v1630_v10 = vor.u32 %v1628_v4, %v1626_v59 }
  0x95   : > { %3216 = vmatmul.mubr.bf16.gmra.mxu1 %v1410_v12  ;;  %3183 = vmatprep.mubr.msk.bf16.mxu0 %vm3499_vm0, %v3498_v1  ;;  %v3486_v12 = vld [vmem:[%s4418_s4 + $0x210] sm:$0xff]   ;;  %v1859_v14 = vrot.slane %v1857_v9, 1 }
  0x96   : > { %3219 = vmatprep.mubr.msk.bf16.mxu1 %vm3499_vm0, %v3498_v1  ;;  %3236 = vmatpush3.bf16.msra.mxu0 %v3466_v13  ;;  %v1855_v13 = vor.u32 %v1853_v7, %v1851_v63 }
  0x97   : > { %3272 = vmatpush3.bf16.msra.mxu1 %v3468_v15  ;;  %3237 = vmatprep.subr.bf16.mxu0 %v3498_v1  ;;  %v1635_v15 = vsel %vm783_vm1, %v1630_v10, %v1634_v11 }
  0x98   : > { %3273 = vmatprep.subr.bf16.mxu1 %v3498_v1  ;;  %v1860_v16 = vsel %vm783_vm1, %v1855_v13, %v1859_v14 }
  0x9a   : > { %3238 = vmatpush3.bf16.msra.mxu0 %v3469_v19  ;;  %v1636_v19 = vshrl.u32 %v3990_v61, 16 }
  0x9b   : > { %3274 = vmatpush3.bf16.msra.mxu1 %v3470_v22  ;;  %3295 = vmatprep.subr.bf16.mxu0 %v3498_v1  ;;  %v1998_v22 = vld [vmem:[%s3612_s13 + $0x4] sm:$0xe] }
  0x9c   : > { %3184 = vmatmul.mubr.bf16.gmra.mxu0 %v3467_v23  ;;  %3331 = vmatprep.subr.bf16.mxu1 %v3498_v1  ;;  %v1638_v23 = vor.u32 %v1636_v19, %v1634_v11  ;;  %v2837_v25 = vcombine.low %v1998_v22, %v3910_v8  ;;  %v2028_v8 = vsel %vm2019_vm2, %v2025_v28, %v2027_v29 }
  0x9d   : > { %3220 = vmatmul.mubr.bf16.gmra.mxu1 %v1413_v24  ;;  %3239 = vmatprep.mubr.msk.bf16.mxu0 %vm3499_vm0, %v3498_v1  ;;  %v1863_v24 = vor.u32 %v1861_v20, %v1859_v14 }
  0x9e   : > { %3275 = vmatprep.mubr.msk.bf16.mxu1 %vm3499_vm0, %v3498_v1  ;;  %v2020_v26 = vrot.slane %v2837_v25, 1 }
  0xa0   : > { %v2022_v30 = vsel %vm2019_vm2, %v2020_v26, %v2021_v27 }
  0xa4   : > { %3240 = vmatmul.mubr.bf16.vlgmr.msra.gmra.mxu0 %v1611_v37 }
  0xa5   : > { %3276 = vmatmul.mubr.bf16.vlgmr.msra.gmra.mxu1 %v1836_v41  ;;  %3296 = vmatpush3.bf16.msra.mxu0 %v3475_v38 }
  0xa6   : > { %3297 = vmatprep.subr.bf16.mxu0 %v3498_v1  ;;  %3243 = vmatprep.mubr.msk.bf16.mxu0 %vm3499_vm0, %v3498_v1 }
  0xa7   : > { %3279 = vmatprep.mubr.msk.bf16.mxu1 %vm3499_vm0, %v3498_v1  ;;  %3339 = vmatpush3.bf16.msra.mxu1 %v3475_v38 }
  0xa8   : > { %3332 = vmatprep.subr.bf16.mxu1 %v3498_v1 }
  0xa9   : > { %3298 = vmatpush3.bf16.msra.mxu0 %v3476_v44 }
  0xaa   : > { %3299 = vmatprep.subr.bf16.mxu0 %v3498_v1 }
  0xab   : > { %3340 = vmatpush3.bf16.msra.mxu1 %v3476_v44 }
  0xac   : > { %3244 = vmatmul.mubr.bf16.gmra.mxu0 %v1619_v51  ;;  %3333 = vmatprep.subr.bf16.mxu1 %v3498_v1 }
  0xad   : > { %3280 = vmatmul.mubr.bf16.gmra.mxu1 %v1844_v55  ;;  %3300 = vmatpush3.bf16.msra.mxu0 %v3479_v52 }
  0xae   : > { %3247 = vmatprep.mubr.msk.bf16.mxu0 %vm3499_vm0, %v3498_v1  ;;  %3283 = vmatprep.mubr.msk.bf16.mxu1 %vm3499_vm0, %v3498_v1 }
  0xaf   : > { %3301 = vmatprep.subr.bf16.mxu0 %v3498_v1  ;;  %3341 = vmatpush3.bf16.msra.mxu1 %v3479_v52 }
  0xb0   : > { %3334 = vmatprep.subr.bf16.mxu1 %v3498_v1 }
  0xb1   : > { %3302 = vmatpush3.bf16.msra.mxu0 %v3482_v60 }
  0xb2   : > { %3303 = vmatprep.subr.bf16.mxu0 %v3498_v1 }
  0xb3   : > { %3342 = vmatpush3.bf16.msra.mxu1 %v3482_v60 }
  0xb4   : > { %3248 = vmatmul.mubr.bf16.gmra.mxu0 %v1627_v2  ;;  %3335 = vmatprep.subr.bf16.mxu1 %v3498_v1 }
  0xb5   : > { %3284 = vmatmul.mubr.bf16.gmra.mxu1 %v1852_v6  ;;  %3304 = vmatpush3.bf16.msra.mxu0 %v3483_v3 }
  0xb6   : > { %3251 = vmatprep.mubr.msk.bf16.mxu0 %vm3499_vm0, %v3498_v1  ;;  %3287 = vmatprep.mubr.msk.bf16.mxu1 %vm3499_vm0, %v3498_v1 }
  0xb7   : > { %3343 = vmatpush3.bf16.msra.mxu1 %v3483_v3  ;;  %3305 = vmatprep.subr.bf16.mxu0 %v3498_v1 }
  0xb8   : > { %3336 = vmatprep.subr.bf16.mxu1 %v3498_v1 }
  0xb9   : > { %3306 = vmatpush3.bf16.msra.mxu0 %v3486_v12 }
  0xba   : > { %3307 = vmatprep.subr.bf16.mxu0 %v3498_v1 }
  0xbb   : > { %3344 = vmatpush3.bf16.msra.mxu1 %v3486_v12 }
  0xbc   : > { %3252 = vmatmul.mubr.bf16.gmra.mxu0 %v1635_v15  ;;  %3337 = vmatprep.subr.bf16.mxu1 %v3498_v1 }
  0xbd   : > { %3288 = vmatmul.mubr.bf16.gmra.mxu1 %v1860_v16  ;;  %3255 = vmatprep.mubr.msk.bf16.mxu0 %vm3499_vm0, %v3498_v1 }
  0xbe   : > { %3291 = vmatprep.mubr.msk.bf16.mxu1 %vm3499_vm0, %v3498_v1  ;;  %3308 = vmatpush3.bf16.msra.mxu0 %v3487_v18 }
  0xbf   : > { %3345 = vmatpush3.bf16.msra.mxu1 %v3487_v18  ;;  %3309 = vmatprep.subr.bf16.mxu0 %v3498_v1 }
  0xc0   : > { %3338 = vmatprep.subr.bf16.mxu1 %v3498_v1 }
  0xc2   : > { %3310 = vmatpush3.bf16.msra.mxu0 %v3488_v21 }
  0xc3   : > { %3346 = vmatpush3.bf16.msra.mxu1 %v3488_v21 }
  0xc4   : > { %3256 = vmatmul.mubr.bf16.gmra.mxu0 %v1638_v23 }
  0xc5   : > { %3292 = vmatmul.mubr.bf16.gmra.mxu1 %v1863_v24  ;;  %3311 = vmatprep.mubr.msk.bf16.mxu0 %vm3499_vm0, %v3498_v1 }
  0xc6   : > { %3323 = vmatprep.mubr.msk.bf16.mxu1 %vm3499_vm0, %v3498_v1 }
  0xcc   : > { %3312 = vmatmul.mubr.bf16.vlgmr.msra.gmra.mxu0 %v2022_v30 }
  0xcd   : > { %3324 = vmatmul.mubr.bf16.vlgmr.msra.gmra.mxu1 %v2028_v8  ;;  %3315 = vmatprep.mubr.msk.bf16.mxu0 %vm3499_vm0, %v3498_v1 }
  0xce   : > { %3327 = vmatprep.mubr.msk.bf16.mxu1 %vm3499_vm0, %v3498_v1 }
  0xd4   : > { %3316 = vmatmul.mubr.bf16.gmra.mxu0 %v2024_v17 }
  0xd5   : > { %3328 = vmatmul.mubr.bf16.gmra.mxu1 %v2027_v29  ;;  %3319 = vmatprep.mubr.msk.bf16.mxu0 %vm3499_vm0, %v3498_v1 }
  0xdc   : > { %3320 = vmatmul.mubr.bf16.gmra.mxu0 %v2026_v32 }
  0xec   : > { %v545_v34 = vpop.f32.mrf.mxu0 }
  0xed   : > { %v693_v35 = vpop.f32.mrf.mxu1 }
  0xee   : > { %v694_v36 = vadd.f32 %v693_v35, %v545_v34  ;;  %v3025_v37 = vpop.f32.mrf.mxu0 }
  0xef   : > { %v3061_v38 = vpop.f32.mrf.mxu1 }
  0xf0   : > { %v548_v39 = vpop.f32.mrf.mxu0 }
  0xf1   : > { %v696_v40 = vpop.f32.mrf.mxu1 }
  0xf2   : > { %v697_v41 = vadd.f32 %v696_v40, %v548_v39  ;;  %v3026_v33 = vpop.f32.mrf.mxu0 }
  0xf3   : > { %v3062_v42 = vpop.f32.mrf.mxu1 }
  0xf4   : > { %v553_v43 = vpop.f32.mrf.mxu0 }
  0xf5   : > { %v701_v44 = vpop.f32.mrf.mxu1 }
  0xf6   : > { %v702_v45 = vadd.f32 %v701_v44, %v553_v43  ;;  %v3029_v46 = vpop.f32.mrf.mxu0 }
  0xf7   : > { %v3065_v47 = vpop.f32.mrf.mxu1 }
  0xf8   : > { %v556_v48 = vpop.f32.mrf.mxu0 }
  0xf9   : > { %v704_v49 = vpop.f32.mrf.mxu1 }
  0xfa   : > { %v705_v1 = vadd.f32 %v704_v49, %v556_v48  ;;  %v3030_v50 = vpop.f32.mrf.mxu0 }
  0xfb   : > { %v3066_v51 = vpop.f32.mrf.mxu1 }
  0xfc   : > { %v561_v52 = vpop.f32.mrf.mxu0 }
  0xfd   : > { %v709_v53 = vpop.f32.mrf.mxu1 }
  0xfe   : > { %v710_v54 = vadd.f32 %v709_v53, %v561_v52  ;;  %v3033_v55 = vpop.f32.mrf.mxu0 }
  0xff   : > { %v3069_v56 = vpop.f32.mrf.mxu1 }
 0x100   : > { %v564_v57 = vpop.f32.mrf.mxu0 }
 0x101   : > { %v712_v58 = vpop.f32.mrf.mxu1 }
 0x102   : > { %v713_v59 = vadd.f32 %v712_v58, %v564_v57  ;;  %v3034_v60 = vpop.f32.mrf.mxu0 }
 0x103   : > { %v3070_v61 = vpop.f32.mrf.mxu1 }
 0x104   : > { %v569_v62 = vpop.f32.mrf.mxu0 }
 0x105   : > { %v717_v63 = vpop.f32.mrf.mxu1 }
 0x106   : > { %v718_v0 = vadd.f32 %v717_v63, %v569_v62  ;;  %v3037_v2 = vpop.f32.mrf.mxu0 }
 0x107   : > { %v3073_v3 = vpop.f32.mrf.mxu1 }
 0x108   : > { %v572_v4 = vpop.f32.mrf.mxu0 }
 0x109   : > { %v720_v5 = vpop.f32.mrf.mxu1 }
 0x10a   : > { %v721_v6 = vadd.f32 %v720_v5, %v572_v4  ;;  %v3038_v7 = vpop.f32.mrf.mxu0 }
 0x10b   : > { %v3074_v9 = vpop.f32.mrf.mxu1 }
 0x10c   : > { %v577_v10 = vpop.f32.mrf.mxu0 }
 0x10d   : > { %v725_v11 = vpop.f32.mrf.mxu1 }
 0x10e   : > { %v726_v12 = vadd.f32 %v725_v11, %v577_v10  ;;  %v3041_v13 = vpop.f32.mrf.mxu0 }
 0x10f   : > { %v3077_v14 = vpop.f32.mrf.mxu1 }
 0x110   : > { %v580_v15 = vpop.f32.mrf.mxu0 }
 0x111   : > { %v728_v16 = vpop.f32.mrf.mxu1 }
 0x112   : > { %v3042_v18 = vpop.f32.mrf.mxu0 }
 0x113   : > { %v3078_v19 = vpop.f32.mrf.mxu1 }
 0x114   : > { %v910_v20 = vpop.f32.mrf.mxu0 }
 0x115   : > { %v948_v21 = vadd.f32 %v910_v20, %v694_v36  ;;  %v1093_v22 = vpop.f32.mrf.mxu1 }
 0x116   : > { %v3097_v23 = vpop.f32.mrf.mxu0 }
 0x117   : > { %v1131_v24 = vadd.f32 %v1093_v22, %v948_v21  ;;  %v3133_v25 = vpop.f32.mrf.mxu1 }
 0x118   : > { %v913_v26 = vpop.f32.mrf.mxu0 }
 0x119   : > { %v949_v27 = vadd.f32 %v913_v26, %v697_v41  ;;  %v1096_v28 = vpop.f32.mrf.mxu1 }
 0x11a   : > { %v3098_v29 = vpop.f32.mrf.mxu0 }
 0x11b   : > { %v1132_v30 = vadd.f32 %v1096_v28, %v949_v27  ;;  %v3134_v8 = vpop.f32.mrf.mxu1 }
 0x11c   : > { %v918_v31 = vpop.f32.mrf.mxu0 }
 0x11d   : > { %v950_v17 = vadd.f32 %v918_v31, %v702_v45  ;;  %v1101_v32 = vpop.f32.mrf.mxu1 }
 0x11e   : > { %v3101_v34 = vpop.f32.mrf.mxu0 }
 0x11f   : > { %v1133_v35 = vadd.f32 %v1101_v32, %v950_v17  ;;  %v3137_v37 = vpop.f32.mrf.mxu1 }
 0x120   : > { %v921_v38 = vpop.f32.mrf.mxu0 }
 0x121   : > { %v951_v39 = vadd.f32 %v921_v38, %v705_v1  ;;  %v1104_v40 = vpop.f32.mrf.mxu1 }
 0x122   : > { %v3102_v36 = vpop.f32.mrf.mxu0 }
 0x123   : > { %v1134_v33 = vadd.f32 %v1104_v40, %v951_v39  ;;  %v3138_v42 = vpop.f32.mrf.mxu1 }
 0x124   : > { %v926_v43 = vpop.f32.mrf.mxu0 }
 0x125   : > { %v952_v44 = vadd.f32 %v926_v43, %v710_v54  ;;  %v1109_v46 = vpop.f32.mrf.mxu1 }
 0x126   : > { %v3105_v41 = vpop.f32.mrf.mxu0 }
 0x127   : > { %v1135_v47 = vadd.f32 %v1109_v46, %v952_v44  ;;  %v3141_v48 = vpop.f32.mrf.mxu1 }
 0x128   : > { %v929_v49 = vpop.f32.mrf.mxu0 }
 0x129   : > { %v953_v50 = vadd.f32 %v929_v49, %v713_v59  ;;  %v1112_v51 = vpop.f32.mrf.mxu1 }
 0x12a   : > { %v3106_v45 = vpop.f32.mrf.mxu0 }
 0x12b   : > { %v1136_v52 = vadd.f32 %v1112_v51, %v953_v50  ;;  %v3142_v53 = vpop.f32.mrf.mxu1 }
 0x12c   : > { %v934_v55 = vpop.f32.mrf.mxu0 }
 0x12d   : > { %v954_v56 = vadd.f32 %v934_v55, %v718_v0  ;;  %v1117_v57 = vpop.f32.mrf.mxu1 }
 0x12e   : > { %v3109_v1 = vpop.f32.mrf.mxu0 }
 0x12f   : > { %v4050_v58 = vadd.f32 %v1117_v57, %v954_v56  ;;  %v3145_v60 = vpop.f32.mrf.mxu1 }
 0x130   : > { %v937_v61 = vpop.f32.mrf.mxu0 }
 0x131   : > { %v955_v62 = vadd.f32 %v937_v61, %v721_v6  ;;  %v1120_v54 = vpop.f32.mrf.mxu1 }
 0x132   : > { %v3110_v63 = vpop.f32.mrf.mxu0 }
 0x133   : > { %v4052_v2 = vadd.f32 %v1120_v54, %v955_v62  ;;  %v3146_v3 = vpop.f32.mrf.mxu1  ;;  %v2179_v54 = vlaneseq }
 0x134   : > { %v942_v4 = vpop.f32.mrf.mxu0 }
 0x135   : > { %v956_v59 = vadd.f32 %v942_v4, %v726_v12  ;;  %v1125_v5 = vpop.f32.mrf.mxu1 }
 0x136   : > { %v3113_v7 = vpop.f32.mrf.mxu0 }
 0x137   : > { %v4054_v9 = vadd.f32 %v1125_v5, %v956_v59  ;;  %v3149_v10 = vpop.f32.mrf.mxu1  ;;  %v4082_v5 = vshrl.u32 %v2179_v54, 7 }
 0x138   : > { %v945_v0 = vpop.f32.mrf.mxu0 }
 0x139   : > { %v1128_v11 = vpop.f32.mrf.mxu1 }
 0x13a   : > { %v3114_v13 = vpop.f32.mrf.mxu0 }
 0x13b   : > { %v3150_v14 = vpop.f32.mrf.mxu1  ;;  %v2186_v13 = vadd.s32 48, %v4082_v5 }
 0x13c   : > { %v1276_v15 = vpop.f32.mrf.mxu0 }
 0x13d   : > { %v1314_v16 = vadd.f32 %v1276_v15, %v1131_v24  ;;  %v1501_v18 = vpop.f32.mrf.mxu1  ;;  %v2181_v15 = vadd.s32 8, %v4082_v5 }
 0x13e   : > { %v3169_v6 = vpop.f32.mrf.mxu0 }
 0x13f   : > { %v4056_v19 = vadd.f32 %v1501_v18, %v1314_v16  ;;  %v3205_v20 = vpop.f32.mrf.mxu1 }
 0x140   : > { %v1279_v21 = vpop.f32.mrf.mxu0  ;;  %v4093_v6 = vmul.u32.u64.low 3817748708, %v4082_v5  ;;  %v4094_v20 = vmul.u32.u64.high 3817748708, %v4082_v5, %v4093_v6 }
 0x141   : > { %v1315_v22 = vadd.f32 %v1279_v21, %v1132_v30  ;;  %v1504_v23 = vpop.f32.mrf.mxu1  ;;  %v2187_v21 = vadd.s32 56, %v4082_v5 }
 0x142   : > { %v3170_v12 = vpop.f32.mrf.mxu0 }
 0x143   : > { %v4058_v25 = vadd.f32 %v1504_v23, %v1315_v22  ;;  %v3206_v26 = vpop.f32.mrf.mxu1  ;;  %v4099_v23 = vmul.u32.u64.low 3817748708, %v2186_v13  ;;  %v4100_v12 = vmul.u32.u64.high 3817748708, %v2186_v13, %v4099_v23 }
 0x144   : > { %v1284_v27 = vpop.f32.mrf.mxu0 }
 0x145   : > { %v1316_v28 = vadd.f32 %v1284_v27, %v1133_v35  ;;  %v1509_v29 = vpop.f32.mrf.mxu1 }
 0x146   : > { %v3173_v8 = vpop.f32.mrf.mxu0 }
 0x147   : > { %v4060_v31 = vadd.f32 %v1509_v29, %v1316_v28  ;;  %v3209_v17 = vpop.f32.mrf.mxu1  ;;  %v4104_v27 = vmul.u32.u64.low 3817748708, %v2181_v15  ;;  %v4105_v28 = vmul.u32.u64.high 3817748708, %v2181_v15, %v4104_v27 }
 0x148   : > { %v1287_v24 = vpop.f32.mrf.mxu0 }
 0x149   : > { %v1317_v32 = vadd.f32 %v1287_v24, %v1134_v33  ;;  %v1512_v34 = vpop.f32.mrf.mxu1  ;;  %v4107_v17 = vmul.u32.u64.low 3817748708, %v2187_v21  ;;  %v4108_v24 = vmul.u32.u64.high 3817748708, %v2187_v21, %v4107_v17 }
 0x14a   : > { %v3174_v37 = vpop.f32.mrf.mxu0 }
 0x14b   : > { %v4062_v38 = vadd.f32 %v1512_v34, %v1317_v32  ;;  %v3210_v39 = vpop.f32.mrf.mxu1  ;;  %v4113_v34 = vadd.s32 16, %v4082_v5 }
 0x14c   : > { %v1292_v30 = vpop.f32.mrf.mxu0 }
 0x14d   : > { %v1318_v40 = vadd.f32 %v1292_v30, %v1135_v47  ;;  %v1517_v36 = vpop.f32.mrf.mxu1 }
 0x14e   : > { %v3177_v42 = vpop.f32.mrf.mxu0 }
 0x14f   : > { %v4064_v43 = vadd.f32 %v1517_v36, %v1318_v40  ;;  %v3213_v44 = vpop.f32.mrf.mxu1  ;;  %v2195_v40 = vshrl.u32 %v4094_v20, 3  ;;  %v4119_v36 = vadd.s32 64, %v4082_v5 }
 0x150   : > { %v1295_v35 = vpop.f32.mrf.mxu0  ;;  %v2261_v44 = vshrl.u32 %v4100_v12, 3 }
 0x151   : > { %v1319_v46 = vadd.f32 %v1295_v35, %v1136_v52  ;;  %v1520_v41 = vpop.f32.mrf.mxu1 }
 0x152   : > { %v3178_v48 = vpop.f32.mrf.mxu0  ;;  %v2262_v54 = vmul.u32 9, %v2261_v44 }
 0x153   : > { %v4066_v49 = vadd.f32 %v1520_v41, %v1319_v46  ;;  %v3214_v50 = vpop.f32.mrf.mxu1  ;;  %v4125_v35 = vmul.u32.u64.low 3817748708, %v4113_v34  ;;  %v4126_v46 = vmul.u32.u64.high 3817748708, %v4113_v34, %v4125_v35  ;;  %v2206_v48 = vshrl.u32 %v4105_v28, 3 }
 0x154   : > { %v4068_v33 = vpop.f32.mrf.mxu0  ;;  %v4132_v50 = vadd.s32 24, %v4082_v5  ;;  %v4151_v12 = vsub.s32 %v2186_v13, %v2262_v54 }
 0x155   : > { %v4070_v51 = vpop.f32.mrf.mxu1  ;;  %v2217_v27 = vshrl.u32 %v4126_v46, 3 }
 0x156   : > { %v3181_v45 = vpop.f32.mrf.mxu0  ;;  %vm2294_vm5 = vcmp.ne.s32.totalorder %v4151_v12, 0  ;;  %vm2303_vm6 = vcmp.lt.s32.totalorder %v4151_v12, 0 }
 0x157   : > { %v3217_v53 = vpop.f32.mrf.mxu1  ;;  %v2218_v13 = vmul.u32 9, %v2217_v27  ;;  %vm4181_vm10 = vmand %vm2303_vm6, %vm2294_vm5 }
 0x158   : > { %v4072_v55 = vpop.f32.mrf.mxu0 }
 0x159   : > { %v4074_v47 = vpop.f32.mrf.mxu1  ;;  %v4196_v54 = vsub.s32 %v4113_v34, %v2218_v13  ;;  %v1321_v27 = vadd.f32 %v4072_v55, %v4052_v2 }
 0x15a   : > { %v3182_v56 = vpop.f32.mrf.mxu0 }
 0x15b   : > { %v3218_v57 = vpop.f32.mrf.mxu1  ;;  %v2196_v56 = vmul.u32 9, %v2195_v40  ;;  %vm2290_vm15 = vcmp.ne.s32.totalorder %v4196_v54, 0  ;;  %vm2299_vm0 = vcmp.lt.s32.totalorder %v4196_v54, 0 }
 0x15c   : > { %v4076_v1 = vpop.f32.mrf.mxu0  ;;  %v2272_v57 = vshrl.u32 %v4108_v24, 3 }
 0x15d   : > { %v4078_v52 = vpop.f32.mrf.mxu1  ;;  %v2197_v6 = vsub.s32 %v4082_v5, %v2196_v56  ;;  %v2321_v56 = vadd.s32 9, %v4151_v12 }
 0x15e   : > { %v3185_v60 = vpop.f32.mrf.mxu0  ;;  %v2273_v20 = vmul.u32 9, %v2272_v57 }
 0x15f   : > { %v3221_v61 = vpop.f32.mrf.mxu1  ;;  %vm2288_vm3 = vcmp.ne.s32.totalorder %v2197_v6, 0  ;;  %vm2297_vm4 = vcmp.lt.s32.totalorder %v2197_v6, 0 }
 0x160   : > { %v1311_v62 = vpop.f32.mrf.mxu0  ;;  %v4136_v60 = vmul.u32.u64.low 3817748708, %v4119_v36  ;;  %v4137_v61 = vmul.u32.u64.high 3817748708, %v4119_v36, %v4136_v60  ;;  %vm4174_vm9 = vmand %vm2297_vm4, %vm2288_vm3 }
 0x161   : > { %v1536_v63 = vpop.f32.mrf.mxu1  ;;  %vm4256_vm4 = vmand %vm2299_vm0, %vm2290_vm15 }
 0x162   : > { %v3186_v3 = vpop.f32.mrf.mxu0  ;;  %v2283_v40 = vshrl.u32 %v4137_v61, 3 }
 0x163   : > { %v3222_v4 = vpop.f32.mrf.mxu1  ;;  %v2207_v3 = vmul.u32 9, %v2206_v48 }
 0x164   : > { %v4080_v59 = vpop.f32.mrf.mxu0 }
 0x165   : > { %v4084_v7 = vpop.f32.mrf.mxu1 }
 0x166   : > { %v3241_v10 = vpop.f32.mrf.mxu0 }
 0x167   : > { %v3277_v0 = vpop.f32.mrf.mxu1  ;;  %v4144_v4 = vmul.u32.u64.low 3817748708, %v4132_v50  ;;  %v4145_v10 = vmul.u32.u64.high 3817748708, %v4132_v50, %v4144_v4 }
 0x168   : > { %v4086_v11 = vpop.f32.mrf.mxu0 }
 0x169   : > { %v4089_v14 = vpop.f32.mrf.mxu1  ;;  %v2228_v46 = vshrl.u32 %v4145_v10, 3 }
 0x16a   : > { %v3242_v16 = vpop.f32.mrf.mxu0 }
 0x16b   : > { %v3278_v18 = vpop.f32.mrf.mxu1  ;;  %v4148_v16 = vadd.s32 32, %v4082_v5 }
 0x16c   : > { %v4097_v22 = vpop.f32.mrf.mxu0 }
 0x16d   : > { %v4102_v26 = vpop.f32.mrf.mxu1  ;;  %v4157_v17 = vmul.u32.u64.low 3817748708, %v4148_v16  ;;  %v4158_v24 = vmul.u32.u64.high 3817748708, %v4148_v16, %v4157_v17 }
 0x16e   : > { %v3245_v29 = vpop.f32.mrf.mxu0 }
 0x16f   : > { %v3281_v8 = vpop.f32.mrf.mxu1  ;;  %v2208_v29 = vsub.s32 %v2181_v15, %v2207_v3  ;;  %v4166_v15 = vadd.s32 40, %v4082_v5 }
 0x170   : > { %v4110_v32 = vpop.f32.mrf.mxu0 }
 0x171   : > { %v4115_v37 = vpop.f32.mrf.mxu1  ;;  %vm2289_vm7 = vcmp.ne.s32.totalorder %v2208_v29, 0  ;;  %vm2298_vm8 = vcmp.lt.s32.totalorder %v2208_v29, 0  ;;  %v2316_v60 = vadd.s32 9, %v2208_v29 }
 0x172   : > { %v3246_v39 = vpop.f32.mrf.mxu0  ;;  %vm4191_vm13 = vmand %vm2298_vm8, %vm2289_vm7  ;;  %v4199_v3 = vmul.u32.u64.low 3817748708, %v4166_v15  ;;  %v4200_v4 = vmul.u32.u64.high 3817748708, %v4166_v15, %v4199_v3 }
 0x173   : > { %v3282_v30 = vpop.f32.mrf.mxu1  ;;  %v2325_v2 = vsel %vm4191_vm13, %v2316_v60, %v2208_v29 }
 0x174   : > { %v4121_v42 = vpop.f32.mrf.mxu0  ;;  %v4160_v30 = vsub.s32 %v2187_v21, %v2273_v20  ;;  %v1320_v21 = vadd.f32 %v4068_v33, %v4050_v58  ;;  %v2284_v58 = vmul.u32 9, %v2283_v40  ;;  %v1764_v40 = vadd.f32 %v4080_v59, %v4056_v19 }
 0x175   : > { %v4128_v41 = vpop.f32.mrf.mxu1  ;;  %vm4244_vm3 = vcmp.lt.s32.totalorder %v2325_v2, 8 }
 0x176   : > { %v3249_v45 = vpop.f32.mrf.mxu0  ;;  %vm2295_vm11 = vcmp.ne.s32.totalorder %v4160_v30, 0  ;;  %vm2304_vm12 = vcmp.lt.s32.totalorder %v4160_v30, 0  ;;  %v1545_v20 = vadd.f32 %v4070_v51, %v1320_v21  ;;  %v2330_v51 = vsel %vm4181_vm10, %v2321_v56, %v4151_v12 }
 0x177   : > { %v3285_v53 = vpop.f32.mrf.mxu1  ;;  %vm4210_vm14 = vmand %vm2304_vm12, %vm2295_vm11  ;;  %v4223_v55 = vsub.s32 %v4119_v36, %v2284_v58  ;;  %v1546_v36 = vadd.f32 %v4074_v47, %v1321_v27  ;;  %vm4240_vm2 = vcmp.lt.s32.totalorder %v2330_v51, 8  ;;  %v2317_v45 = vadd.s32 9, %v4196_v54 }
 0x178   : > { %v4139_v62 = vpop.f32.mrf.mxu0  ;;  %v2315_v53 = vadd.s32 9, %v2197_v6  ;;  %v1765_v47 = vadd.f32 %v4086_v11, %v4058_v25  ;;  %v4266_v25 = vld [vmem:[%s4419_s5] ss:$0 sm:$0xff] }
 0x179   : > { %v4141_v63 = vpop.f32.mrf.mxu1  ;;  %vm2296_vm5 = vcmp.ne.s32.totalorder %v4223_v55, 0  ;;  %vm2305_vm6 = vcmp.lt.s32.totalorder %v4223_v55, 0  ;;  %v2323_v58 = vadd.s32 9, %v4223_v55  ;;  %v2326_v3 = vsel %vm4256_vm4, %v2317_v45, %v4196_v54 }
 0x17a   : > { %v3250_v0 = vpop.f32.mrf.mxu0  ;;  %v2324_v17 = vsel %vm4174_vm9, %v2315_v53, %v2197_v6  ;;  %vm4284_vm10 = vmand %vm2305_vm6, %vm2296_vm5  ;;  %vm4310_vm12 = vcmp.lt.s32.totalorder %v2326_v3, 8 }
 0x17b   : > { %v3286_v18 = vpop.f32.mrf.mxu1  ;;  %v2322_v0 = vadd.s32 9, %v4160_v30  ;;  %vm4227_vm1 = vcmp.lt.s32.totalorder %v2324_v17, 8 }
 0x17c   : > { %v1750_v23 = vpop.f32.mrf.mxu0  ;;  %v2229_v18 = vmul.u32 9, %v2228_v46 }
 0x17d   : > { %v4154_v28 = vpop.f32.mrf.mxu1  ;;  %v1770_v6 = vadd.f32 %v1750_v23, %v1545_v20  ;;  %v2331_v59 = vsel %vm4210_vm14, %v2322_v0, %v4160_v30  ;;  %v1322_v23 = vadd.f32 %v4076_v1, %v4054_v9 }
 0x17e   : > { %v3253_v8 = vpop.f32.mrf.mxu0  ;;  %v4235_v12 = vsub.s32 %v4132_v50, %v2229_v18  ;;  %v1989_v50 = vadd.f32 %v4084_v7, %v1764_v40  ;;  %vm4268_vm7 = vcmp.lt.s32.totalorder %v2331_v59, 8  ;;  %v1766_v18 = vadd.f32 %v4097_v22, %v4060_v31 }
 0x17f   : > { %v3289_v39 = vpop.f32.mrf.mxu1  ;;  %v1995_v1 = vadd.f32 %v4154_v28, %v1770_v6  ;;  %v1547_v28 = vadd.f32 %v4078_v52, %v1322_v23  ;;  %v1990_v52 = vadd.f32 %v4089_v14, %v1765_v47  ;;  %v1768_v47 = vadd.f32 %v4121_v42, %v4064_v43 }
 0x180   : > { %v1753_v44 = vpop.f32.mrf.mxu0  ;;  %v2239_v39 = vshrl.u32 %v4158_v24, 3  ;;  %vm2291_vm8 = vcmp.ne.s32.totalorder %v4235_v12, 0  ;;  %vm2300_vm9 = vcmp.lt.s32.totalorder %v4235_v12, 0  ;;  %v2318_v54 = vadd.s32 9, %v4235_v12 }
 0x181   : > { %v4168_v35 = vpop.f32.mrf.mxu1  ;;  %v1771_v56 = vadd.f32 %v1753_v44, %v1546_v36  ;;  %vm4304_vm11 = vmand %vm2300_vm9, %vm2291_vm8  ;;  %v1991_v51 = vadd.f32 %v4102_v26, %v1766_v18  ;;  %v1769_v18 = vadd.f32 %v4139_v62, %v4066_v49 }
 0x182   : > { %v3254_v48 = vpop.f32.mrf.mxu0  ;;  %v2240_v30 = vmul.u32 9, %v2239_v39 }
 0x183   : > { %v3290_v5 = vpop.f32.mrf.mxu1  ;;  %v1996_v17 = vadd.f32 %v4168_v35, %v1771_v56 }
 0x184   : > { %v4187_v33 = vpop.f32.mrf.mxu0  ;;  %v2250_v5 = vshrl.u32 %v4200_v4, 3  ;;  %v4289_v0 = vsub.s32 %v4148_v16, %v2240_v30 }
 0x185   : > { %v4202_v10 = vpop.f32.mrf.mxu1  ;;  %v1772_v34 = vadd.f32 %v4187_v33, %v1547_v28 }
 0x186   : > { %v3257_v8 = vpop.f32.mrf.mxu0  ;;  %v2251_v31 = vmul.u32 9, %v2250_v5  ;;  %vm2292_vm13 = vcmp.ne.s32.totalorder %v4289_v0, 0  ;;  %vm2301_vm14 = vcmp.lt.s32.totalorder %v4289_v0, 0 }
 0x187   : > { %v3293_v13 = vpop.f32.mrf.mxu1  ;;  %v1767_v8 = vadd.f32 %v4110_v32, %v4062_v38  ;;  %v2332_v32 = vsel %vm4284_vm10, %v2323_v58, %v4223_v55  ;;  %v2319_v55 = vadd.s32 9, %v4289_v0  ;;  %v1997_v19 = vadd.f32 %v4202_v10, %v1772_v34  ;;  %vm4355_vm15 = vmand %vm2301_vm14, %vm2292_vm13 }
 0x188   : > { %v1761_v46 = vpop.f32.mrf.mxu0  ;;  %v2252_v23 = vsub.s32 %v4166_v15, %v2251_v31  ;;  %vm4360_vm0 = vcmp.lt.s32.totalorder %v2332_v32, 8 }
 0x189   : > { %v1986_v24 = vpop.f32.mrf.mxu1  ;;  %v2327_v46 = vsel %vm4304_vm11, %v2318_v54, %v4235_v12  ;;  %v2328_v3 = vsel %vm4355_vm15, %v2319_v55, %v4289_v0 }
 0x18a   : > { %v3258_v29 = vpop.f32.mrf.mxu0  ;;  %v1992_v24 = vadd.f32 %v4115_v37, %v1767_v8  ;;  %v2320_v4 = vadd.s32 9, %v2252_v23  ;;  %vm2337_vm5 = vcmp.lt.s32.totalorder %v2328_v3, 8 }
 0x18b   : > { %v3294_v53 = vpop.f32.mrf.mxu1 }
 0x18c   : > { %v2116_v7 = vpop.f32.mrf.mxu0 }
 0x18d   : > { %v2154_v57 = vadd.f32 %v2116_v7, %v1989_v50  ;;  %v2140_v60 = vpop.f32.mrf.mxu1 }
 0x18e   : > { %v2160_v44 = vadd.f32 %v2140_v60, %v1995_v1  ;;  %v3313_v61 = vpop.f32.mrf.mxu0 }
 0x18f   : > { %v2170_v20 = vadd.f32 %v4266_v25, %v2154_v57  ;;  %v3325_v27 = vpop.f32.mrf.mxu1 }
 0x190   : > { %v2119_v39 = vpop.f32.mrf.mxu0  ;;  %v2176_v22 = vadd.f32 %v4266_v25, %v2160_v44 }
 0x191   : > { %v2155_v16 = vadd.f32 %v2119_v39, %v1990_v52  ;;  %v2143_v40 = vpop.f32.mrf.mxu1  ;;  %v2360_v35 = vsel %vm4227_vm1, %v2170_v20, 0.0  ;;  %vm4364_vm1 = vcmp.lt.s32.totalorder %v2327_v46, 8  ;;  %v1993_v52 = vadd.f32 %v4128_v41, %v1768_v47 }
 0x192   : > { %v2161_v33 = vadd.f32 %v2143_v40, %v1996_v17  ;;  %v3314_v13 = vpop.f32.mrf.mxu0  ;;  %v2430_v29 = vmul.f32 %v2360_v35, %v2360_v35  ;;  %v4333_v26 = vsel %vm4240_vm2, %v2176_v22, 0.0  ;;  %vm2293_vm2 = vcmp.ne.s32.totalorder %v2252_v23, 0 }
 0x193   : > { %v2171_v2 = vadd.f32 %v4266_v25, %v2155_v16  ;;  %v3326_v6 = vpop.f32.mrf.mxu1  ;;  %v1994_v22 = vadd.f32 %v4141_v63, %v1769_v18 }
 0x194   : > { %v2177_v59 = vadd.f32 %v4266_v25, %v2161_v33  ;;  %v2124_v36 = vpop.f32.mrf.mxu0 }
 0x195   : > { %v2361_v37 = vsel %vm4244_vm3, %v2171_v2, 0.0  ;;  %v2156_v10 = vadd.f32 %v2124_v36, %v1991_v51  ;;  %v2148_v12 = vpop.f32.mrf.mxu1  ;;  %vm2302_vm3 = vcmp.lt.s32.totalorder %v2252_v23, 0 }
 0x196   : > { %v2870_v45 = vpack.c.bf16 %v2361_v37, %v2360_v35  ;;  %v2415_v30 = vadd.f32 %v2361_v37, %v2360_v35  ;;  %v2431_v15 = vmul.f32 %v2361_v37, %v2361_v37  ;;  %v4344_v21 = vsel %vm4268_vm7, %v2177_v59, 0.0  ;;  %v3317_v50 = vpop.f32.mrf.mxu0  ;;  %vm4383_vm4 = vmand %vm2302_vm3, %vm2293_vm2 }
 0x197   : > { %v2885_v53 = vpack.c.bf16 %v4344_v21, %v4333_v26  ;;  %v2172_v48 = vadd.f32 %v4266_v25, %v2156_v10  ;;  %v2162_v9 = vadd.f32 %v2148_v12, %v1997_v19  ;;  %v3329_v56 = vpop.f32.mrf.mxu1  ;;  %v2329_v40 = vsel %vm4383_vm4, %v2320_v4, %v2252_v23 }
 0x198   : > { %2871 = vst [vmem:[%s4338_s11] sm:$0xff] %v2870_v45   ;;  %v2439_v7 = vadd.f32 %v2431_v15, %v2430_v29  ;;  %v2127_v43 = vpop.f32.mrf.mxu0  ;;  %vm2338_vm6 = vcmp.lt.s32.totalorder %v2329_v40, 8  ;;  %v2436_v59 = vmul.f32 %v4333_v26, %v4333_v26  ;;  %v2437_v29 = vmul.f32 %v4344_v21, %v4344_v21 }
 0x199   : > { %2889 = vst [vmem:[%s4338_s11 + $0x18] sm:$0xff] %v2885_v53   ;;  %v2362_v5 = vsel %vm4310_vm12, %v2172_v48, 0.0  ;;  %v2178_v57 = vadd.f32 %v4266_v25, %v2162_v9  ;;  %v2157_v60 = vadd.f32 %v2127_v43, %v1992_v24  ;;  %v2151_v58 = vpop.f32.mrf.mxu1 }
 0x19a   : > { %v2416_v28 = vadd.f32 %v2415_v30, %v2362_v5  ;;  %v2432_v44 = vmul.f32 %v2362_v5, %v2362_v5  ;;  %v3318_v61 = vpop.f32.mrf.mxu0 }
 0x19b   : > { %v2368_v20 = vsel %vm4360_vm0, %v2178_v57, 0.0  ;;  %v2173_v27 = vadd.f32 %v4266_v25, %v2157_v60  ;;  %v3330_v54 = vpop.f32.mrf.mxu1 }
 0x19c   : > { %v2440_v8 = vadd.f32 %v2439_v7, %v2432_v44  ;;  %v2866_v17 = vpack.c.bf16 %v2368_v20, %v2368_v20  ;;  %v2132_v34 = vpop.f32.mrf.mxu0 }
 0x19d   : > { %v2363_v41 = vsel %vm4364_vm1, %v2173_v27, 0.0  ;;  %v2158_v49 = vadd.f32 %v2132_v34, %v1993_v52 }
 0x19e   : > { %2414 = vst [vmem:[%s4338_s11 + $0x20] sm:$0xf] %v2866_v17  ;;  %v2875_v62 = vpack.c.bf16 %v2363_v41, %v2362_v5  ;;  %v2417_v39 = vadd.f32 %v2416_v28, %v2363_v41  ;;  %v2433_v14 = vmul.f32 %v2363_v41, %v2363_v41  ;;  %v3321_v31 = vpop.f32.mrf.mxu0 }
 0x19f   : > { %v2174_v16 = vadd.f32 %v4266_v25, %v2158_v49 }
 0x1a0   : > { %2887 = vst [vmem:[%s4338_s11 + $0x8] sm:$0xff] %v2875_v62   ;;  %v2441_v38 = vadd.f32 %v2440_v8, %v2433_v14  ;;  %v2135_v32 = vpop.f32.mrf.mxu0 }
 0x1a1   : > { %v2364_v35 = vsel %vm2337_vm5, %v2174_v16, 0.0  ;;  %v2159_v33 = vadd.f32 %v2135_v32, %v1994_v22 }
 0x1a2   : > { %v2418_v13 = vadd.f32 %v2417_v39, %v2364_v35  ;;  %v2434_v51 = vmul.f32 %v2364_v35, %v2364_v35  ;;  %v3322_v2 = vpop.f32.mrf.mxu0 }
 0x1a3   : > { %v2175_v6 = vadd.f32 %v4266_v25, %v2159_v33  ;;  %v2438_v25 = vmul.f32 %v2368_v20, %v2368_v20 }
 0x1a4   : > { %v2442_v46 = vadd.f32 %v2441_v38, %v2434_v51 }
 0x1a5   : > { %v2365_v55 = vsel %vm2338_vm6, %v2175_v6, 0.0 }
 0x1a6   : > { %v2880_v63 = vpack.c.bf16 %v2365_v55, %v2364_v35  ;;  %v2419_v24 = vadd.f32 %v2418_v13, %v2365_v55  ;;  %v2435_v19 = vmul.f32 %v2365_v55, %v2365_v55 }
 0x1a8   : > { %2888 = vst [vmem:[%s4338_s11 + $0x10] sm:$0xff] %v2880_v63   ;;  %v2420_v36 = vadd.f32 %v2419_v24, %v4333_v26  ;;  %v2443_v23 = vadd.f32 %v2442_v46, %v2435_v19 }
 0x1aa   : > { %v2421_v37 = vadd.f32 %v2420_v36, %v4344_v21  ;;  %v2444_v10 = vadd.f32 %v2443_v23, %v2436_v59 }
 0x1ac   : > { %v2422_v12 = vadd.f32 %v2421_v37, %v2368_v20  ;;  %v2445_v45 = vadd.f32 %v2444_v10, %v2437_v29 }
 0x1ae   : > { %v2423_v30 = vrot.slane %v2422_v12, 4  ;;  %v2446_v15 = vadd.f32 %v2445_v45, %v2438_v25 }
 0x1b0   : > { %v2424_v50 = vadd.f32 %v2423_v30, %v2422_v12  ;;  %v2447_v47 = vrot.slane %v2446_v15, 4 }
 0x1b2   : > { %v2425_v53 = vrot.slane %v2424_v50, 2  ;;  %v2448_v48 = vadd.f32 %v2447_v47, %v2446_v15 }
 0x1b4   : > { %v2426_v9 = vadd.f32 %v2425_v53, %v2424_v50  ;;  %v2449_v26 = vrot.slane %v2448_v48, 2 }
 0x1b6   : > { %v2427_v1 = vrot.slane %v2426_v9, 1  ;;  %v2450_v56 = vadd.f32 %v2449_v26, %v2448_v48 }
 0x1b8   : > { %v2428_v21 = vadd.f32 %v2427_v1, %v2426_v9  ;;  %v2451_v7 = vrot.slane %v2450_v56, 1 }
 0x1ba   : > { %2429 = vst [vmem:[%s379_s26] sm:$0x1] %v2428_v21  ;;  %v2452_v11 = vadd.f32 %v2451_v7, %v2450_v56 }
 0x1bc   : > { %2453 = vst [vmem:[%s382_s23] sm:$0x1] %v2452_v11 }
 0x1bd PF: > { %s19_s27 = sadd.s32 1, %s3496_s27  }
 0x1be   : > { %p16_p4 = scmp.ge.s32.totalorder %s19_s27, 4  }
 0x1c0   :  { %18 = sbr.rel (!%p16_p4) target bundleno = 1 (0x1), region = 115 }

// kernel: bottleneck_block_forward.11
= control target key start
LH: loop header
LB: loop body
LE: loop exit
PB: predicated region body
PF: predicated region fallthrough
CT: control target
= control target key end

     0   :  { %s757_s1 = inlined_call_operand.vmem [shape: bf16[128,128], index: 1, kind: input, shape index: {}]   ;;  %s758_s0 = inlined_call_operand.vmem [shape: bf16[128,128], index: 0, kind: input, shape index: {}]   ;;  %s759_s2 = inlined_call_operand.vmem [shape: bf16[128,128], index: 2, kind: output, shape index: {0}]   ;;  %s760_s3 = inlined_call_operand.vmem [shape: f32[1,1,128], index: 3, kind: output, shape index: {1}]   ;;  %s761_s4 = inlined_call_operand.vmem [shape: f32[1,1,128], index: 4, kind: output, shape index: {2}]  }
   0x1   :  { %v638_v0 = vld [vmem:[%s757_s1 + $0x38] sm:$0xff]   ;;  %v639_v1 = vld [vmem:[%s757_s1 + $0x30] sm:$0xff]   ;;  %v640_v2 = vld [vmem:[%s757_s1 + $0x28] sm:$0xff]  }
   0x2   :  { %590 = vmatprep.subr.bf16.mxu0 %v638_v0  ;;  %622 = vmatprep.subr.bf16.mxu1 %v638_v0  ;;  %v641_v3 = vld [vmem:[%s757_s1 + $0x20] sm:$0xff]   ;;  %v642_v5 = vld [vmem:[%s757_s1 + $0x18] sm:$0xff]   ;;  %v643_v7 = vld [vmem:[%s757_s1 + $0x10] sm:$0xff]  }
   0x3   :  { %591 = vmatpush3.bf16.msra.mxu0 %v638_v0  ;;  %630 = vmatpush3.bf16.msra.mxu1 %v638_v0  ;;  %v646_v4 = vld [vmem:[%s758_s0] sm:$0xff]   ;;  %v644_v8 = vld [vmem:[%s757_s1 + $0x8] sm:$0xff]   ;;  %v648_v12 = vld [vmem:[%s758_s0 + $0x10] sm:$0xff]  }
   0x4   :  { %592 = vmatprep.subr.bf16.mxu0 %v639_v1  ;;  %623 = vmatprep.subr.bf16.mxu1 %v639_v1  ;;  %v650_v6 = vld [vmem:[%s758_s0 + $0x20] sm:$0xff]   ;;  %v647_v10 = vld [vmem:[%s758_s0 + $0x8] sm:$0xff]   ;;  %v652_v13 = vld [vmem:[%s758_s0 + $0x30] sm:$0xff]  }
   0x5   :  { %606 = vmatprep.mubr.bf16.mxu0 %v646_v4  ;;  %614 = vmatprep.mubr.bf16.mxu1 %v650_v6  ;;  %v645_v9 = vld [vmem:[%s757_s1] sm:$0xff]   ;;  %v651_v11 = vld [vmem:[%s758_s0 + $0x28] sm:$0xff]   ;;  %v649_v14 = vld [vmem:[%s758_s0 + $0x18] sm:$0xff]  }
   0x6   :  { %v653_v15 = vld [vmem:[%s758_s0 + $0x38] sm:$0xff]  }
   0x7   :  { %593 = vmatpush3.bf16.msra.mxu0 %v639_v1  ;;  %631 = vmatpush3.bf16.msra.mxu1 %v639_v1 }
   0x8   :  { %594 = vmatprep.subr.bf16.mxu0 %v640_v2  ;;  %624 = vmatprep.subr.bf16.mxu1 %v640_v2 }
   0xb   :  { %595 = vmatpush3.bf16.msra.mxu0 %v640_v2  ;;  %632 = vmatpush3.bf16.msra.mxu1 %v640_v2 }
   0xc   :  { %596 = vmatprep.subr.bf16.mxu0 %v641_v3  ;;  %625 = vmatprep.subr.bf16.mxu1 %v641_v3 }
   0xf   :  { %597 = vmatpush3.bf16.msra.mxu0 %v641_v3  ;;  %633 = vmatpush3.bf16.msra.mxu1 %v641_v3 }
  0x10   :  { %598 = vmatprep.subr.bf16.mxu0 %v642_v5  ;;  %626 = vmatprep.subr.bf16.mxu1 %v642_v5 }
  0x13   :  { %599 = vmatpush3.bf16.msra.mxu0 %v642_v5  ;;  %634 = vmatpush3.bf16.msra.mxu1 %v642_v5 }
  0x14   :  { %600 = vmatprep.subr.bf16.mxu0 %v643_v7  ;;  %627 = vmatprep.subr.bf16.mxu1 %v643_v7 }
  0x17   :  { %601 = vmatpush3.bf16.msra.mxu0 %v643_v7  ;;  %635 = vmatpush3.bf16.msra.mxu1 %v643_v7 }
  0x18   :  { %602 = vmatprep.subr.bf16.mxu0 %v644_v8  ;;  %628 = vmatprep.subr.bf16.mxu1 %v644_v8 }
  0x1b   :  { %603 = vmatpush3.bf16.msra.mxu0 %v644_v8  ;;  %636 = vmatpush3.bf16.msra.mxu1 %v644_v8 }
  0x1c   :  { %604 = vmatprep.subr.bf16.mxu0 %v645_v9  ;;  %629 = vmatprep.subr.bf16.mxu1 %v645_v9 }
  0x1f   :  { %605 = vmatpush3.bf16.msra.mxu0 %v645_v9  ;;  %637 = vmatpush3.bf16.msra.mxu1 %v645_v9 }
  0x22   :  { %607 = vmatmul.mubr.bf16.vlgmr.msra.gmra.mxu0 %v647_v10  ;;  %615 = vmatmul.mubr.bf16.vlgmr.msra.gmra.mxu1 %v651_v11 }
  0x23   :  { %610 = vmatprep.mubr.bf16.mxu0 %v648_v12  ;;  %618 = vmatprep.mubr.bf16.mxu1 %v652_v13 }
  0x2a   :  { %611 = vmatmul.mubr.bf16.gmra.mxu0 %v649_v14  ;;  %619 = vmatmul.mubr.bf16.gmra.mxu1 %v653_v15 }
  0xe2   :  { %v608_v16 = vpop.f32.mrf.mxu0  ;;  %v616_v17 = vpop.f32.mrf.mxu1 }
  0xe3   :  { %v431_v33 = vmul.f32 %v608_v16, %v608_v16  ;;  %v439_v3 = vmul.f32 %v616_v17, %v616_v17 }
  0xe4   :  { %v213_v18 = vpop.f32.mrf.mxu0  ;;  %v245_v19 = vpop.f32.mrf.mxu1 }
  0xe5   :  { %v429_v24 = vmul.f32 %v213_v18, %v213_v18  ;;  %v437_v61 = vmul.f32 %v245_v19, %v245_v19 }
  0xe6   :  { %v609_v20 = vpop.f32.mrf.mxu0  ;;  %v617_v21 = vpop.f32.mrf.mxu1 }
  0xe7   :  { %v535_v22 = vpack.c.bf16 %v609_v20, %v608_v16  ;;  %v555_v23 = vpack.c.bf16 %v617_v21, %v616_v17  ;;  %v432_v38 = vmul.f32 %v609_v20, %v609_v20  ;;  %v440_v6 = vmul.f32 %v617_v21, %v617_v21 }
  0xe8   :  { %v216_v25 = vpop.f32.mrf.mxu0  ;;  %v248_v26 = vpop.f32.mrf.mxu1 }
  0xe9   :  { %567 = vst [vmem:[%s759_s2 + $0x8] sm:$0xff] %v535_v22   ;;  %v530_v27 = vpack.c.bf16 %v216_v25, %v213_v18  ;;  %v407_v28 = vadd.f32 %v216_v25, %v213_v18  ;;  %v430_v29 = vmul.f32 %v216_v25, %v216_v25  ;;  %571 = vst [vmem:[%s759_s2 + $0x28] sm:$0xff] %v555_v23  }
  0xea   :  { %v550_v30 = vpack.c.bf16 %v248_v26, %v245_v19  ;;  %v612_v31 = vpop.f32.mrf.mxu0  ;;  %v620_v32 = vpop.f32.mrf.mxu1  ;;  %v438_v1 = vmul.f32 %v248_v26, %v248_v26 }
  0xeb   :  { %531 = vst [vmem:[%s759_s2] sm:$0xff] %v530_v27   ;;  %v408_v34 = vadd.f32 %v608_v16, %v407_v28  ;;  %v445_v35 = vadd.f32 %v430_v29, %v429_v24  ;;  %v435_v55 = vmul.f32 %v612_v31, %v612_v31  ;;  %v443_v15 = vmul.f32 %v620_v32, %v620_v32 }
  0xec   :  { %570 = vst [vmem:[%s759_s2 + $0x20] sm:$0xff] %v550_v30   ;;  %v229_v36 = vpop.f32.mrf.mxu0  ;;  %v261_v37 = vpop.f32.mrf.mxu1 }
  0xed   :  { %v446_v39 = vadd.f32 %v445_v35, %v431_v33  ;;  %v409_v40 = vadd.f32 %v609_v20, %v408_v34  ;;  %v433_v44 = vmul.f32 %v229_v36, %v229_v36  ;;  %v441_v10 = vmul.f32 %v261_v37, %v261_v37 }
  0xee   :  { %v613_v41 = vpop.f32.mrf.mxu0  ;;  %v621_v42 = vpop.f32.mrf.mxu1 }
  0xef   :  { %v410_v43 = vadd.f32 %v409_v40, %v229_v36  ;;  %v447_v45 = vadd.f32 %v446_v39, %v432_v38  ;;  %v545_v46 = vpack.c.bf16 %v613_v41, %v612_v31  ;;  %v565_v48 = vpack.c.bf16 %v621_v42, %v620_v32 }
  0xf0   :  { %v232_v47 = vpop.f32.mrf.mxu0  ;;  %v264_v49 = vpop.f32.mrf.mxu1  ;;  %v436_v58 = vmul.f32 %v613_v41, %v613_v41  ;;  %v444_v20 = vmul.f32 %v621_v42, %v621_v42 }
  0xf1   :  { %v448_v50 = vadd.f32 %v447_v45, %v433_v44  ;;  %569 = vst [vmem:[%s759_s2 + $0x18] sm:$0xff] %v545_v46   ;;  %v540_v51 = vpack.c.bf16 %v232_v47, %v229_v36  ;;  %v411_v52 = vadd.f32 %v410_v43, %v232_v47  ;;  %v434_v53 = vmul.f32 %v232_v47, %v232_v47 }
  0xf2   :  { %573 = vst [vmem:[%s759_s2 + $0x38] sm:$0xff] %v565_v48   ;;  %v560_v54 = vpack.c.bf16 %v264_v49, %v261_v37  ;;  %v442_v14 = vmul.f32 %v264_v49, %v264_v49 }
  0xf3   :  { %568 = vst [vmem:[%s759_s2 + $0x10] sm:$0xff] %v540_v51   ;;  %v412_v56 = vadd.f32 %v612_v31, %v411_v52  ;;  %v449_v57 = vadd.f32 %v448_v50, %v434_v53 }
  0xf4   :  { %572 = vst [vmem:[%s759_s2 + $0x30] sm:$0xff] %v560_v54  }
  0xf5   :  { %v413_v59 = vadd.f32 %v613_v41, %v412_v56  ;;  %v450_v60 = vadd.f32 %v449_v57, %v435_v55 }
  0xf7   :  { %v451_v62 = vadd.f32 %v450_v60, %v436_v58  ;;  %v414_v63 = vadd.f32 %v413_v59, %v245_v19 }
  0xf9   :  { %v415_v0 = vadd.f32 %v414_v63, %v248_v26  ;;  %v452_v2 = vadd.f32 %v451_v62, %v437_v61 }
  0xfb   :  { %v416_v4 = vadd.f32 %v616_v17, %v415_v0  ;;  %v453_v5 = vadd.f32 %v452_v2, %v438_v1 }
  0xfd   :  { %v454_v7 = vadd.f32 %v453_v5, %v439_v3  ;;  %v417_v8 = vadd.f32 %v617_v21, %v416_v4 }
  0xff   :  { %v418_v9 = vadd.f32 %v417_v8, %v261_v37  ;;  %v455_v11 = vadd.f32 %v454_v7, %v440_v6 }
 0x101   :  { %v456_v12 = vadd.f32 %v455_v11, %v441_v10  ;;  %v419_v13 = vadd.f32 %v418_v9, %v264_v49 }
 0x103   :  { %v420_v16 = vadd.f32 %v620_v32, %v419_v13  ;;  %v457_v18 = vadd.f32 %v456_v12, %v442_v14 }
 0x105   :  { %v421_v19 = vadd.f32 %v621_v42, %v420_v16  ;;  %v458_v22 = vadd.f32 %v457_v18, %v443_v15 }
 0x107   :  { %v422_v23 = vrot.slane %v421_v19, 4  ;;  %v459_v24 = vadd.f32 %v458_v22, %v444_v20 }
 0x109   :  { %v423_v25 = vadd.f32 %v422_v23, %v421_v19  ;;  %v460_v17 = vrot.slane %v459_v24, 4 }
 0x10b   :  { %v424_v26 = vrot.slane %v423_v25, 2  ;;  %v461_v27 = vadd.f32 %v460_v17, %v459_v24 }
 0x10d   :  { %v425_v28 = vadd.f32 %v424_v26, %v423_v25  ;;  %v462_v21 = vrot.slane %v461_v27, 2 }
 0x10f   :  { %v426_v29 = vrot.slane %v425_v28, 1  ;;  %v463_v30 = vadd.f32 %v462_v21, %v461_v27 }
 0x111   :  { %v427_v31 = vadd.f32 %v426_v29, %v425_v28  ;;  %v464_v33 = vrot.slane %v463_v30, 1 }
 0x113   :  { %428 = vst [vmem:[%s760_s3] sm:$0x1] %v427_v31  ;;  %v465_v32 = vadd.f32 %v464_v33, %v463_v30 }
 0x115   :  { %466 = vst [vmem:[%s761_s4] sm:$0x1] %v465_v32 }

// kernel: bottleneck_block_forward.12
= control target key start
LH: loop header
LB: loop body
LE: loop exit
PB: predicated region body
PF: predicated region fallthrough
CT: control target
= control target key end

     0   :  { %s670_s1 = inlined_call_operand.vmem [shape: bf16[128,128], index: 1, kind: input, shape index: {}]   ;;  %s671_s0 = inlined_call_operand.vmem [shape: bf16[128,128], index: 0, kind: input, shape index: {}]   ;;  %s672_s2 = inlined_call_operand.vmem [shape: bf16[128,128], index: 2, kind: output, shape index: {}]  }
   0x1   :  { %v567_v0 = vld [vmem:[%s670_s1 + $0x38] sm:$0xff]   ;;  %v568_v1 = vld [vmem:[%s670_s1 + $0x30] sm:$0xff]   ;;  %v569_v2 = vld [vmem:[%s670_s1 + $0x28] sm:$0xff]  }
   0x2   :  { %519 = vmatprep.subr.bf16.mxu0 %v567_v0  ;;  %551 = vmatprep.subr.bf16.mxu1 %v567_v0  ;;  %v570_v3 = vld [vmem:[%s670_s1 + $0x20] sm:$0xff]   ;;  %v571_v6 = vld [vmem:[%s670_s1 + $0x18] sm:$0xff]   ;;  %v572_v7 = vld [vmem:[%s670_s1 + $0x10] sm:$0xff]  }
   0x3   :  { %520 = vmatpush3.bf16.msra.mxu0 %v567_v0  ;;  %559 = vmatpush3.bf16.msra.mxu1 %v567_v0  ;;  %v575_v4 = vld [vmem:[%s671_s0] sm:$0xff]   ;;  %v573_v8 = vld [vmem:[%s670_s1 + $0x8] sm:$0xff]   ;;  %v579_v12 = vld [vmem:[%s671_s0 + $0x10] sm:$0xff]  }
   0x4   :  { %521 = vmatprep.subr.bf16.mxu0 %v568_v1  ;;  %552 = vmatprep.subr.bf16.mxu1 %v568_v1  ;;  %v576_v5 = vld [vmem:[%s671_s0 + $0x20] sm:$0xff]   ;;  %v577_v10 = vld [vmem:[%s671_s0 + $0x8] sm:$0xff]   ;;  %v580_v13 = vld [vmem:[%s671_s0 + $0x30] sm:$0xff]  }
   0x5   :  { %535 = vmatprep.mubr.bf16.mxu0 %v575_v4  ;;  %543 = vmatprep.mubr.bf16.mxu1 %v576_v5  ;;  %v574_v9 = vld [vmem:[%s670_s1] sm:$0xff]   ;;  %v578_v11 = vld [vmem:[%s671_s0 + $0x28] sm:$0xff]   ;;  %v581_v14 = vld [vmem:[%s671_s0 + $0x18] sm:$0xff]  }
   0x6   :  { %v582_v15 = vld [vmem:[%s671_s0 + $0x38] sm:$0xff]  }
   0x7   :  { %522 = vmatpush3.bf16.msra.mxu0 %v568_v1  ;;  %560 = vmatpush3.bf16.msra.mxu1 %v568_v1 }
   0x8   :  { %523 = vmatprep.subr.bf16.mxu0 %v569_v2  ;;  %553 = vmatprep.subr.bf16.mxu1 %v569_v2 }
   0xb   :  { %524 = vmatpush3.bf16.msra.mxu0 %v569_v2  ;;  %561 = vmatpush3.bf16.msra.mxu1 %v569_v2 }
   0xc   :  { %525 = vmatprep.subr.bf16.mxu0 %v570_v3  ;;  %554 = vmatprep.subr.bf16.mxu1 %v570_v3 }
   0xf   :  { %526 = vmatpush3.bf16.msra.mxu0 %v570_v3  ;;  %562 = vmatpush3.bf16.msra.mxu1 %v570_v3 }
  0x10   :  { %527 = vmatprep.subr.bf16.mxu0 %v571_v6  ;;  %555 = vmatprep.subr.bf16.mxu1 %v571_v6 }
  0x13   :  { %528 = vmatpush3.bf16.msra.mxu0 %v571_v6  ;;  %563 = vmatpush3.bf16.msra.mxu1 %v571_v6 }
  0x14   :  { %529 = vmatprep.subr.bf16.mxu0 %v572_v7  ;;  %556 = vmatprep.subr.bf16.mxu1 %v572_v7 }
  0x17   :  { %530 = vmatpush3.bf16.msra.mxu0 %v572_v7  ;;  %564 = vmatpush3.bf16.msra.mxu1 %v572_v7 }
  0x18   :  { %531 = vmatprep.subr.bf16.mxu0 %v573_v8  ;;  %557 = vmatprep.subr.bf16.mxu1 %v573_v8 }
  0x1b   :  { %532 = vmatpush3.bf16.msra.mxu0 %v573_v8  ;;  %565 = vmatpush3.bf16.msra.mxu1 %v573_v8 }
  0x1c   :  { %533 = vmatprep.subr.bf16.mxu0 %v574_v9  ;;  %558 = vmatprep.subr.bf16.mxu1 %v574_v9 }
  0x1f   :  { %534 = vmatpush3.bf16.msra.mxu0 %v574_v9  ;;  %566 = vmatpush3.bf16.msra.mxu1 %v574_v9 }
  0x22   :  { %536 = vmatmul.mubr.bf16.vlgmr.msra.gmra.mxu0 %v577_v10  ;;  %544 = vmatmul.mubr.bf16.vlgmr.msra.gmra.mxu1 %v578_v11 }
  0x23   :  { %539 = vmatprep.mubr.bf16.mxu0 %v579_v12  ;;  %547 = vmatprep.mubr.bf16.mxu1 %v580_v13 }
  0x2a   :  { %540 = vmatmul.mubr.bf16.gmra.mxu0 %v581_v14  ;;  %548 = vmatmul.mubr.bf16.gmra.mxu1 %v582_v15 }
  0xe2   :  { %v537_v16 = vpop.f32.mrf.mxu0  ;;  %v545_v17 = vpop.f32.mrf.mxu1 }
  0xe4   :  { %v210_v18 = vpop.f32.mrf.mxu0  ;;  %v242_v19 = vpop.f32.mrf.mxu1 }
  0xe6   :  { %v538_v20 = vpop.f32.mrf.mxu0  ;;  %v546_v21 = vpop.f32.mrf.mxu1 }
  0xe7   :  { %v464_v22 = vpack.c.bf16 %v538_v20, %v537_v16  ;;  %v484_v23 = vpack.c.bf16 %v546_v21, %v545_v17 }
  0xe8   :  { %v213_v24 = vpop.f32.mrf.mxu0  ;;  %v245_v25 = vpop.f32.mrf.mxu1 }
  0xe9   :  { %496 = vst [vmem:[%s672_s2 + $0x8] sm:$0xff] %v464_v22   ;;  %500 = vst [vmem:[%s672_s2 + $0x28] sm:$0xff] %v484_v23   ;;  %v459_v26 = vpack.c.bf16 %v213_v24, %v210_v18  ;;  %v479_v27 = vpack.c.bf16 %v245_v25, %v242_v19 }
  0xea   :  { %v541_v28 = vpop.f32.mrf.mxu0  ;;  %v549_v29 = vpop.f32.mrf.mxu1 }
  0xeb   :  { %460 = vst [vmem:[%s672_s2] sm:$0xff] %v459_v26   ;;  %499 = vst [vmem:[%s672_s2 + $0x20] sm:$0xff] %v479_v27  }
  0xec   :  { %v226_v30 = vpop.f32.mrf.mxu0  ;;  %v258_v31 = vpop.f32.mrf.mxu1 }
  0xee   :  { %v542_v32 = vpop.f32.mrf.mxu0  ;;  %v550_v33 = vpop.f32.mrf.mxu1 }
  0xef   :  { %v474_v34 = vpack.c.bf16 %v542_v32, %v541_v28  ;;  %v494_v35 = vpack.c.bf16 %v550_v33, %v549_v29 }
  0xf0   :  { %v229_v36 = vpop.f32.mrf.mxu0  ;;  %v261_v37 = vpop.f32.mrf.mxu1 }
  0xf1   :  { %498 = vst [vmem:[%s672_s2 + $0x18] sm:$0xff] %v474_v34   ;;  %502 = vst [vmem:[%s672_s2 + $0x38] sm:$0xff] %v494_v35   ;;  %v469_v38 = vpack.c.bf16 %v229_v36, %v226_v30  ;;  %v489_v39 = vpack.c.bf16 %v261_v37, %v258_v31 }
  0xf3   :  { %497 = vst [vmem:[%s672_s2 + $0x10] sm:$0xff] %v469_v38   ;;  %501 = vst [vmem:[%s672_s2 + $0x30] sm:$0xff] %v489_v39  }

// kernel: bottleneck_block_forward.13
= control target key start
LH: loop header
LB: loop body
LE: loop exit
PB: predicated region body
PF: predicated region fallthrough
CT: control target
= control target key end

     0   :  { %v70_v8 = vlaneseq  ;;  %s503_s1 = inlined_call_operand.vmem [shape: f32[1,128], index: 1, kind: input, shape index: {}]   ;;  %s504_s2 = inlined_call_operand.vmem [shape: f32[1,128], index: 2, kind: input, shape index: {}]   ;;  %s505_s0 = inlined_call_operand.vmem [shape: bf16[128,128], index: 0, kind: input, shape index: {}]   ;;  %s506_s5 = inlined_call_operand.vmem [shape: bf16[128,128], index: 5, kind: input, shape index: {}]   ;;  %s507_s3 = inlined_call_operand.vmem [shape: f32[1,128], index: 3, kind: input, shape index: {}]   ;;  %s508_s4 = inlined_call_operand.vmem [shape: f32[1,128], index: 4, kind: input, shape index: {}]   ;;  %s509_s6 = inlined_call_operand.vmem [shape: f32[128,128], index: 6, kind: output, shape index: {}]  }
   0x1   :  { %v23_v0 = vld [vmem:[%s503_s1] sm:$0x1]  ;;  %v261_v12 = vld [vmem:[%s505_s0 + $0x8] sm:$0xff]   ;;  %v262_v14 = vld [vmem:[%s505_s0 + $0x10] sm:$0xff]  }
   0x2   :  { %v25_v1 = vld [vmem:[%s504_s2] sm:$0x1]  ;;  %v24_v2 = vmul.f32 0.0078125, %v23_v0  ;;  %v318_v9 = vshrl.u32 %v70_v8, 7  ;;  %v334_v13 = vld [vmem:[%s506_s5 + $0x8] sm:$0xff]   ;;  %v342_v15 = vld [vmem:[%s506_s5 + $0x10] sm:$0xff]   ;;  %v203_v23 = vunpack.c.l.bf16 %v261_v12  ;;  %v204_v25 = vunpack.c.h.bf16 %v261_v12 }
   0x3   :  { %v26_v3 = vmul.f32 0.0078125, %v25_v1  ;;  %v198_v10 = vld [vmem:[%s505_s0] sm:$0xff]   ;;  %v263_v20 = vld [vmem:[%s505_s0 + $0x18] sm:$0xff]   ;;  %v235_v24 = vunpack.c.l.bf16 %v334_v13  ;;  %v236_v29 = vunpack.c.h.bf16 %v334_v13  ;;  %v207_v30 = vunpack.c.l.bf16 %v262_v14  ;;  %v265_v33 = vld [vmem:[%s505_s0 + $0x28] sm:$0xff]  }
   0x4   :  { %v27_v4 = vmul.f32 %v24_v2, %v24_v2  ;;  %v326_v11 = vld [vmem:[%s506_s5] sm:$0xff]   ;;  %v199_v16 = vunpack.c.l.bf16 %v198_v10  ;;  %v72_v17 = vsub.s32 0, %v318_v9  ;;  %v200_v19 = vunpack.c.h.bf16 %v198_v10  ;;  %v352_v21 = vld [vmem:[%s506_s5 + $0x18] sm:$0xff]   ;;  %v375_v34 = vld [vmem:[%s506_s5 + $0x28] sm:$0xff]  }
   0x5   :  { %v231_v18 = vunpack.c.l.bf16 %v326_v11  ;;  %v232_v22 = vunpack.c.h.bf16 %v326_v11  ;;  %v264_v26 = vld [vmem:[%s505_s0 + $0x20] sm:$0xff]   ;;  %v239_v31 = vunpack.c.l.bf16 %v342_v15  ;;  %v208_v32 = vunpack.c.h.bf16 %v262_v14  ;;  %v266_v39 = vld [vmem:[%s505_s0 + $0x30] sm:$0xff]   ;;  %v394_v50 = vld [vmem:[%s505_s0 + $0x38] sm:$0xff]  }
   0x6   :  { %v28_v5 = vsub.f32 %v26_v3, %v27_v4  ;;  %v362_v27 = vld [vmem:[%s506_s5 + $0x20] sm:$0xff]   ;;  %v240_v35 = vunpack.c.h.bf16 %v342_v15  ;;  %v211_v36 = vunpack.c.l.bf16 %v263_v20  ;;  %v243_v37 = vunpack.c.l.bf16 %v352_v21  ;;  %v385_v40 = vld [vmem:[%s506_s5 + $0x30] sm:$0xff]   ;;  %v399_v51 = vld [vmem:[%s506_s5 + $0x38] sm:$0xff]  }
   0x7   :  { %v32_v28 = vld [vmem:[%s507_s3] sm:$0x1]  ;;  %v212_v38 = vunpack.c.h.bf16 %v263_v20  ;;  %v244_v42 = vunpack.c.h.bf16 %v352_v21  ;;  %v215_v43 = vunpack.c.l.bf16 %v264_v26  ;;  %v247_v44 = vunpack.c.l.bf16 %v362_v27 }
   0x8   :  { %v29_v6 = vmax.f32 %v28_v5, 0.0  ;;  %v216_v45 = vunpack.c.h.bf16 %v264_v26  ;;  %v248_v47 = vunpack.c.h.bf16 %v362_v27  ;;  %v219_v48 = vunpack.c.l.bf16 %v265_v33  ;;  %v34_v52 = vld [vmem:[%s508_s4] sm:$0x1] }
   0x9   :  { %v251_v49 = vunpack.c.l.bf16 %v375_v34  ;;  %v220_v53 = vunpack.c.h.bf16 %v265_v33  ;;  %v252_v54 = vunpack.c.h.bf16 %v375_v34  ;;  %v223_v55 = vunpack.c.l.bf16 %v266_v39 }
   0xa   :  { %v30_v7 = vadd.f32 1e-05, %v29_v6  ;;  %v255_v56 = vunpack.c.l.bf16 %v385_v40  ;;  %v224_v59 = vunpack.c.h.bf16 %v266_v39  ;;  %v256_v60 = vunpack.c.h.bf16 %v385_v40 }
   0xb   :  { %v227_v61 = vunpack.c.l.bf16 %v394_v50  ;;  %v259_v62 = vunpack.c.l.bf16 %v399_v51  ;;  %v228_v63 = vunpack.c.h.bf16 %v394_v50  ;;  %v260_v0 = vunpack.c.h.bf16 %v399_v51 }
   0xc   :  { %275 = vrsqrt.f32 %v30_v7 }
  0x19   :  { %v276_v41 = vpop.eup %275 }
  0x1a   :  { %v33_v46 = vmul.f32 %v276_v41, %v32_v28 }
  0x1c   :  { %v35_v57 = vmul.f32 %v33_v46, %v24_v2  ;;  %v406_v58 = vrot.slane %v33_v46, %v72_v17 }
  0x1e   :  { %v36_v1 = vsub.f32 %v34_v52, %v35_v57  ;;  %v75_v3 = vmul.f32 %v199_v16, %v406_v58  ;;  %v76_v4 = vmul.f32 %v200_v19, %v406_v58  ;;  %v77_v2 = vmul.f32 %v203_v23, %v406_v58 }
  0x1f   :  { %v78_v5 = vmul.f32 %v204_v25, %v406_v58  ;;  %v79_v6 = vmul.f32 %v207_v30, %v406_v58  ;;  %v80_v7 = vmul.f32 %v208_v32, %v406_v58  ;;  %v81_v8 = vmul.f32 %v211_v36, %v406_v58 }
  0x20   :  { %v95_v9 = vrot.slane %v36_v1, %v72_v17  ;;  %v82_v10 = vmul.f32 %v212_v38, %v406_v58  ;;  %v83_v12 = vmul.f32 %v215_v43, %v406_v58  ;;  %v84_v14 = vmul.f32 %v216_v45, %v406_v58 }
  0x21   :  { %v85_v16 = vmul.f32 %v219_v48, %v406_v58  ;;  %v86_v19 = vmul.f32 %v220_v53, %v406_v58  ;;  %v87_v20 = vmul.f32 %v223_v55, %v406_v58  ;;  %v88_v21 = vmul.f32 %v224_v59, %v406_v58 }
  0x22   :  { %v97_v23 = vadd.f32 %v95_v9, %v75_v3  ;;  %v98_v25 = vadd.f32 %v95_v9, %v76_v4  ;;  %v99_v26 = vadd.f32 %v95_v9, %v77_v2  ;;  %v100_v28 = vadd.f32 %v95_v9, %v78_v5 }
  0x23   :  { %v101_v30 = vadd.f32 %v95_v9, %v79_v6  ;;  %v102_v17 = vadd.f32 %v95_v9, %v80_v7  ;;  %v103_v32 = vadd.f32 %v95_v9, %v81_v8  ;;  %v104_v33 = vadd.f32 %v95_v9, %v82_v10 }
  0x24   :  { %v145_v36 = vadd.f32 %v231_v18, %v97_v23  ;;  %v146_v38 = vadd.f32 %v232_v22, %v98_v25  ;;  %v147_v39 = vadd.f32 %v235_v24, %v99_v26  ;;  %v148_v41 = vadd.f32 %v236_v29, %v100_v28 }
  0x25   :  { %v149_v43 = vadd.f32 %v239_v31, %v101_v30  ;;  %v150_v45 = vadd.f32 %v240_v35, %v102_v17  ;;  %v151_v46 = vadd.f32 %v243_v37, %v103_v32  ;;  %v152_v48 = vadd.f32 %v244_v42, %v104_v33 }
  0x26   :  { %v161_v50 = vmax.f32 %v145_v36, 0.0  ;;  %v162_v52 = vmax.f32 %v146_v38, 0.0  ;;  %v163_v53 = vmax.f32 %v147_v39, 0.0  ;;  %v164_v55 = vmax.f32 %v148_v41, 0.0 }
  0x27   :  { %v165_v18 = vmax.f32 %v149_v43, 0.0  ;;  %v166_v57 = vmax.f32 %v150_v45, 0.0  ;;  %v167_v11 = vmax.f32 %v151_v46, 0.0  ;;  %v168_v22 = vmax.f32 %v152_v48, 0.0 }
  0x28   :  { %177 = vst [vmem:[%s509_s6] sm:$0xff] %v161_v50  ;;  %178 = vst [vmem:[%s509_s6 + $0x8] sm:$0xff] %v162_v52  ;;  %v105_v13 = vadd.f32 %v95_v9, %v83_v12  ;;  %v106_v15 = vadd.f32 %v95_v9, %v84_v14  ;;  %v107_v24 = vadd.f32 %v95_v9, %v85_v16 }
  0x29   :  { %179 = vst [vmem:[%s509_s6 + $0x10] sm:$0xff] %v163_v53  ;;  %180 = vst [vmem:[%s509_s6 + $0x18] sm:$0xff] %v164_v55  ;;  %v108_v29 = vadd.f32 %v95_v9, %v86_v19  ;;  %v109_v31 = vadd.f32 %v95_v9, %v87_v20  ;;  %v110_v35 = vadd.f32 %v95_v9, %v88_v21 }
  0x2a   :  { %181 = vst [vmem:[%s509_s6 + $0x20] sm:$0xff] %v165_v18  ;;  %182 = vst [vmem:[%s509_s6 + $0x28] sm:$0xff] %v166_v57  ;;  %v89_v37 = vmul.f32 %v227_v61, %v406_v58  ;;  %v90_v42 = vmul.f32 %v228_v63, %v406_v58  ;;  %v153_v59 = vadd.f32 %v247_v44, %v105_v13 }
  0x2b   :  { %183 = vst [vmem:[%s509_s6 + $0x30] sm:$0xff] %v167_v11  ;;  %184 = vst [vmem:[%s509_s6 + $0x38] sm:$0xff] %v168_v22  ;;  %v154_v1 = vadd.f32 %v248_v47, %v106_v15  ;;  %v155_v3 = vadd.f32 %v251_v49, %v107_v24  ;;  %v156_v4 = vadd.f32 %v252_v54, %v108_v29 }
  0x2c   :  { %v157_v2 = vadd.f32 %v255_v56, %v109_v31  ;;  %v158_v61 = vadd.f32 %v256_v60, %v110_v35  ;;  %v111_v5 = vadd.f32 %v95_v9, %v89_v37  ;;  %v112_v58 = vadd.f32 %v95_v9, %v90_v42 }
  0x2d   :  { %v169_v63 = vmax.f32 %v153_v59, 0.0  ;;  %v170_v6 = vmax.f32 %v154_v1, 0.0  ;;  %v171_v44 = vmax.f32 %v155_v3, 0.0  ;;  %v172_v7 = vmax.f32 %v156_v4, 0.0 }
  0x2e   :  { %v173_v27 = vmax.f32 %v157_v2, 0.0  ;;  %v174_v47 = vmax.f32 %v158_v61, 0.0  ;;  %v159_v49 = vadd.f32 %v259_v62, %v111_v5  ;;  %v160_v34 = vadd.f32 %v260_v0, %v112_v58 }
  0x2f   :  { %185 = vst [vmem:[%s509_s6 + $0x40] sm:$0xff] %v169_v63  ;;  %186 = vst [vmem:[%s509_s6 + $0x48] sm:$0xff] %v170_v6 }
  0x30   :  { %187 = vst [vmem:[%s509_s6 + $0x50] sm:$0xff] %v171_v44  ;;  %188 = vst [vmem:[%s509_s6 + $0x58] sm:$0xff] %v172_v7  ;;  %v175_v40 = vmax.f32 %v159_v49, 0.0  ;;  %v176_v51 = vmax.f32 %v160_v34, 0.0 }
  0x31   :  { %189 = vst [vmem:[%s509_s6 + $0x60] sm:$0xff] %v173_v27  ;;  %190 = vst [vmem:[%s509_s6 + $0x68] sm:$0xff] %v174_v47 }
  0x32   :  { %191 = vst [vmem:[%s509_s6 + $0x70] sm:$0xff] %v175_v40  ;;  %192 = vst [vmem:[%s509_s6 + $0x78] sm:$0xff] %v176_v51 }

</bundles_post_ra>
